<compile_context>
chip_gen: v6e
topology: v6e:2x2x1
jax: 0.10.0
libtpu: 0.0.40
codegen_flags: <defaults>
</compile_context>

<pallas_src>
import functools

import jax
import jax.numpy as jnp
from jax.experimental import pallas as pl
from jax.experimental.pallas import tpu as pltpu


# ------------------------------ Pallas kernels -------------------------------

def _conv_pool_kernel(p_ref, w_ref, s_ref, o_ref):
    """Fused Conv3x3 (im2col matmul) + BN shift + ReLU + 2x2 max-pool (layer2).

    p_ref: (4, bb*Qp, K) bf16  corner-major patches, rows (image, pooled-position)
    w_ref: (K, C)        bf16  conv weights with the BN scale folded in
    s_ref: (1, C)        f32   folded BN shift (includes conv bias)
    o_ref: (bb*Qp, C)    bf16  pooled activations, rows (image, pooled-position)
    """
    def corner(c):
        return jnp.dot(p_ref[c], w_ref[...], preferred_element_type=jnp.float32)

    # max-pool commutes with the monotonic (+shift, ReLU): pool first with three
    # full-width VPU maxes over 8-aligned slabs, then one shift+ReLU and one store.
    z = jnp.maximum(jnp.maximum(corner(0), corner(1)),
                    jnp.maximum(corner(2), corner(3)))
    o_ref[...] = jnp.maximum(z + s_ref[...], 0.0).astype(o_ref.dtype)


def _tail_kernel(p3_ref, w3_ref, s3_ref, w1_ref, b1_ref, w2_ref, b2_ref, o_ref,
                 *, n_img, b_pad):
    """layer3 (Conv+BN+ReLU+Pool) fused with fc1+ReLU and fc2.

    p3_ref: (4, 9*b_pad, 576) bf16  corner-major layer3 patches, rows (q, image)
    w3_ref: (576, 128) bf16, s3_ref: (1, 128) f32
    w1_ref: (1152, 1024) bf16 (rows pre-permuted to (q, c) order), b1_ref: (1, 1024) f32
    w2_ref: (1024, 10) bf16, b2_ref: (1, 10) f32
    o_ref:  (n_img, 10) f32
    """
    def corner(c):
        return jnp.dot(p3_ref[c], w3_ref[...], preferred_element_type=jnp.float32)

    z = jnp.maximum(jnp.maximum(corner(0), corner(1)),
                    jnp.maximum(corner(2), corner(3)))
    a3 = jnp.maximum(z + s3_ref[...], 0.0)                      # (9*b_pad, 128) f32

    # Flatten for fc1: rows are (q, image) with 8-aligned q-slabs, so each pooled
    # position is a contiguous row slice; concatenating the nine 128-lane slices
    # along lanes gives the (n_img, 1152) fc1 input with no transpose (the matching
    # permutation was applied to fc1's weight rows once, at prep time).
    flat = jnp.concatenate(
        [a3[q * b_pad:q * b_pad + n_img, :] for q in range(9)], axis=-1)
    h = jnp.dot(flat.astype(jnp.bfloat16), w1_ref[...],
                preferred_element_type=jnp.float32)
    h = jnp.maximum(h + b1_ref[...], 0.0)                       # Dropout(eval) = identity
    o_ref[...] = (jnp.dot(h.astype(jnp.bfloat16), w2_ref[...],
                          preferred_element_type=jnp.float32) + b2_ref[...])


# ------------------------------ kernel wrappers -------------------------------

def _pick_block_batch(B, q_pad, target_rows=1024):
    """Images per kernel-A grid step: the largest divisor of B whose corner slab
    (bb * q_pad rows) stays <= target_rows, preferring >= 2 grid steps so both
    v7x TensorCores get work.  q_pad is a multiple of 8, so slabs stay aligned."""
    divs = [d for d in range(1, B + 1) if B % d == 0]
    fitting = [d for d in divs if d * q_pad <= target_rows] or [1]
    two_step = [d for d in fitting if B // d >= 2]
    return max(two_step) if two_step else max(fitting)


def conv_block(p, w_mat, shift, B, bb, q_pad):
    """Layer2 fused conv block.  p: (4, B*q_pad, K) bf16 corner-major patches."""
    K = p.shape[-1]
    C = w_mat.shape[1]
    flops = 2 * 4 * B * q_pad * K * C
    bytes_accessed = (p.size + w_mat.size + B * q_pad * C) * 2 + shift.size * 4
    return pl.pallas_call(
        _conv_pool_kernel,
        out_shape=jax.ShapeDtypeStruct((B * q_pad, C), jnp.bfloat16),
        grid_spec=pltpu.PrefetchScalarGridSpec(
            num_scalar_prefetch=0,
            grid=(B // bb,),
            in_specs=[
                pl.BlockSpec((4, bb * q_pad, K), lambda b: (0, b, 0)),
                pl.BlockSpec((K, C), lambda b: (0, 0)),
                pl.BlockSpec((1, C), lambda b: (0, 0)),
            ],
            out_specs=pl.BlockSpec((bb * q_pad, C), lambda b: (b, 0)),
        ),
        compiler_params=pltpu.CompilerParams(dimension_semantics=("parallel",)),
        cost_estimate=pl.CostEstimate(flops=flops, transcendentals=0,
                                      bytes_accessed=bytes_accessed),
    )(p, w_mat, shift)


def tail_block(p3, w3, s3, w1, b1, w2, b2, B, b_pad):
    """Layer3 + FC head in one call.  Whole (padded) batch per step: fine for small B;
    for large B one would switch to an image-major layout with a batch grid."""
    kernel = functools.partial(_tail_kernel, n_img=B, b_pad=b_pad)
    flops = 2 * (4 * 9 * b_pad * 576 * 128 + B * 1152 * 1024 + B * 1024 * 10)
    bytes_accessed = ((p3.size + w3.size + w1.size + w2.size) * 2
                      + (s3.size + b1.size + b2.size + B * 10) * 4)
    return pl.pallas_call(
        kernel,
        out_shape=jax.ShapeDtypeStruct((B, 10), jnp.float32),
        grid_spec=pltpu.PrefetchScalarGridSpec(
            num_scalar_prefetch=0,
            grid=(1,),
            in_specs=[
                pl.BlockSpec(p3.shape, lambda i: (0, 0, 0)),
                pl.BlockSpec(w3.shape, lambda i: (0, 0)),
                pl.BlockSpec(s3.shape, lambda i: (0, 0)),
                pl.BlockSpec(w1.shape, lambda i: (0, 0)),
                pl.BlockSpec(b1.shape, lambda i: (0, 0)),
                pl.BlockSpec(w2.shape, lambda i: (0, 0)),
                pl.BlockSpec(b2.shape, lambda i: (0, 0)),
            ],
            out_specs=pl.BlockSpec((B, 10), lambda i: (0, 0)),
        ),
        compiler_params=pltpu.CompilerParams(dimension_semantics=("arbitrary",)),
        cost_estimate=pl.CostEstimate(flops=flops, transcendentals=0,
                                      bytes_accessed=bytes_accessed),
    )(p3, w3, s3, w1, b1, w2, b2)


# ------------------------------ plain-JAX glue --------------------------------

def _layer1_xla(x_nhwc, w4d, shift):
    """layer1 (Conv 1->16 + folded BN + ReLU + MaxPool2d(2)) in plain JAX/XLA."""
    y = jax.lax.conv_general_dilated(x_nhwc, w4d, (1, 1), ((1, 1), (1, 1)),
                                     dimension_numbers=("NHWC", "HWIO", "NHWC"))
    y = jnp.maximum(y + shift, 0.0)
    return jax.lax.reduce_window(y, -jnp.inf, jax.lax.max,
                                 (1, 2, 2, 1), (1, 2, 2, 1), "VALID")


def _corner_patches_image_major(a, q_pad):
    """[B,H,W,C] -> (4, B*q_pad, 9C) bf16 corner-major patches, rows (image, ho*Wo+wo).
    Per-image rows are zero-padded from Ho*Wo to q_pad (a multiple of 8)."""
    B, H, W, C = a.shape
    Ho, Wo = H // 2, W // 2
    ap = jnp.pad(a, ((0, 0), (1, 1), (1, 1), (0, 0)))
    taps = [ap[:, dh:dh + H, dw:dw + W, :] for dh in range(3) for dw in range(3)]
    p = jnp.concatenate(taps, axis=-1)                               # (B, H, W, 9C)
    corners = []
    for hp in range(2):
        for wp in range(2):
            c = p[:, hp:2 * Ho:2, wp:2 * Wo:2, :].reshape(B, Ho * Wo, 9 * C)
            c = jnp.pad(c, ((0, 0), (0, q_pad - Ho * Wo), (0, 0)))
            corners.append(c.reshape(B * q_pad, 9 * C))
    return jnp.stack(corners, axis=0).astype(jnp.bfloat16)


def _corner_patches_position_major(a, b_pad):
    """[B,H,W,C] -> (4, Ho*Wo*b_pad, 9C) bf16 corner-major patches, rows (q, image).
    The image axis is zero-padded to b_pad (a multiple of 8)."""
    B, H, W, C = a.shape
    Ho, Wo = H // 2, W // 2
    ap = jnp.pad(a, ((0, b_pad - B), (1, 1), (1, 1), (0, 0)))
    taps = [ap[:, dh:dh + H, dw:dw + W, :] for dh in range(3) for dw in range(3)]
    p = jnp.concatenate(taps, axis=-1)                               # (b_pad, H, W, 9C)
    corners = []
    for hp in range(2):
        for wp in range(2):
            c = p[:, hp:2 * Ho:2, wp:2 * Wo:2, :]                    # (b_pad, Ho, Wo, 9C)
            corners.append(jnp.transpose(c, (1, 2, 0, 3)).reshape(Ho * Wo * b_pad, 9 * C))
    return jnp.stack(corners, axis=0).astype(jnp.bfloat16)


def cnn_forward(x_nchw, params):
    B = x_nchw.shape[0]
    x = jnp.transpose(x_nchw, (0, 2, 3, 1)).astype(jnp.float32)      # NCHW -> NHWC

    # layer1 stays in XLA (lane-sparse K=9/Cout=16; fuses with the input prep).
    w1c, s1 = params["layer1"]
    a1 = _layer1_xla(x, w1c, s1)                                     # (B, 14, 14, 16) f32

    # layer2: one fused Pallas kernel (conv matmul + shift + ReLU + pool).
    w2m, s2 = params["layer2"]
    q_pad2 = 56                                                      # 7*7=49 -> 56 (8-aligned)
    p2 = _corner_patches_image_major(a1, q_pad2)                     # (4, B*56, 144) bf16
    bb = _pick_block_batch(B, q_pad2)
    a2 = conv_block(p2, w2m, s2, B, bb, q_pad2)                      # (B*56, 64) bf16
    a2 = a2.reshape(B, q_pad2, 64)[:, :49, :].reshape(B, 7, 7, 64)

    # layer3 + fc1 + fc2: one fused Pallas kernel.
    w3m, s3 = params["layer3"]
    w1m, b1, w2fc, b2 = params["fc"]
    b_pad = ((B + 7) // 8) * 8
    p3 = _corner_patches_position_major(a2, b_pad)                   # (4, 9*b_pad, 576) bf16
    return tail_block(p3, w3m, s3, w1m, b1, w2fc, b2, B, b_pad)      # (B, 10) f32


# ------------------------------ parameters ------------------------------------

def conv_layer_params(key, cin, cout):
    ks = jax.random.split(key, 6)
    return dict(
        w=jax.random.normal(ks[0], (3, 3, cin, cout), jnp.float32) * 0.1,
        bias=jax.random.normal(ks[1], (cout,), jnp.float32) * 0.1,
        gamma=1.0 + 0.1 * jax.random.normal(ks[2], (cout,), jnp.float32),
        beta=0.1 * jax.random.normal(ks[3], (cout,), jnp.float32),
        mean=0.1 * jax.random.normal(ks[4], (cout,), jnp.float32),
        var=jax.random.uniform(ks[5], (cout,), jnp.float32, 0.5, 1.5),
        eps=1e-5,
    )


def fc_layer_params(key):
    ks = jax.random.split(key, 4)
    return dict(
        w1=jax.random.normal(ks[0], (1152, 1024), jnp.float32) * 0.02,
        b1=0.1 * jax.random.normal(ks[1], (1, 1024), jnp.float32),
        w2=jax.random.normal(ks[2], (1024, 10), jnp.float32) * 0.02,
        b2=0.1 * jax.random.normal(ks[3], (1, 10), jnp.float32),
    )


def prepare_kernel_params(raw):
    """Fold BN (eval) into the conv weights/shift, cast matmul operands to bf16, and
    permute fc1's weight rows from the PyTorch NCHW-flatten order (c*9 + q) to the
    kernel's (q, c) order so the activation path needs no transpose."""
    prepped = {}
    p = raw["layer1"]
    scale = p["gamma"] / jnp.sqrt(p["var"] + p["eps"])
    shift = p["beta"] + (p["bias"] - p["mean"]) * scale
    prepped["layer1"] = (p["w"] * scale, shift[None, :].astype(jnp.float32))
    for name in ("layer2", "layer3"):
        p = raw[name]
        cin, cout = p["w"].shape[2], p["w"].shape[3]
        scale = p["gamma"] / jnp.sqrt(p["var"] + p["eps"])
        shift = p["beta"] + (p["bias"] - p["mean"]) * scale
        w_mat = (p["w"].reshape(9 * cin, cout) * scale[None, :]).astype(jnp.bfloat16)
        prepped[name] = (w_mat, shift[None, :].astype(jnp.float32))
    fc = raw["fc"]
    w1p = fc["w1"].reshape(128, 9, 1024).transpose(1, 0, 2).reshape(1152, 1024)
    prepped["fc"] = (w1p.astype(jnp.bfloat16), fc["b1"].astype(jnp.float32),
                     fc["w2"].astype(jnp.bfloat16), fc["b2"].astype(jnp.float32))
    return prepped


# ------------------------------ reference (pure JAX, f32) ----------------------

def reference_forward(x_nchw, raw):
    x = jnp.transpose(x_nchw, (0, 2, 3, 1)).astype(jnp.float32)
    for name in ("layer1", "layer2", "layer3"):
        p = raw[name]
        scale = p["gamma"] / jnp.sqrt(p["var"] + p["eps"])
        shift = p["beta"] + (p["bias"] - p["mean"]) * scale
        y = jax.lax.conv_general_dilated(x, p["w"], (1, 1), ((1, 1), (1, 1)),
                                         dimension_numbers=("NHWC", "HWIO", "NHWC"))
        y = jnp.maximum(y * scale + shift, 0.0)
        x = jax.lax.reduce_window(y, -jnp.inf, jax.lax.max,
                                  (1, 2, 2, 1), (1, 2, 2, 1), "VALID")
    B, H, W, C = x.shape
    flat = jnp.transpose(x, (0, 3, 1, 2)).reshape(B, C * H * W)      # PyTorch view on NCHW
    fc = raw["fc"]
    h = jnp.maximum(flat @ fc["w1"] + fc["b1"], 0.0)
    return h @ fc["w2"] + fc["b2"]


# ------------------------------ main -------------------------------------------

if __name__ == "__main__":
    key = jax.random.PRNGKey(0)
    kx, k1, k2, k3, kf = jax.random.split(key, 5)

    # MNIST-style input implied by the 1152 = 128*3*3 flatten: [B, 1, 28, 28] NCHW.
    x = jax.random.normal(kx, (2, 1, 28, 28), jnp.float32)

    raw_params = {
        "layer1": conv_layer_params(k1, 1, 16),
        "layer2": conv_layer_params(k2, 16, 64),
        "layer3": conv_layer_params(k3, 64, 128),
        "fc": fc_layer_params(kf),
    }
    kernel_params = prepare_kernel_params(raw_params)

    out = jax.jit(cnn_forward)(x, kernel_params)
    out = jax.block_until_ready(out)
    assert out.shape == (2, 10), out.shape

    ref = jax.block_until_ready(reference_forward(x, raw_params))
    max_err = jnp.max(jnp.abs(out - ref))
    # bf16 MXU operands with f32 accumulation vs pure-f32 reference.
    assert jnp.allclose(out, ref, rtol=2e-2, atol=2e-2), (max_err, out, ref)

    print("KERNEL_OK")
</pallas_src>

<mosaic_0001>
module attributes {stable_mosaic.version = 11 : i64} {
  func.func @_conv_pool_kernel(%arg0: i32, %arg1: memref<4x56x144xbf16, #tpu.memory_space<vmem>>, %arg2: memref<144x64xbf16, #tpu.memory_space<vmem>>, %arg3: memref<1x64xf32, #tpu.memory_space<vmem>>, %arg4: memref<56x64xbf16, #tpu.memory_space<vmem>>) attributes {dimension_semantics = [#tpu.dimension_semantics<parallel>], iteration_bounds = array<i64: 2>, scalar_prefetch = 0 : i64, scratch_operands = 0 : i64, tpu.core_type = #tpu.core_type<tc>, window_params = [{transform_indices = @transform_0, window_bounds = array<i64: 4, 56, 144>}, {pipeline_mode = #tpu.pipeline_mode<synchronous>, transform_indices = @transform_1, window_bounds = array<i64: 144, 64>}, {pipeline_mode = #tpu.pipeline_mode<synchronous>, transform_indices = @transform_2, window_bounds = array<i64: 1, 64>}, {transform_indices = @transform_3, window_bounds = array<i64: 56, 64>}]} {
    %c0 = arith.constant 0 : index
    %c0_0 = arith.constant 0 : index
    %c0_1 = arith.constant 0 : index
    %0 = vector.load %arg1[%c0, %c0_0, %c0_1] : memref<4x56x144xbf16, #tpu.memory_space<vmem>>, vector<1x56x144xbf16>
    %1 = vector.shape_cast %0 : vector<1x56x144xbf16> to vector<56x144xbf16>
    %c0_2 = arith.constant 0 : index
    %c0_3 = arith.constant 0 : index
    %2 = vector.load %arg2[%c0_2, %c0_3] : memref<144x64xbf16, #tpu.memory_space<vmem>>, vector<144x64xbf16>
    %cst = arith.constant dense<0.000000e+00> : vector<56x64xf32>
    %3 = tpu.matmul %1, %2, %cst {dimension_numbers = #tpu.dot_dimension_numbers<[1], [0], [0], [1], [0, 0, 1, 1], [], []>} : vector<56x144xbf16>, vector<144x64xbf16>, vector<56x64xf32> -> vector<56x64xf32>
    %c1 = arith.constant 1 : index
    %c0_4 = arith.constant 0 : index
    %c0_5 = arith.constant 0 : index
    %4 = vector.load %arg1[%c1, %c0_4, %c0_5] : memref<4x56x144xbf16, #tpu.memory_space<vmem>>, vector<1x56x144xbf16>
    %5 = vector.shape_cast %4 : vector<1x56x144xbf16> to vector<56x144xbf16>
    %c0_6 = arith.constant 0 : index
    %c0_7 = arith.constant 0 : index
    %6 = vector.load %arg2[%c0_6, %c0_7] : memref<144x64xbf16, #tpu.memory_space<vmem>>, vector<144x64xbf16>
    %cst_8 = arith.constant dense<0.000000e+00> : vector<56x64xf32>
    %7 = tpu.matmul %5, %6, %cst_8 {dimension_numbers = #tpu.dot_dimension_numbers<[1], [0], [0], [1], [0, 0, 1, 1], [], []>} : vector<56x144xbf16>, vector<144x64xbf16>, vector<56x64xf32> -> vector<56x64xf32>
    %8 = arith.maximumf %3, %7 : vector<56x64xf32>
    %c2 = arith.constant 2 : index
    %c0_9 = arith.constant 0 : index
    %c0_10 = arith.constant 0 : index
    %9 = vector.load %arg1[%c2, %c0_9, %c0_10] : memref<4x56x144xbf16, #tpu.memory_space<vmem>>, vector<1x56x144xbf16>
    %10 = vector.shape_cast %9 : vector<1x56x144xbf16> to vector<56x144xbf16>
    %c0_11 = arith.constant 0 : index
    %c0_12 = arith.constant 0 : index
    %11 = vector.load %arg2[%c0_11, %c0_12] : memref<144x64xbf16, #tpu.memory_space<vmem>>, vector<144x64xbf16>
    %cst_13 = arith.constant dense<0.000000e+00> : vector<56x64xf32>
    %12 = tpu.matmul %10, %11, %cst_13 {dimension_numbers = #tpu.dot_dimension_numbers<[1], [0], [0], [1], [0, 0, 1, 1], [], []>} : vector<56x144xbf16>, vector<144x64xbf16>, vector<56x64xf32> -> vector<56x64xf32>
    %c3 = arith.constant 3 : index
    %c0_14 = arith.constant 0 : index
    %c0_15 = arith.constant 0 : index
    %13 = vector.load %arg1[%c3, %c0_14, %c0_15] : memref<4x56x144xbf16, #tpu.memory_space<vmem>>, vector<1x56x144xbf16>
    %14 = vector.shape_cast %13 : vector<1x56x144xbf16> to vector<56x144xbf16>
    %c0_16 = arith.constant 0 : index
    %c0_17 = arith.constant 0 : index
    %15 = vector.load %arg2[%c0_16, %c0_17] : memref<144x64xbf16, #tpu.memory_space<vmem>>, vector<144x64xbf16>
    %cst_18 = arith.constant dense<0.000000e+00> : vector<56x64xf32>
    %16 = tpu.matmul %14, %15, %cst_18 {dimension_numbers = #tpu.dot_dimension_numbers<[1], [0], [0], [1], [0, 0, 1, 1], [], []>} : vector<56x144xbf16>, vector<144x64xbf16>, vector<56x64xf32> -> vector<56x64xf32>
    %17 = arith.maximumf %12, %16 : vector<56x64xf32>
    %18 = arith.maximumf %8, %17 : vector<56x64xf32>
    %c0_19 = arith.constant 0 : index
    %c0_20 = arith.constant 0 : index
    %19 = vector.load %arg3[%c0_19, %c0_20] : memref<1x64xf32, #tpu.memory_space<vmem>>, vector<1x64xf32>
    %20 = vector.broadcast %19 : vector<1x64xf32> to vector<56x64xf32>
    %21 = arith.addf %18, %20 : vector<56x64xf32>
    %cst_21 = arith.constant 0.000000e+00 : f32
    %22 = vector.broadcast %cst_21 : f32 to vector<56x64xf32>
    %23 = arith.maximumf %21, %22 : vector<56x64xf32>
    %24 = arith.truncf %23 : vector<56x64xf32> to vector<56x64xbf16>
    %c0_22 = arith.constant 0 : index
    %c0_23 = arith.constant 0 : index
    %25 = vector.load %arg4[%c0_22, %c0_23] : memref<56x64xbf16, #tpu.memory_space<vmem>>, vector<56x64xbf16>
    tpu.vector_store %arg4[%c0_22, %c0_23], %24 {strides = array<i32>} : memref<56x64xbf16, #tpu.memory_space<vmem>>, vector<56x64xbf16>,
    return
  }
  func.func @transform_0(%arg0: i32) -> (i32, i32, i32) {
    %c0_i32 = arith.constant 0 : i32
    %c0_i32_0 = arith.constant 0 : i32
    %c0_i32_1 = arith.constant 0 : i32
    return %c0_i32, %arg0, %c0_i32_0 : i32, i32, i32
  }
  func.func @transform_1(%arg0: i32) -> (i32, i32) {
    %c0_i32 = arith.constant 0 : i32
    %c0_i32_0 = arith.constant 0 : i32
    %c0_i32_1 = arith.constant 0 : i32
    return %c0_i32, %c0_i32_0 : i32, i32
  }
  func.func @transform_2(%arg0: i32) -> (i32, i32) {
    %c0_i32 = arith.constant 0 : i32
    %c0_i32_0 = arith.constant 0 : i32
    %c0_i32_1 = arith.constant 0 : i32
    return %c0_i32, %c0_i32_0 : i32, i32
  }
  func.func @transform_3(%arg0: i32) -> (i32, i32) {
    %c0_i32 = arith.constant 0 : i32
    %c0_i32_0 = arith.constant 0 : i32
    return %arg0, %c0_i32 : i32, i32
  }
}

module attributes {stable_mosaic.version = 11 : i64} {
  func.func @_tail_kernel(%arg0: i32, %arg1: memref<4x72x576xbf16, #tpu.memory_space<vmem>>, %arg2: memref<576x128xbf16, #tpu.memory_space<vmem>>, %arg3: memref<1x128xf32, #tpu.memory_space<vmem>>, %arg4: memref<1152x1024xbf16, #tpu.memory_space<vmem>>, %arg5: memref<1x1024xf32, #tpu.memory_space<vmem>>, %arg6: memref<1024x10xbf16, #tpu.memory_space<vmem>>, %arg7: memref<1x10xf32, #tpu.memory_space<vmem>>, %arg8: memref<2x10xf32, #tpu.memory_space<vmem>>) attributes {dimension_semantics = [#tpu.dimension_semantics<arbitrary>], iteration_bounds = array<i64: 1>, scalar_prefetch = 0 : i64, scratch_operands = 0 : i64, tpu.core_type = #tpu.core_type<tc>, window_params = [{pipeline_mode = #tpu.pipeline_mode<synchronous>, transform_indices = @transform_0, window_bounds = array<i64: 4, 72, 576>}, {pipeline_mode = #tpu.pipeline_mode<synchronous>, transform_indices = @transform_1, window_bounds = array<i64: 576, 128>}, {pipeline_mode = #tpu.pipeline_mode<synchronous>, transform_indices = @transform_2, window_bounds = array<i64: 1, 128>}, {pipeline_mode = #tpu.pipeline_mode<synchronous>, transform_indices = @transform_3, window_bounds = array<i64: 1152, 1024>}, {pipeline_mode = #tpu.pipeline_mode<synchronous>, transform_indices = @transform_4, window_bounds = array<i64: 1, 1024>}, {pipeline_mode = #tpu.pipeline_mode<synchronous>, transform_indices = @transform_5, window_bounds = array<i64: 1024, 10>}, {pipeline_mode = #tpu.pipeline_mode<synchronous>, transform_indices = @transform_6, window_bounds = array<i64: 1, 10>}, {pipeline_mode = #tpu.pipeline_mode<synchronous>, transform_indices = @transform_7, window_bounds = array<i64: 2, 10>}]} {
    %c0 = arith.constant 0 : index
    %c0_0 = arith.constant 0 : index
    %c0_1 = arith.constant 0 : index
    %0 = vector.load %arg1[%c0, %c0_0, %c0_1] : memref<4x72x576xbf16, #tpu.memory_space<vmem>>, vector<1x72x576xbf16>
    %1 = vector.shape_cast %0 : vector<1x72x576xbf16> to vector<72x576xbf16>
    %c0_2 = arith.constant 0 : index
    %c0_3 = arith.constant 0 : index
    %2 = vector.load %arg2[%c0_2, %c0_3] : memref<576x128xbf16, #tpu.memory_space<vmem>>, vector<576x128xbf16>
    %cst = arith.constant dense<0.000000e+00> : vector<72x128xf32>
    %3 = tpu.matmul %1, %2, %cst {dimension_numbers = #tpu.dot_dimension_numbers<[1], [0], [0], [1], [0, 0, 1, 1], [], []>} : vector<72x576xbf16>, vector<576x128xbf16>, vector<72x128xf32> -> vector<72x128xf32>
    %c1 = arith.constant 1 : index
    %c0_4 = arith.constant 0 : index
    %c0_5 = arith.constant 0 : index
    %4 = vector.load %arg1[%c1, %c0_4, %c0_5] : memref<4x72x576xbf16, #tpu.memory_space<vmem>>, vector<1x72x576xbf16>
    %5 = vector.shape_cast %4 : vector<1x72x576xbf16> to vector<72x576xbf16>
    %c0_6 = arith.constant 0 : index
    %c0_7 = arith.constant 0 : index
    %6 = vector.load %arg2[%c0_6, %c0_7] : memref<576x128xbf16, #tpu.memory_space<vmem>>, vector<576x128xbf16>
    %cst_8 = arith.constant dense<0.000000e+00> : vector<72x128xf32>
    %7 = tpu.matmul %5, %6, %cst_8 {dimension_numbers = #tpu.dot_dimension_numbers<[1], [0], [0], [1], [0, 0, 1, 1], [], []>} : vector<72x576xbf16>, vector<576x128xbf16>, vector<72x128xf32> -> vector<72x128xf32>
    %8 = arith.maximumf %3, %7 : vector<72x128xf32>
    %c2 = arith.constant 2 : index
    %c0_9 = arith.constant 0 : index
    %c0_10 = arith.constant 0 : index
    %9 = vector.load %arg1[%c2, %c0_9, %c0_10] : memref<4x72x576xbf16, #tpu.memory_space<vmem>>, vector<1x72x576xbf16>
    %10 = vector.shape_cast %9 : vector<1x72x576xbf16> to vector<72x576xbf16>
    %c0_11 = arith.constant 0 : index
    %c0_12 = arith.constant 0 : index
    %11 = vector.load %arg2[%c0_11, %c0_12] : memref<576x128xbf16, #tpu.memory_space<vmem>>, vector<576x128xbf16>
    %cst_13 = arith.constant dense<0.000000e+00> : vector<72x128xf32>
    %12 = tpu.matmul %10, %11, %cst_13 {dimension_numbers = #tpu.dot_dimension_numbers<[1], [0], [0], [1], [0, 0, 1, 1], [], []>} : vector<72x576xbf16>, vector<576x128xbf16>, vector<72x128xf32> -> vector<72x128xf32>
    %c3 = arith.constant 3 : index
    %c0_14 = arith.constant 0 : index
    %c0_15 = arith.constant 0 : index
    %13 = vector.load %arg1[%c3, %c0_14, %c0_15] : memref<4x72x576xbf16, #tpu.memory_space<vmem>>, vector<1x72x576xbf16>
    %14 = vector.shape_cast %13 : vector<1x72x576xbf16> to vector<72x576xbf16>
    %c0_16 = arith.constant 0 : index
    %c0_17 = arith.constant 0 : index
    %15 = vector.load %arg2[%c0_16, %c0_17] : memref<576x128xbf16, #tpu.memory_space<vmem>>, vector<576x128xbf16>
    %cst_18 = arith.constant dense<0.000000e+00> : vector<72x128xf32>
    %16 = tpu.matmul %14, %15, %cst_18 {dimension_numbers = #tpu.dot_dimension_numbers<[1], [0], [0], [1], [0, 0, 1, 1], [], []>} : vector<72x576xbf16>, vector<576x128xbf16>, vector<72x128xf32> -> vector<72x128xf32>
    %17 = arith.maximumf %12, %16 : vector<72x128xf32>
    %18 = arith.maximumf %8, %17 : vector<72x128xf32>
    %c0_19 = arith.constant 0 : index
    %c0_20 = arith.constant 0 : index
    %19 = vector.load %arg3[%c0_19, %c0_20] : memref<1x128xf32, #tpu.memory_space<vmem>>, vector<1x128xf32>
    %20 = vector.broadcast %19 : vector<1x128xf32> to vector<72x128xf32>
    %21 = arith.addf %18, %20 : vector<72x128xf32>
    %cst_21 = arith.constant 0.000000e+00 : f32
    %22 = vector.broadcast %cst_21 : f32 to vector<72x128xf32>
    %23 = arith.maximumf %21, %22 : vector<72x128xf32>
    %24 = vector.extract_strided_slice %23 {offsets = [0, 0], sizes = [2, 128], strides = [1, 1]} : vector<72x128xf32> to vector<2x128xf32>
    %25 = vector.extract_strided_slice %23 {offsets = [8, 0], sizes = [2, 128], strides = [1, 1]} : vector<72x128xf32> to vector<2x128xf32>
    %26 = vector.extract_strided_slice %23 {offsets = [16, 0], sizes = [2, 128], strides = [1, 1]} : vector<72x128xf32> to vector<2x128xf32>
    %27 = vector.extract_strided_slice %23 {offsets = [24, 0], sizes = [2, 128], strides = [1, 1]} : vector<72x128xf32> to vector<2x128xf32>
    %28 = vector.extract_strided_slice %23 {offsets = [32, 0], sizes = [2, 128], strides = [1, 1]} : vector<72x128xf32> to vector<2x128xf32>
    %29 = vector.extract_strided_slice %23 {offsets = [40, 0], sizes = [2, 128], strides = [1, 1]} : vector<72x128xf32> to vector<2x128xf32>
    %30 = vector.extract_strided_slice %23 {offsets = [48, 0], sizes = [2, 128], strides = [1, 1]} : vector<72x128xf32> to vector<2x128xf32>
    %31 = vector.extract_strided_slice %23 {offsets = [56, 0], sizes = [2, 128], strides = [1, 1]} : vector<72x128xf32> to vector<2x128xf32>
    %32 = vector.extract_strided_slice %23 {offsets = [64, 0], sizes = [2, 128], strides = [1, 1]} : vector<72x128xf32> to vector<2x128xf32>
    %33 = tpu.concatenate %24, %25, %26, %27, %28, %29, %30, %31, %32 in 1 : vector<2x128xf32>, vector<2x128xf32>, vector<2x128xf32>, vector<2x128xf32>, vector<2x128xf32>, vector<2x128xf32>, vector<2x128xf32>, vector<2x128xf32>, vector<2x128xf32> -> vector<2x1152xf32>
    %34 = arith.truncf %33 : vector<2x1152xf32> to vector<2x1152xbf16>
    %c0_22 = arith.constant 0 : index
    %c0_23 = arith.constant 0 : index
    %35 = vector.load %arg4[%c0_22, %c0_23] : memref<1152x1024xbf16, #tpu.memory_space<vmem>>, vector<1152x1024xbf16>
    %cst_24 = arith.constant dense<0.000000e+00> : vector<2x1024xf32>
    %36 = tpu.matmul %34, %35, %cst_24 {dimension_numbers = #tpu.dot_dimension_numbers<[1], [0], [0], [1], [0, 0, 1, 1], [], []>} : vector<2x1152xbf16>, vector<1152x1024xbf16>, vector<2x1024xf32> -> vector<2x1024xf32>
    %c0_25 = arith.constant 0 : index
    %c0_26 = arith.constant 0 : index
    %37 = vector.load %arg5[%c0_25, %c0_26] : memref<1x1024xf32, #tpu.memory_space<vmem>>, vector<1x1024xf32>
    %38 = vector.broadcast %37 : vector<1x1024xf32> to vector<2x1024xf32>
    %39 = arith.addf %36, %38 : vector<2x1024xf32>
    %cst_27 = arith.constant 0.000000e+00 : f32
    %40 = vector.broadcast %cst_27 : f32 to vector<2x1024xf32>
    %41 = arith.maximumf %39, %40 : vector<2x1024xf32>
    %42 = arith.truncf %41 : vector<2x1024xf32> to vector<2x1024xbf16>
    %c0_28 = arith.constant 0 : index
    %c0_29 = arith.constant 0 : index
    %43 = vector.load %arg6[%c0_28, %c0_29] : memref<1024x10xbf16, #tpu.memory_space<vmem>>, vector<1024x10xbf16>
    %cst_30 = arith.constant dense<0.000000e+00> : vector<2x10xf32>
    %44 = tpu.matmul %42, %43, %cst_30 {dimension_numbers = #tpu.dot_dimension_numbers<[1], [0], [0], [1], [0, 0, 1, 1], [], []>} : vector<2x1024xbf16>, vector<1024x10xbf16>, vector<2x10xf32> -> vector<2x10xf32>
    %c0_31 = arith.constant 0 : index
    %c0_32 = arith.constant 0 : index
    %45 = vector.load %arg7[%c0_31, %c0_32] : memref<1x10xf32, #tpu.memory_space<vmem>>, vector<1x10xf32>
    %46 = vector.broadcast %45 : vector<1x10xf32> to vector<2x10xf32>
    %47 = arith.addf %44, %46 : vector<2x10xf32>
    %c0_33 = arith.constant 0 : index
    %c0_34 = arith.constant 0 : index
    %48 = vector.load %arg8[%c0_33, %c0_34] : memref<2x10xf32, #tpu.memory_space<vmem>>, vector<2x10xf32>
    tpu.vector_store %arg8[%c0_33, %c0_34], %47 {strides = array<i32>} : memref<2x10xf32, #tpu.memory_space<vmem>>, vector<2x10xf32>,
    return
  }
  func.func @transform_0(%arg0: i32) -> (i32, i32, i32) {
    %c0_i32 = arith.constant 0 : i32
    %c0_i32_0 = arith.constant 0 : i32
    %c0_i32_1 = arith.constant 0 : i32
    %c0_i32_2 = arith.constant 0 : i32
    return %c0_i32, %c0_i32_0, %c0_i32_1 : i32, i32, i32
  }
  func.func @transform_1(%arg0: i32) -> (i32, i32) {
    %c0_i32 = arith.constant 0 : i32
    %c0_i32_0 = arith.constant 0 : i32
    %c0_i32_1 = arith.constant 0 : i32
    return %c0_i32, %c0_i32_0 : i32, i32
  }
  func.func @transform_2(%arg0: i32) -> (i32, i32) {
    %c0_i32 = arith.constant 0 : i32
    %c0_i32_0 = arith.constant 0 : i32
    %c0_i32_1 = arith.constant 0 : i32
    return %c0_i32, %c0_i32_0 : i32, i32
  }
  func.func @transform_3(%arg0: i32) -> (i32, i32) {
    %c0_i32 = arith.constant 0 : i32
    %c0_i32_0 = arith.constant 0 : i32
    %c0_i32_1 = arith.constant 0 : i32
    return %c0_i32, %c0_i32_0 : i32, i32
  }
  func.func @transform_4(%arg0: i32) -> (i32, i32) {
    %c0_i32 = arith.constant 0 : i32
    %c0_i32_0 = arith.constant 0 : i32
    %c0_i32_1 = arith.constant 0 : i32
    return %c0_i32, %c0_i32_0 : i32, i32
  }
  func.func @transform_5(%arg0: i32) -> (i32, i32) {
    %c0_i32 = arith.constant 0 : i32
    %c0_i32_0 = arith.constant 0 : i32
    %c0_i32_1 = arith.constant 0 : i32
    return %c0_i32, %c0_i32_0 : i32, i32
  }
  func.func @transform_6(%arg0: i32) -> (i32, i32) {
    %c0_i32 = arith.constant 0 : i32
    %c0_i32_0 = arith.constant 0 : i32
    %c0_i32_1 = arith.constant 0 : i32
    return %c0_i32, %c0_i32_0 : i32, i32
  }
  func.func @transform_7(%arg0: i32) -> (i32, i32) {
    %c0_i32 = arith.constant 0 : i32
    %c0_i32_0 = arith.constant 0 : i32
    %c0_i32_1 = arith.constant 0 : i32
    return %c0_i32, %c0_i32_0 : i32, i32
  }
}

</mosaic_0001>

<bundles_post_ra>
// kernel: cnn_forward.2
= control target key start
LH: loop header
LB: loop body
LE: loop exit
PB: predicated region body
PF: predicated region fallthrough
CT: control target
= control target key end

     0   :  { %s1231_s12 = smov 0   ;;  %s1233_s13 = smov 0   ;;  %s1552_s0 = inlined_call_operand.vmem [shape: bf16[4,112,144], index: 0, kind: input, shape index: {}]   ;;  %s1553_s1 = inlined_call_operand.vmem [shape: bf16[144,64], index: 1, kind: input, shape index: {}]   ;;  %s1554_s2 = inlined_call_operand.vmem [shape: f32[1,64], index: 2, kind: input, shape index: {}]   ;;  %s1555_s3 = inlined_call_operand.vmem [shape: bf16[112,64], index: 3, kind: output, shape index: {}]  }
   0x1   :  { %s1235_s14 = smov 0  }
   0x2 LB: > { %s1000_s15 = sadd.s32 4294967295, %s1208_s14   ;;  %s1248_s16 = sadd.s32 1, %s1208_s14   ;;  %s1208_s14 = sphi %s1235_s14, %s1558_s14   ;;  %s1204_s13 = sphi %s1233_s13, %s1557_s13   ;;  %s1200_s12 = sphi %s1231_s12, %s1556_s12  }
   0x3   : > { %s17_s17 = ssub.s32 %s1208_s14, %s1248_s16  ;;  %s20_s18 = sadd.s32 1, %s1204_s13 }
   0x4   : > { %p18_p0 = scmp.eq.s32.totalorder %s17_s17, 0  ;;  %p27_p1 = scmp.ne.s32.totalorder %s1204_s13, %s1200_s12 }
   0x5   : > { %p28_p2 = scmp.eq.s32.totalorder %s1208_s14, 0  ;;  %p1003_p4 = scmp.ge.s32.totalorder %s1208_s14, 2 }
   0x6   : > { %s1257_s19 = scalar_select %p18_p0, %s1204_s13, %s20_s18  }
   0x7   : > { %p29_p3 = por %p28_p2, %p27_p1  ;;  %127 = sbr.rel (%p1003_p4) target bundleno = 31 (0x1f), region = 24 }
   0xc   : > { %130 = sbr.rel (!%p29_p3) target bundleno = 31 (0x1f), region = 28  ;;  %s132_s20 = sand.u32 (%p29_p3), 1, %s1204_s13  }
   0xd   : > { %s1105_s21 = smul.u32 (%p29_p3), 56, %s1208_s14 }
   0xe   : > { %s1106_s22 = smul.u32 (%p29_p3), 224, %s132_s20 }
   0xf   : > { %s1265_s25 = scalar_lea.vmem (%p29_p3), %s1552_s0, %s1105_s21 }
  0x10   : > { %v221_v0 = vld [vmem:[%s1265_s25] sm:$0xff] (%p29_p3)  ;;  %v223_v1 = vld [vmem:[%s1265_s25 + $0x8] sm:$0xff] (%p29_p3)  ;;  %v225_v2 = vld [vmem:[%s1265_s25 + $0x10] sm:$0xff] (%p29_p3)  ;;  %s1270_s26 = scalar_lea.vmem (%p29_p3), [#allocation2], %s1106_s22 }
  0x11   : > { %222 = vst [vmem:[%s1270_s26] sm:$0xff] %v221_v0  ;;  %224 = vst [vmem:[%s1270_s26 + $0x8] sm:$0xff] %v223_v1  ;;  %v227_v3 = vld [vmem:[%s1265_s25 + $0x18] sm:$0xff]  ;;  %v229_v4 = vld [vmem:[%s1265_s25 + $0x20] sm:$0xff] }
  0x12   : > { %226 = vst [vmem:[%s1270_s26 + $0x10] sm:$0xff] %v225_v2  ;;  %v231_v5 = vld [vmem:[%s1265_s25 + $0x28] sm:$0xff]  ;;  %228 = vst [vmem:[%s1270_s26 + $0x18] sm:$0xff] %v227_v3  ;;  %v233_v6 = vld [vmem:[%s1265_s25 + $0x30] sm:$0xff] }
  0x13   : > { %230 = vst [vmem:[%s1270_s26 + $0x20] sm:$0xff] %v229_v4  ;;  %232 = vst [vmem:[%s1270_s26 + $0x28] sm:$0xff] %v231_v5  ;;  %v235_v7 = vld [vmem:[%s1265_s25 + $0x70] sm:$0xff]  ;;  %v237_v8 = vld [vmem:[%s1265_s25 + $0x78] sm:$0xff] }
  0x14   : > { %234 = vst [vmem:[%s1270_s26 + $0x30] sm:$0xff] %v233_v6  ;;  %236 = vst [vmem:[%s1270_s26 + $0x38] sm:$0xff] %v235_v7  ;;  %v239_v9 = vld [vmem:[%s1265_s25 + $0x80] sm:$0xff]  ;;  %v241_v10 = vld [vmem:[%s1265_s25 + $0x88] sm:$0xff] }
  0x15   : > { %238 = vst [vmem:[%s1270_s26 + $0x40] sm:$0xff] %v237_v8  ;;  %v243_v11 = vld [vmem:[%s1265_s25 + $0x90] sm:$0xff]  ;;  %240 = vst [vmem:[%s1270_s26 + $0x48] sm:$0xff] %v239_v9  ;;  %v245_v12 = vld [vmem:[%s1265_s25 + $0x98] sm:$0xff] }
  0x16   : > { %242 = vst [vmem:[%s1270_s26 + $0x50] sm:$0xff] %v241_v10  ;;  %244 = vst [vmem:[%s1270_s26 + $0x58] sm:$0xff] %v243_v11  ;;  %v247_v13 = vld [vmem:[%s1265_s25 + $0xa0] sm:$0xff]  ;;  %v251_v15 = vld [vmem:[%s1265_s25 + $0xe8] sm:$0xff] }
  0x17   : > { %v249_v14 = vld [vmem:[%s1265_s25 + $0xe0] sm:$0xff]  ;;  %246 = vst [vmem:[%s1270_s26 + $0x60] sm:$0xff] %v245_v12  ;;  %248 = vst [vmem:[%s1270_s26 + $0x68] sm:$0xff] %v247_v13  ;;  %v253_v16 = vld [vmem:[%s1265_s25 + $0xf0] sm:$0xff] }
  0x18   : > { %250 = vst [vmem:[%s1270_s26 + $0x70] sm:$0xff] %v249_v14  ;;  %v255_v17 = vld [vmem:[%s1265_s25 + $0xf8] sm:$0xff]  ;;  %252 = vst [vmem:[%s1270_s26 + $0x78] sm:$0xff] %v251_v15  ;;  %v257_v18 = vld [vmem:[%s1265_s25 + $0x100] sm:$0xff] }
  0x19   : > { %254 = vst [vmem:[%s1270_s26 + $0x80] sm:$0xff] %v253_v16  ;;  %256 = vst [vmem:[%s1270_s26 + $0x88] sm:$0xff] %v255_v17  ;;  %v259_v19 = vld [vmem:[%s1265_s25 + $0x108] sm:$0xff]  ;;  %v261_v20 = vld [vmem:[%s1265_s25 + $0x110] sm:$0xff] }
  0x1a   : > { %258 = vst [vmem:[%s1270_s26 + $0x90] sm:$0xff] %v257_v18  ;;  %260 = vst [vmem:[%s1270_s26 + $0x98] sm:$0xff] %v259_v19  ;;  %v263_v21 = vld [vmem:[%s1265_s25 + $0x150] sm:$0xff]  ;;  %v265_v22 = vld [vmem:[%s1265_s25 + $0x158] sm:$0xff] }
  0x1b   : > { %262 = vst [vmem:[%s1270_s26 + $0xa0] sm:$0xff] %v261_v20  ;;  %v267_v23 = vld [vmem:[%s1265_s25 + $0x160] sm:$0xff]  ;;  %264 = vst [vmem:[%s1270_s26 + $0xa8] sm:$0xff] %v263_v21  ;;  %v269_v24 = vld [vmem:[%s1265_s25 + $0x168] sm:$0xff] }
  0x1c   : > { %266 = vst [vmem:[%s1270_s26 + $0xb0] sm:$0xff] %v265_v22  ;;  %268 = vst [vmem:[%s1270_s26 + $0xb8] sm:$0xff] %v267_v23  ;;  %v271_v25 = vld [vmem:[%s1265_s25 + $0x170] sm:$0xff]  ;;  %v273_v26 = vld [vmem:[%s1265_s25 + $0x178] sm:$0xff] }
  0x1d   : > { %270 = vst [vmem:[%s1270_s26 + $0xc0] sm:$0xff] %v269_v24  ;;  %272 = vst [vmem:[%s1270_s26 + $0xc8] sm:$0xff] %v271_v25  ;;  %v275_v27 = vld [vmem:[%s1265_s25 + $0x180] sm:$0xff] }
  0x1e   : > { %274 = vst [vmem:[%s1270_s26 + $0xd0] sm:$0xff] %v273_v26  ;;  %276 = vst [vmem:[%s1270_s26 + $0xd8] sm:$0xff] %v275_v27 }
  0x1f PF: > { %p1006_p5 = scmp.ge.s32.totalorder %s1208_s14, 1  ;;  %p281_p6 = scmp.lt.s32.totalorder %s1208_s14, 3 }
  0x21   : > { %p282_p7 = pnand %p1006_p5, %p281_p6 }
  0x22   : > { %s288_s29 = sand.u32 (!%p282_p7), 1, %s1200_s12   ;;  %s312_s26 = smul.u32 (!%p282_p7), 7, %s1000_s15 }
  0x23   : > { %285 = sbr.rel (%p282_p7) target bundleno = 341 (0x155), region = 66 }
  0x24   : > { %s1107_s5 = smul.u32 (!%p282_p7), 224, %s288_s29  ;;  %p313_p8 = scmp.lt.s32.totalorder (!%p282_p7), %s312_s26, 13 }
  0x26   : > { %s1354_s10 = scalar_lea.vmem (!%p282_p7), [#allocation2], %s1107_s5 }
  0x28   : > { %v1133_v28 = vld [vmem:[%s1553_s1 + $0x38] sm:$0xff]   ;;  %v1210_v29 = vmov 0   ;;  %v1336_v30 = vld [vmem:[%s1553_s1 + $0x30] sm:$0xff]   ;;  %v1345_v31 = vld [vmem:[%s1553_s1 + $0x28] sm:$0xff]   ;;  %vm431_vm0 = vcmask 130048   ;;  %s1560_s26 = smov (!%p313_p8, %s312_s26), 13 }
  0x29   : > { %444 = vmatprep.subr.bf16.mxu0 %v1210_v29  ;;  %561 = vmatprep.subr.bf16.mxu1 %v1210_v29  ;;  %v1352_v32 = vld [vmem:[%s1553_s1 + $0x20] sm:$0xff]   ;;  %v1369_v35 = vld [vmem:[%s1553_s1 + $0x18] sm:$0xff]   ;;  %v1378_v36 = vld [vmem:[%s1553_s1 + $0x10] sm:$0xff]   ;;  %s1007_s14 = sshll.u32 %s1560_s26, 2  ;;  %vm930_vm1 = vcmask 519168  }
  0x2a   : > { %445 = vmatpush1.bf16.msra.mxu0 %v1133_v28  ;;  %562 = vmatpush1.bf16.msra.mxu1 %v1133_v28  ;;  %v1144_v33 = vld [vmem:[%s1354_s10 + $0x4] ss:$8 sps:$4 sm:$0xff]   ;;  %v1142_v40 = vld [vmem:[%s1354_s10] ss:$8 sps:$4 sm:$0xff]   ;;  %v1148_v42 = vld [vmem:[%s1354_s10 + $0x14] ss:$8 sps:$4 sm:$0xff]   ;;  %s1512_s30 = scalar_lea.vmem %s1555_s3, %s1007_s14 }
  0x2b   : > { %446 = vmatprep.subr.bf16.mxu0 %v1210_v29  ;;  %563 = vmatprep.subr.bf16.mxu1 %v1210_v29  ;;  %v1147_v34 = vld [vmem:[%s1354_s10 + $0x3c] ss:$8 sps:$4 sm:$0xff]   ;;  %v1387_v37 = vld [vmem:[%s1553_s1 + $0x8] sm:$0xff]   ;;  %v1145_v41 = vld [vmem:[%s1354_s10 + $0x38] ss:$8 sps:$4 sm:$0xff]  }
  0x2c   : > { %1025 = vmatprep.mubr.msk.bf16.mxu0 %vm431_vm0, %v1144_v33  ;;  %1044 = vmatprep.mubr.msk.bf16.mxu1 %vm431_vm0, %v1147_v34  ;;  %v1396_v38 = vld [vmem:[%s1553_s1] sm:$0xff]   ;;  %v1150_v43 = vld [vmem:[%s1354_s10 + $0x4c] ss:$8 sps:$4 sm:$0xff]   ;;  %v1152_v44 = vld [vmem:[%s1354_s10 + $0x10] ss:$8 sps:$4 sm:$0xff]  }
  0x2d   : > { %v1405_v39 = vld [vmem:[%s1553_s1 + $0x40] sm:$0xff]   ;;  %v1153_v45 = vld [vmem:[%s1354_s10 + $0x48] ss:$8 sps:$4 sm:$0xff]   ;;  %v1166_v56 = vld [vmem:[%s1354_s10 + $0x74] ss:$8 sps:$4 sm:$0xff]  }
  0x2e   : > { %447 = vmatpush1.bf16.msra.mxu0 %v1336_v30  ;;  %564 = vmatpush1.bf16.msra.mxu1 %v1336_v30  ;;  %v1154_v46 = vld [vmem:[%s1354_s10 + $0x24] ss:$8 sps:$4 sm:$0xff]   ;;  %v1158_v48 = vld [vmem:[%s1354_s10 + $0x20] ss:$8 sps:$4 sm:$0xff]   ;;  %v325_v50 = vld [vmem:[%s1354_s10 + $0x30] sm:$0xff] }
  0x2f   : > { %448 = vmatprep.subr.bf16.mxu0 %v1210_v29  ;;  %565 = vmatprep.subr.bf16.mxu1 %v1210_v29  ;;  %v1156_v47 = vld [vmem:[%s1354_s10 + $0x5c] ss:$8 sps:$4 sm:$0xff]   ;;  %v1159_v49 = vld [vmem:[%s1354_s10 + $0x58] ss:$8 sps:$4 sm:$0xff]   ;;  %v1035_v51 = vld [vmem:[%s1354_s10 + $0x68] sm:$0xff]  ;;  %v1015_v52 = vcombine.high %v325_v50, %v325_v50  ;;  %v1014_v54 = vcombine.low %v325_v50, %v325_v50 }
  0x30   : > { %v1043_v53 = vcombine.high %v1035_v51, %v1035_v51  ;;  %v1042_v55 = vcombine.low %v1035_v51, %v1035_v51  ;;  %v1169_v57 = vld [vmem:[%s1354_s10 + $0xac] ss:$8 sps:$4 sm:$0xff]   ;;  %v1164_v58 = vld [vmem:[%s1354_s10 + $0x70] ss:$8 sps:$4 sm:$0xff]   ;;  %v1172_v61 = vld [vmem:[%s1354_s10 + $0xbc] ss:$8 sps:$4 sm:$0xff]  }
  0x31   : > { %v1167_v59 = vld [vmem:[%s1354_s10 + $0xa8] ss:$8 sps:$4 sm:$0xff]   ;;  %v1170_v60 = vld [vmem:[%s1354_s10 + $0x84] ss:$8 sps:$4 sm:$0xff]   ;;  %v1175_v63 = vld [vmem:[%s1354_s10 + $0xb8] ss:$8 sps:$4 sm:$0xff]  }
  0x32   : > { %449 = vmatpush1.bf16.msra.mxu0 %v1345_v31  ;;  %566 = vmatpush1.bf16.msra.mxu1 %v1345_v31  ;;  %v1174_v62 = vld [vmem:[%s1354_s10 + $0x80] ss:$8 sps:$4 sm:$0xff]   ;;  %v1176_v0 = vld [vmem:[%s1354_s10 + $0x94] ss:$8 sps:$4 sm:$0xff]   ;;  %v1180_v4 = vld [vmem:[%s1354_s10 + $0x90] ss:$8 sps:$4 sm:$0xff]  }
  0x33   : > { %450 = vmatprep.subr.bf16.mxu0 %v1210_v29  ;;  %567 = vmatprep.subr.bf16.mxu1 %v1210_v29  ;;  %v1178_v1 = vld [vmem:[%s1354_s10 + $0xcc] ss:$8 sps:$4 sm:$0xff]   ;;  %v1054_v2 = vld [vmem:[%s1354_s10 + $0xa0] sm:$0xff]  ;;  %v1073_v3 = vld [vmem:[%s1354_s10 + $0xd8] sm:$0xff] }
  0x34   : > { %v1181_v5 = vld [vmem:[%s1354_s10 + $0xc8] ss:$8 sps:$4 sm:$0xff]   ;;  %v1062_v6 = vcombine.high %v1054_v2, %v1054_v2  ;;  %v1081_v7 = vcombine.high %v1073_v3, %v1073_v3  ;;  %v1061_v8 = vcombine.low %v1054_v2, %v1054_v2  ;;  %v1080_v9 = vcombine.low %v1073_v3, %v1073_v3 }
  0x36   : > { %451 = vmatpush1.bf16.msra.mxu0 %v1352_v32  ;;  %568 = vmatpush1.bf16.msra.mxu1 %v1352_v32 }
  0x37   : > { %452 = vmatprep.subr.bf16.mxu0 %v1210_v29  ;;  %569 = vmatprep.subr.bf16.mxu1 %v1210_v29 }
  0x3a   : > { %453 = vmatpush1.bf16.msra.mxu0 %v1369_v35  ;;  %570 = vmatpush1.bf16.msra.mxu1 %v1369_v35 }
  0x3b   : > { %454 = vmatprep.subr.bf16.mxu0 %v1210_v29  ;;  %571 = vmatprep.subr.bf16.mxu1 %v1210_v29 }
  0x3e   : > { %455 = vmatpush1.bf16.msra.mxu0 %v1378_v36  ;;  %572 = vmatpush1.bf16.msra.mxu1 %v1378_v36 }
  0x3f   : > { %456 = vmatprep.subr.bf16.mxu0 %v1210_v29  ;;  %573 = vmatprep.subr.bf16.mxu1 %v1210_v29 }
  0x42   : > { %457 = vmatpush1.bf16.msra.mxu0 %v1387_v37  ;;  %574 = vmatpush1.bf16.msra.mxu1 %v1387_v37 }
  0x43   : > { %458 = vmatprep.subr.bf16.mxu0 %v1210_v29  ;;  %575 = vmatprep.subr.bf16.mxu1 %v1210_v29 }
  0x46   : > { %459 = vmatpush1.bf16.msra.mxu0 %v1396_v38  ;;  %576 = vmatpush1.bf16.msra.mxu1 %v1396_v38 }
  0x47   : > { %474 = vmatprep.subr.bf16.mxu0 %v1210_v29  ;;  %591 = vmatprep.subr.bf16.mxu1 %v1210_v29 }
  0x4a   : > { %475 = vmatpush2.bf16.msra.mxu0 %v1405_v39  ;;  %592 = vmatpush2.bf16.msra.mxu1 %v1405_v39 }
  0x4b   : > { %685 = vmatprep.subr.bf16.mxu0 %v1210_v29  ;;  %802 = vmatprep.subr.bf16.mxu1 %v1210_v29 }
  0x4d   : > { %477 = vmatmul.mubr.bf16.vlgmr.msra.gmra.mxu0 %v1142_v40  ;;  %594 = vmatmul.mubr.bf16.vlgmr.msra.gmra.mxu1 %v1145_v41 }
  0x4e   : > { %686 = vmatpush1.bf16.msra.mxu0 %v1133_v28  ;;  %803 = vmatpush1.bf16.msra.mxu1 %v1133_v28 }
  0x4f   : > { %687 = vmatprep.subr.bf16.mxu0 %v1210_v29  ;;  %804 = vmatprep.subr.bf16.mxu1 %v1210_v29 }
  0x50   : > { %1026 = vmatprep.mubr.msk.bf16.mxu0 %vm431_vm0, %v1148_v42  ;;  %1045 = vmatprep.mubr.msk.bf16.mxu1 %vm431_vm0, %v1150_v43 }
  0x52   : > { %688 = vmatpush1.bf16.msra.mxu0 %v1336_v30  ;;  %805 = vmatpush1.bf16.msra.mxu1 %v1336_v30 }
  0x53   : > { %689 = vmatprep.subr.bf16.mxu0 %v1210_v29  ;;  %806 = vmatprep.subr.bf16.mxu1 %v1210_v29 }
  0x55   : > { %485 = vmatmul.mubr.bf16.gmra.mxu0 %v1152_v44  ;;  %602 = vmatmul.mubr.bf16.gmra.mxu1 %v1153_v45 }
  0x56   : > { %690 = vmatpush1.bf16.msra.mxu0 %v1345_v31  ;;  %807 = vmatpush1.bf16.msra.mxu1 %v1345_v31 }
  0x57   : > { %691 = vmatprep.subr.bf16.mxu0 %v1210_v29  ;;  %808 = vmatprep.subr.bf16.mxu1 %v1210_v29 }
  0x58   : > { %1027 = vmatprep.mubr.msk.bf16.mxu0 %vm431_vm0, %v1154_v46  ;;  %1046 = vmatprep.mubr.msk.bf16.mxu1 %vm431_vm0, %v1156_v47  ;;  %v1506_v46 = vld [vmem:[%s1554_s2] ss:$0 sm:$0xff] }
  0x5a   : > { %692 = vmatpush1.bf16.msra.mxu0 %v1352_v32  ;;  %809 = vmatpush1.bf16.msra.mxu1 %v1352_v32 }
  0x5b   : > { %693 = vmatprep.subr.bf16.mxu0 %v1210_v29  ;;  %810 = vmatprep.subr.bf16.mxu1 %v1210_v29 }
  0x5d   : > { %493 = vmatmul.mubr.bf16.gmra.mxu0 %v1158_v48  ;;  %610 = vmatmul.mubr.bf16.gmra.mxu1 %v1159_v49 }
  0x5e   : > { %694 = vmatpush1.bf16.msra.mxu0 %v1369_v35  ;;  %811 = vmatpush1.bf16.msra.mxu1 %v1369_v35 }
  0x5f   : > { %695 = vmatprep.subr.bf16.mxu0 %v1210_v29  ;;  %812 = vmatprep.subr.bf16.mxu1 %v1210_v29 }
  0x60   : > { %1028 = vmatprep.mubr.msk.bf16.mxu0 %vm431_vm0, %v1015_v52  ;;  %1047 = vmatprep.mubr.msk.bf16.mxu1 %vm431_vm0, %v1043_v53 }
  0x62   : > { %696 = vmatpush1.bf16.msra.mxu0 %v1378_v36  ;;  %813 = vmatpush1.bf16.msra.mxu1 %v1378_v36 }
  0x63   : > { %697 = vmatprep.subr.bf16.mxu0 %v1210_v29  ;;  %814 = vmatprep.subr.bf16.mxu1 %v1210_v29 }
  0x65   : > { %501 = vmatmul.mubr.bf16.gmra.mxu0 %v1014_v54  ;;  %618 = vmatmul.mubr.bf16.gmra.mxu1 %v1042_v55 }
  0x66   : > { %698 = vmatpush1.bf16.msra.mxu0 %v1387_v37  ;;  %815 = vmatpush1.bf16.msra.mxu1 %v1387_v37 }
  0x67   : > { %699 = vmatprep.subr.bf16.mxu0 %v1210_v29  ;;  %816 = vmatprep.subr.bf16.mxu1 %v1210_v29 }
  0x68   : > { %1063 = vmatprep.mubr.msk.bf16.mxu0 %vm431_vm0, %v1166_v56  ;;  %1082 = vmatprep.mubr.msk.bf16.mxu1 %vm431_vm0, %v1169_v57 }
  0x6a   : > { %700 = vmatpush1.bf16.msra.mxu0 %v1396_v38  ;;  %817 = vmatpush1.bf16.msra.mxu1 %v1396_v38 }
  0x6b   : > { %715 = vmatprep.subr.bf16.mxu0 %v1210_v29  ;;  %832 = vmatprep.subr.bf16.mxu1 %v1210_v29 }
  0x6e   : > { %716 = vmatpush2.bf16.msra.mxu0 %v1405_v39  ;;  %833 = vmatpush2.bf16.msra.mxu1 %v1405_v39 }
  0x71   : > { %718 = vmatmul.mubr.bf16.vlgmr.msra.gmra.mxu0 %v1164_v58  ;;  %835 = vmatmul.mubr.bf16.vlgmr.msra.gmra.mxu1 %v1167_v59 }
  0x72   : > { %1064 = vmatprep.mubr.msk.bf16.mxu0 %vm431_vm0, %v1170_v60  ;;  %1083 = vmatprep.mubr.msk.bf16.mxu1 %vm431_vm0, %v1172_v61 }
  0x79   : > { %726 = vmatmul.mubr.bf16.gmra.mxu0 %v1174_v62  ;;  %843 = vmatmul.mubr.bf16.gmra.mxu1 %v1175_v63 }
  0x7a   : > { %1065 = vmatprep.mubr.msk.bf16.mxu0 %vm431_vm0, %v1176_v0  ;;  %1084 = vmatprep.mubr.msk.bf16.mxu1 %vm431_vm0, %v1178_v1 }
  0x81   : > { %734 = vmatmul.mubr.bf16.gmra.mxu0 %v1180_v4  ;;  %851 = vmatmul.mubr.bf16.gmra.mxu1 %v1181_v5 }
  0x82   : > { %1066 = vmatprep.mubr.msk.bf16.mxu0 %vm431_vm0, %v1062_v6  ;;  %1085 = vmatprep.mubr.msk.bf16.mxu1 %vm431_vm0, %v1081_v7 }
  0x89   : > { %742 = vmatmul.mubr.bf16.gmra.mxu0 %v1061_v8  ;;  %859 = vmatmul.mubr.bf16.gmra.mxu1 %v1080_v9 }
 0x10d   : > { %v478_v10 = vpop.f32.mrf.mxu0  ;;  %v595_v11 = vpop.f32.mrf.mxu1 }
 0x10e   : > { %v625_v44 = vmax.f32 %v478_v10, %v595_v11 }
 0x10f   : > { %v480_v12 = vpop.f32.mrf.mxu0  ;;  %v597_v13 = vpop.f32.mrf.mxu1 }
 0x111   : > { %v481_v14 = vpop.f32.mrf.mxu0  ;;  %v598_v15 = vpop.f32.mrf.mxu1 }
 0x112   : > { %v626_v52 = vmax.f32 %v481_v14, %v598_v15 }
 0x113   : > { %v483_v16 = vpop.f32.mrf.mxu0  ;;  %v600_v17 = vpop.f32.mrf.mxu1 }
 0x115   : > { %v486_v18 = vpop.f32.mrf.mxu0  ;;  %v603_v19 = vpop.f32.mrf.mxu1 }
 0x116   : > { %v627_v61 = vmax.f32 %v486_v18, %v603_v19 }
 0x117   : > { %v488_v20 = vpop.f32.mrf.mxu0  ;;  %v605_v21 = vpop.f32.mrf.mxu1 }
 0x119   : > { %v1485_v22 = vpop.f32.mrf.mxu0  ;;  %v1487_v23 = vpop.f32.mrf.mxu1 }
 0x11a   : > { %v628_v7 = vmax.f32 %v1485_v22, %v1487_v23 }
 0x11b   : > { %v491_v24 = vpop.f32.mrf.mxu0  ;;  %v608_v25 = vpop.f32.mrf.mxu1 }
 0x11d   : > { %v1489_v26 = vpop.f32.mrf.mxu0  ;;  %v1491_v27 = vpop.f32.mrf.mxu1 }
 0x11e   : > { %v629_v17 = vmax.f32 %v1489_v26, %v1491_v27 }
 0x11f   : > { %v496_v28 = vpop.f32.mrf.mxu0  ;;  %v613_v29 = vpop.f32.mrf.mxu1 }
 0x121   : > { %v1493_v30 = vpop.f32.mrf.mxu0  ;;  %v1495_v31 = vpop.f32.mrf.mxu1 }
 0x122   : > { %v630_v29 = vmax.f32 %v1493_v30, %v1495_v31 }
 0x123   : > { %v499_v32 = vpop.f32.mrf.mxu0  ;;  %v616_v33 = vpop.f32.mrf.mxu1 }
 0x125   : > { %v1497_v34 = vpop.f32.mrf.mxu0  ;;  %v1499_v35 = vpop.f32.mrf.mxu1 }
 0x127   : > { %v504_v36 = vpop.f32.mrf.mxu0  ;;  %v621_v37 = vpop.f32.mrf.mxu1 }
 0x129   : > { %v505_v38 = vpop.f32.mrf.mxu0  ;;  %v622_v39 = vpop.f32.mrf.mxu1 }
 0x12b   : > { %v506_v40 = vpop.f32.mrf.mxu0  ;;  %v623_v41 = vpop.f32.mrf.mxu1 }
 0x12c   : > { %v631_v41 = vmax.f32 %v1497_v34, %v1499_v35 }
 0x131   : > { %v719_v42 = vpop.f32.mrf.mxu0  ;;  %v836_v43 = vpop.f32.mrf.mxu1 }
 0x132   : > { %v866_v45 = vmax.f32 %v719_v42, %v836_v43 }
 0x133   : > { %v721_v47 = vpop.f32.mrf.mxu0  ;;  %v838_v48 = vpop.f32.mrf.mxu1 }
 0x134   : > { %v873_v49 = vmax.f32 %v625_v44, %v866_v45 }
 0x135   : > { %v722_v50 = vpop.f32.mrf.mxu0  ;;  %v839_v51 = vpop.f32.mrf.mxu1 }
 0x136   : > { %v887_v53 = vadd.f32 %v1506_v46, %v873_v49  ;;  %v867_v54 = vmax.f32 %v722_v50, %v839_v51 }
 0x137   : > { %v724_v55 = vpop.f32.mrf.mxu0  ;;  %v841_v56 = vpop.f32.mrf.mxu1 }
 0x138   : > { %v894_v57 = vmax.f32 %v887_v53, 0.0  ;;  %v874_v58 = vmax.f32 %v626_v52, %v867_v54 }
 0x139   : > { %v727_v59 = vpop.f32.mrf.mxu0  ;;  %v844_v60 = vpop.f32.mrf.mxu1 }
 0x13a   : > { %v1098_v62 = vpack.c.bf16 %v894_v57, %v894_v57  ;;  %v888_v63 = vadd.f32 %v1506_v46, %v874_v58  ;;  %v868_v0 = vmax.f32 %v727_v59, %v844_v60 }
 0x13b   : > { %v729_v1 = vpop.f32.mrf.mxu0  ;;  %v846_v2 = vpop.f32.mrf.mxu1 }
 0x13c   : > { %931 = vst.msk [vmem:[%s1512_s30] sm:$0xf] %vm930_vm1, %v1098_v62  ;;  %v895_v3 = vmax.f32 %v888_v63, 0.0  ;;  %v875_v4 = vmax.f32 %v627_v61, %v868_v0 }
 0x13d   : > { %v730_v5 = vpop.f32.mrf.mxu0  ;;  %v847_v6 = vpop.f32.mrf.mxu1 }
 0x13e   : > { %v1099_v8 = vpack.c.bf16 %v895_v3, %v895_v3  ;;  %v889_v9 = vadd.f32 %v1506_v46, %v875_v4  ;;  %v869_v10 = vmax.f32 %v730_v5, %v847_v6 }
 0x13f   : > { %v732_v11 = vpop.f32.mrf.mxu0  ;;  %v849_v12 = vpop.f32.mrf.mxu1 }
 0x140   : > { %932 = vst.msk [vmem:[%s1512_s30 + $0x4] sm:$0xf] %vm930_vm1, %v1099_v8  ;;  %v896_v13 = vmax.f32 %v889_v9, 0.0  ;;  %v876_v14 = vmax.f32 %v628_v7, %v869_v10 }
 0x141   : > { %v735_v15 = vpop.f32.mrf.mxu0  ;;  %v852_v16 = vpop.f32.mrf.mxu1 }
 0x142   : > { %v1100_v18 = vpack.c.bf16 %v896_v13, %v896_v13  ;;  %v890_v19 = vadd.f32 %v1506_v46, %v876_v14  ;;  %v870_v20 = vmax.f32 %v735_v15, %v852_v16 }
 0x143   : > { %v737_v21 = vpop.f32.mrf.mxu0  ;;  %v854_v22 = vpop.f32.mrf.mxu1 }
 0x144   : > { %933 = vst.msk [vmem:[%s1512_s30 + $0x8] sm:$0xf] %vm930_vm1, %v1100_v18  ;;  %v897_v23 = vmax.f32 %v890_v19, 0.0  ;;  %v877_v24 = vmax.f32 %v629_v17, %v870_v20 }
 0x145   : > { %v738_v25 = vpop.f32.mrf.mxu0  ;;  %v855_v28 = vpop.f32.mrf.mxu1 }
 0x146   : > { %v1101_v32 = vpack.c.bf16 %v897_v23, %v897_v23  ;;  %v891_v26 = vadd.f32 %v1506_v46, %v877_v24  ;;  %v871_v27 = vmax.f32 %v738_v25, %v855_v28 }
 0x147   : > { %v740_v33 = vpop.f32.mrf.mxu0  ;;  %v857_v36 = vpop.f32.mrf.mxu1 }
 0x148   : > { %934 = vst.msk [vmem:[%s1512_s30 + $0xc] sm:$0xf] %vm930_vm1, %v1101_v32  ;;  %v898_v37 = vmax.f32 %v891_v26, 0.0  ;;  %v878_v38 = vmax.f32 %v630_v29, %v871_v27 }
 0x149   : > { %v743_v39 = vpop.f32.mrf.mxu0  ;;  %v860_v40 = vpop.f32.mrf.mxu1 }
 0x14a   : > { %v1102_v42 = vpack.c.bf16 %v898_v37, %v898_v37  ;;  %v892_v30 = vadd.f32 %v1506_v46, %v878_v38  ;;  %v872_v31 = vmax.f32 %v743_v39, %v860_v40 }
 0x14b   : > { %v745_v43 = vpop.f32.mrf.mxu0  ;;  %v862_v44 = vpop.f32.mrf.mxu1 }
 0x14c   : > { %935 = vst.msk [vmem:[%s1512_s30 + $0x10] sm:$0xf] %vm930_vm1, %v1102_v42  ;;  %v899_v45 = vmax.f32 %v892_v30, 0.0  ;;  %v879_v47 = vmax.f32 %v631_v41, %v872_v31 }
 0x14d   : > { %v746_v48 = vpop.f32.mrf.mxu0  ;;  %v863_v49 = vpop.f32.mrf.mxu1 }
 0x14e   : > { %v1103_v50 = vpack.c.bf16 %v899_v45, %v899_v45  ;;  %v893_v51 = vadd.f32 %v1506_v46, %v879_v47 }
 0x14f   : > { %v747_v52 = vpop.f32.mrf.mxu0  ;;  %v864_v53 = vpop.f32.mrf.mxu1 }
 0x150   : > { %936 = vst.msk [vmem:[%s1512_s30 + $0x14] sm:$0xf] %vm930_vm1, %v1103_v50  ;;  %v900_v34 = vmax.f32 %v893_v51, 0.0 }
 0x152   : > { %v1104_v35 = vpack.c.bf16 %v900_v34, %v900_v34 }
 0x154   : > { %937 = vst.msk [vmem:[%s1512_s30 + $0x18] sm:$0xf] %vm930_vm1, %v1104_v35 }
 0x155 PF: > { %p10_p9 = scmp.ge.s32.totalorder %s1248_s16, 4   ;;  %s1556_s12 = smov %s1204_s13 }
 0x156   : > { %s1557_s13 = smov %s1257_s19  ;;  %s1558_s14 = smov %s1248_s16 }
 0x157   :  { %12 = sbr.rel (!%p10_p9) target bundleno = 2 (0x2), region = 108 }

// kernel: cnn_forward.3
= control target key start
LH: loop header
LB: loop body
LE: loop exit
PB: predicated region body
PF: predicated region fallthrough
CT: control target
= control target key end

     0   :  { %v8684_v34 = vmov 0.0   ;;  %vm8685_vm0 = vmmov 0   ;;  %vm460_vm1 = vcmask 523264   ;;  %s11781_s0 = inlined_call_operand.vmem [shape: bf16[4,72,576], index: 0, kind: input, shape index: {}]   ;;  %s11782_s1 = inlined_call_operand.vmem [shape: bf16[576,128], index: 1, kind: input, shape index: {}]   ;;  %s11783_s2 = inlined_call_operand.vmem [shape: f32[1,128], index: 2, kind: input, shape index: {}]   ;;  %s11784_s3 = inlined_call_operand.vmem [shape: bf16[1152,1024], index: 3, kind: input, shape index: {}]   ;;  %s11785_s4 = inlined_call_operand.vmem [shape: f32[1,1024], index: 4, kind: input, shape index: {}]   ;;  %s11786_s5 = inlined_call_operand.vmem [shape: bf16[1024,10], index: 5, kind: input, shape index: {}]   ;;  %s11787_s6 = inlined_call_operand.vmem [shape: f32[1,10], index: 6, kind: input, shape index: {}]   ;;  %s11788_s7 = inlined_call_operand.hbm [shape: f32[2,10], index: 7, kind: output, shape index: {}]  }
   0x1   :  { %v8731_v0 = vld [vmem:[%s11782_s1 + $0x78] sm:$0xff]   ;;  %v8754_v4 = vld [vmem:[%s11782_s1 + $0x70] sm:$0xff]   ;;  %v8778_v8 = vld [vmem:[%s11782_s1 + $0x68] sm:$0xff]  }
   0x2   :  { %v8736_v1 = vld [vmem:[%s11782_s1 + $0xf8] sm:$0xff]   ;;  %7789 = vmatprep.subr.bf16.mxu0 %v8731_v0  ;;  %v8760_v5 = vld [vmem:[%s11782_s1 + $0xf0] sm:$0xff]   ;;  %v8784_v9 = vld [vmem:[%s11782_s1 + $0xe8] sm:$0xff]  }
   0x3   :  { %v8742_v2 = vld [vmem:[%s11782_s1 + $0x38] sm:$0xff]   ;;  %7835 = vmatprep.subr.bf16.mxu1 %v8736_v1  ;;  %v8766_v6 = vld [vmem:[%s11782_s1 + $0x30] sm:$0xff]   ;;  %v8790_v10 = vld [vmem:[%s11782_s1 + $0x28] sm:$0xff]  }
   0x4   :  { %v8748_v3 = vld [vmem:[%s11782_s1 + $0xb8] sm:$0xff]   ;;  %7790 = vmatpush3.bf16.msra.mxu0 %v8742_v2  ;;  %v8772_v7 = vld [vmem:[%s11782_s1 + $0xb0] sm:$0xff]   ;;  %v8796_v11 = vld [vmem:[%s11782_s1 + $0xa8] sm:$0xff]  }
   0x5   :  { %7836 = vmatpush3.bf16.msra.mxu1 %v8748_v3  ;;  %7791 = vmatprep.subr.bf16.mxu0 %v8754_v4  ;;  %v8802_v12 = vld [vmem:[%s11782_s1 + $0x60] sm:$0xff]   ;;  %v8826_v16 = vld [vmem:[%s11782_s1 + $0x58] sm:$0xff]   ;;  %v8850_v20 = vld [vmem:[%s11782_s1 + $0x50] sm:$0xff]  }
   0x6   :  { %7837 = vmatprep.subr.bf16.mxu1 %v8760_v5  ;;  %v8808_v13 = vld [vmem:[%s11782_s1 + $0xe0] sm:$0xff]   ;;  %v8832_v17 = vld [vmem:[%s11782_s1 + $0xd8] sm:$0xff]   ;;  %v8856_v21 = vld [vmem:[%s11782_s1 + $0xd0] sm:$0xff]  }
   0x7   :  { %v8814_v14 = vld [vmem:[%s11782_s1 + $0x20] sm:$0xff]   ;;  %v8838_v18 = vld [vmem:[%s11782_s1 + $0x18] sm:$0xff]   ;;  %v8862_v22 = vld [vmem:[%s11782_s1 + $0x10] sm:$0xff]  }
   0x8   :  { %7792 = vmatpush3.bf16.msra.mxu0 %v8766_v6  ;;  %v8820_v15 = vld [vmem:[%s11782_s1 + $0xa0] sm:$0xff]   ;;  %v8844_v19 = vld [vmem:[%s11782_s1 + $0x98] sm:$0xff]   ;;  %v8868_v23 = vld [vmem:[%s11782_s1 + $0x90] sm:$0xff]  }
   0x9   :  { %7838 = vmatpush3.bf16.msra.mxu1 %v8772_v7  ;;  %7793 = vmatprep.subr.bf16.mxu0 %v8778_v8  ;;  %v8874_v24 = vld [vmem:[%s11782_s1 + $0x48] sm:$0xff]   ;;  %v8898_v28 = vld [vmem:[%s11782_s1 + $0x40] sm:$0xff]   ;;  %v8937_v37 = vld [vmem:[%s11782_s1 + $0x118] sm:$0xff]  }
   0xa   :  { %7839 = vmatprep.subr.bf16.mxu1 %v8784_v9  ;;  %v8880_v25 = vld [vmem:[%s11782_s1 + $0xc8] sm:$0xff]   ;;  %v8904_v29 = vld [vmem:[%s11782_s1 + $0xc0] sm:$0xff]   ;;  %v8951_v40 = vld [vmem:[%s11782_s1 + $0x110] sm:$0xff]  }
   0xb   :  { %v8886_v26 = vld [vmem:[%s11782_s1 + $0x8] sm:$0xff]   ;;  %v8910_v30 = vld [vmem:[%s11782_s1] sm:$0xff]   ;;  %v8445_v44 = vld [vmem:[%s11781_s0 + $0x5c] ss:$20 sps:$4 sm:$0xff]  }
   0xc   :  { %7794 = vmatpush3.bf16.msra.mxu0 %v8790_v10  ;;  %v8892_v27 = vld [vmem:[%s11782_s1 + $0x88] sm:$0xff]   ;;  %v8916_v31 = vld [vmem:[%s11782_s1 + $0x80] sm:$0xff]   ;;  %v8450_v49 = vld [vmem:[%s11781_s0 + $0x7c] ss:$20 sps:$4 sm:$0xff]  }
   0xd   :  { %7840 = vmatpush3.bf16.msra.mxu1 %v8796_v11  ;;  %7795 = vmatprep.subr.bf16.mxu0 %v8802_v12  ;;  %v8429_v32 = vld [vmem:[%s11781_s0] ss:$20 sps:$4 sm:$0xff]   ;;  %v8431_v33 = vld [vmem:[%s11781_s0 + $0x4] ss:$20 sps:$4 sm:$0xff]   ;;  %v8432_v35 = vld [vmem:[%s11781_s0 + $0x8] ss:$20 sps:$4 sm:$0xff]  }
   0xe   :  { %7841 = vmatprep.subr.bf16.mxu1 %v8808_v13  ;;  %v8434_v36 = vld [vmem:[%s11781_s0 + $0xc] ss:$20 sps:$4 sm:$0xff]   ;;  %508 = vmatprep.mubr.bf16.mxu0 %v8431_v33  ;;  %v8438_v39 = vld [vmem:[%s11781_s0 + $0x34] ss:$20 sps:$4 sm:$0xff]   ;;  %v8441_v42 = vld [vmem:[%s11781_s0 + $0x30] ss:$20 sps:$4 sm:$0xff]  }
   0xf   :  { %580 = vmatprep.mubr.bf16.mxu1 %v8434_v36  ;;  %v8436_v38 = vld [vmem:[%s11781_s0 + $0x2c] ss:$20 sps:$4 sm:$0xff]   ;;  %v8440_v41 = vld [vmem:[%s11781_s0 + $0x28] ss:$20 sps:$4 sm:$0xff]   ;;  %v8447_v47 = vld [vmem:[%s11781_s0 + $0x50] ss:$20 sps:$4 sm:$0xff]  }
  0x10   :  { %7796 = vmatpush3.bf16.msra.mxu0 %v8814_v14  ;;  %v8443_v43 = vld [vmem:[%s11781_s0 + $0x54] ss:$20 sps:$4 sm:$0xff]   ;;  %v8981_v46 = vld [vmem:[%s11782_s1 + $0x100] sm:$0xff]   ;;  %v8448_v48 = vld [vmem:[%s11781_s0 + $0x58] ss:$20 sps:$4 sm:$0xff]  }
  0x11   :  { %7842 = vmatpush3.bf16.msra.mxu1 %v8820_v15  ;;  %7797 = vmatprep.subr.bf16.mxu0 %v8826_v16  ;;  %v8973_v45 = vld [vmem:[%s11782_s1 + $0x108] sm:$0xff]   ;;  %v8452_v50 = vld [vmem:[%s11781_s0 + $0x84] ss:$20 sps:$4 sm:$0xff]   ;;  %v8455_v54 = vld [vmem:[%s11781_s0 + $0x80] ss:$20 sps:$4 sm:$0xff]  }
  0x12   :  { %7843 = vmatprep.subr.bf16.mxu1 %v8832_v17  ;;  %v52_v51 = vld [vmem:[%s11781_s0 + $0xa0] sm:$0xff]  ;;  %v53_v52 = vld [vmem:[%s11781_s0 + $0xa8] sm:$0xff] }
  0x13   :  { %v8454_v53 = vld [vmem:[%s11781_s0 + $0x78] ss:$20 sps:$4 sm:$0xff]   ;;  %v6931_v55 = vcombine.high %v52_v51, %v52_v51  ;;  %v6933_v56 = vcombine.high %v53_v52, %v53_v52  ;;  %v6930_v57 = vcombine.low %v52_v51, %v52_v51  ;;  %v6932_v58 = vcombine.low %v53_v52, %v53_v52  ;;  %v8464_v60 = vld [vmem:[%s11781_s0 + $0x10] ss:$20 sps:$4 sm:$0xff]   ;;  %v8461_v61 = vld [vmem:[%s11781_s0 + $0xb4] ss:$20 sps:$4 sm:$0xff]  }
  0x14   :  { %7798 = vmatpush3.bf16.msra.mxu0 %v8838_v18  ;;  %v8463_v59 = vld [vmem:[%s11781_s0 + $0xb8] ss:$20 sps:$4 sm:$0xff]   ;;  %v8465_v62 = vld [vmem:[%s11781_s0 + $0xe0] ss:$20 sps:$4 sm:$0xff]   ;;  %v8469_v33 = vld [vmem:[%s11781_s0 + $0x108] ss:$20 sps:$4 sm:$0xff]  }
  0x15   :  { %7844 = vmatpush3.bf16.msra.mxu1 %v8844_v19  ;;  %7799 = vmatprep.subr.bf16.mxu0 %v8850_v20  ;;  %v8467_v63 = vld [vmem:[%s11781_s0 + $0x38] ss:$20 sps:$4 sm:$0xff]  }
  0x16   :  { %7845 = vmatprep.subr.bf16.mxu1 %v8856_v21  ;;  %v8472_v36 = vld [vmem:[%s11781_s0 + $0x104] ss:$20 sps:$4 sm:$0xff]   ;;  %v8487_v51 = vld [vmem:[%s11781_s0 + $0xec] ss:$20 sps:$4 sm:$0xff]  }
  0x18   :  { %7800 = vmatpush3.bf16.msra.mxu0 %v8862_v22 }
  0x19   :  { %7846 = vmatpush3.bf16.msra.mxu1 %v8868_v23  ;;  %7801 = vmatprep.subr.bf16.mxu0 %v8874_v24 }
  0x1a   :  { %7847 = vmatprep.subr.bf16.mxu1 %v8880_v25 }
  0x1c   :  { %7802 = vmatpush3.bf16.msra.mxu0 %v8886_v26 }
  0x1d   :  { %7848 = vmatpush3.bf16.msra.mxu1 %v8892_v27  ;;  %7803 = vmatprep.subr.bf16.mxu0 %v8898_v28 }
  0x1e   :  { %7849 = vmatprep.subr.bf16.mxu1 %v8904_v29 }
  0x20   :  { %7804 = vmatpush3.bf16.msra.mxu0 %v8910_v30 }
  0x21   :  { %7850 = vmatpush3.bf16.msra.mxu1 %v8916_v31  ;;  %8281 = vmatprep.subr.bf16.mxu0 %v8684_v34 }
  0x22   :  { %7890 = vmatprep.subr.bf16.mxu1 %v8731_v0 }
  0x23   :  { %509 = vmatmul.mubr.bf16.vlgmr.msra.gmra.mxu0 %v8429_v32  ;;  %v8468_v32 = vld [vmem:[%s11781_s0 + $0xdc] ss:$20 sps:$4 sm:$0xff]  }
  0x24   :  { %581 = vmatmul.mubr.bf16.vlgmr.msra.gmra.mxu1 %v8432_v35  ;;  %8282 = vmatpush3.bf16.msra.mxu0 %v8937_v37  ;;  %v8471_v35 = vld [vmem:[%s11781_s0 + $0x60] ss:$20 sps:$4 sm:$0xff]  }
  0x25   :  { %516 = vmatprep.mubr.bf16.mxu0 %v8436_v38  ;;  %7891 = vmatpush3.bf16.msra.mxu1 %v8742_v2  ;;  %v8473_v38 = vld [vmem:[%s11781_s0 + $0x130] ss:$20 sps:$4 sm:$0xff]  }
  0x26   :  { %588 = vmatprep.mubr.bf16.mxu1 %v8438_v39  ;;  %8283 = vmatprep.subr.bf16.mxu0 %v8684_v34  ;;  %v7000_v39 = vld [vmem:[%s11781_s0 + $0x154] sm:$0xff] }
  0x27   :  { %7892 = vmatprep.subr.bf16.mxu1 %v8754_v4 }
  0x28   :  { %8284 = vmatpush3.bf16.msra.mxu0 %v8951_v40 }
  0x29   :  { %7893 = vmatpush3.bf16.msra.mxu1 %v8766_v6  ;;  %8285 = vmatprep.subr.bf16.mxu0 %v8684_v34 }
  0x2a   :  { %7894 = vmatprep.subr.bf16.mxu1 %v8778_v8 }
  0x2b   :  { %517 = vmatmul.mubr.bf16.gmra.mxu0 %v8440_v41  ;;  %v8475_v41 = vld [vmem:[%s11781_s0 + $0x88] ss:$20 sps:$4 sm:$0xff]  }
  0x2c   :  { %589 = vmatmul.mubr.bf16.gmra.mxu1 %v8441_v42  ;;  %524 = vmatprep.mubr.bf16.mxu0 %v8443_v43  ;;  %v7024_v42 = vcombine.high %v7000_v39, %v7000_v39  ;;  %v8478_v43 = vld [vmem:[%s11781_s0 + $0xb0] ss:$0 sps:$4 sm:$0xff]  }
  0x2d   :  { %596 = vmatprep.mubr.bf16.mxu1 %v8445_v44  ;;  %7895 = vmatpush3.bf16.msra.mxu1 %v8790_v10  ;;  %v8482_v44 = vld [vmem:[%s11781_s0 + $0xc0] ss:$20 sps:$4 sm:$0xff]  }
  0x2e   :  { %7896 = vmatprep.subr.bf16.mxu1 %v8802_v12  ;;  %8286 = vmatpush3.bf16.msra.mxu0 %v8973_v45 }
  0x2f   :  { %8287 = vmatprep.subr.bf16.mxu0 %v8684_v34 }
  0x31   :  { %7897 = vmatpush3.bf16.msra.mxu1 %v8814_v14 }
  0x32   :  { %7898 = vmatprep.subr.bf16.mxu1 %v8826_v16  ;;  %8288 = vmatpush3.bf16.msra.mxu0 %v8981_v46 }
  0x33   :  { %525 = vmatmul.mubr.bf16.gmra.mxu0 %v8447_v47  ;;  %7936 = vmatprep.subr.bf16.mxu0 %v8736_v1  ;;  %v7023_v47 = vcombine.low %v7000_v39, %v7000_v39 }
  0x34   :  { %597 = vmatmul.mubr.bf16.gmra.mxu1 %v8448_v48  ;;  %532 = vmatprep.mubr.bf16.mxu0 %v8450_v49  ;;  %v8480_v48 = vld [vmem:[%s11781_s0 + $0xbc] ss:$20 sps:$4 sm:$0xff]   ;;  %v8483_v49 = vld [vmem:[%s11781_s0 + $0xc4] ss:$20 sps:$4 sm:$0xff]  }
  0x35   :  { %604 = vmatprep.mubr.bf16.mxu1 %v8452_v50  ;;  %7899 = vmatpush3.bf16.msra.mxu1 %v8838_v18  ;;  %v8484_v50 = vld [vmem:[%s11781_s0 + $0xe8] ss:$20 sps:$4 sm:$0xff]  }
  0x36   :  { %7900 = vmatprep.subr.bf16.mxu1 %v8850_v20 }
  0x39   :  { %7901 = vmatpush3.bf16.msra.mxu1 %v8862_v22 }
  0x3a   :  { %7902 = vmatprep.subr.bf16.mxu1 %v8874_v24 }
  0x3b   :  { %533 = vmatmul.mubr.bf16.gmra.mxu0 %v8454_v53 }
  0x3c   :  { %605 = vmatmul.mubr.bf16.gmra.mxu1 %v8455_v54  ;;  %540 = vmatprep.mubr.bf16.mxu0 %v6931_v55 }
  0x3d   :  { %612 = vmatprep.mubr.bf16.mxu1 %v6933_v56  ;;  %7903 = vmatpush3.bf16.msra.mxu1 %v8886_v26 }
  0x3e   :  { %7904 = vmatprep.subr.bf16.mxu1 %v8898_v28 }
  0x41   :  { %7905 = vmatpush3.bf16.msra.mxu1 %v8910_v30 }
  0x42   :  { %8309 = vmatprep.subr.bf16.mxu1 %v8684_v34 }
  0x43   :  { %541 = vmatmul.mubr.bf16.gmra.mxu0 %v6930_v57 }
  0x44   :  { %613 = vmatmul.mubr.bf16.gmra.mxu1 %v6932_v58  ;;  %8289 = vmatprep.mubr.msk.bf16.mxu0 %vm8685_vm0, %v8684_v34 }
  0x45   :  { %884 = vmatprep.mubr.bf16.mxu1 %v8463_v59 }
  0x4b   :  { %8290 = vmatmul.mubr.msk.bf16.vlgmr.msra.gmra.mxu0 %vm460_vm1, %v8464_v60 }
  0x4c   :  { %885 = vmatmul.mubr.bf16.vlgmr.msra.gmra.mxu1 %v8461_v61  ;;  %7937 = vmatpush3.bf16.msra.mxu0 %v8748_v3 }
  0x4d   :  { %7938 = vmatprep.subr.bf16.mxu0 %v8760_v5  ;;  %8293 = vmatprep.mubr.msk.bf16.mxu0 %vm8685_vm0, %v8684_v34 }
  0x4e   :  { %892 = vmatprep.mubr.bf16.mxu1 %v8465_v62  ;;  %8310 = vmatpush3.bf16.msra.mxu1 %v8937_v37 }
  0x4f   :  { %8311 = vmatprep.subr.bf16.mxu1 %v8684_v34 }
  0x50   :  { %7939 = vmatpush3.bf16.msra.mxu0 %v8772_v7 }
  0x51   :  { %7940 = vmatprep.subr.bf16.mxu0 %v8784_v9 }
  0x52   :  { %8312 = vmatpush3.bf16.msra.mxu1 %v8951_v40 }
  0x53   :  { %8294 = vmatmul.mubr.msk.bf16.gmra.mxu0 %vm460_vm1, %v8467_v63  ;;  %8313 = vmatprep.subr.bf16.mxu1 %v8684_v34 }
  0x54   :  { %893 = vmatmul.mubr.bf16.gmra.mxu1 %v8468_v32  ;;  %7941 = vmatpush3.bf16.msra.mxu0 %v8796_v11 }
  0x55   :  { %8297 = vmatprep.mubr.msk.bf16.mxu0 %vm8685_vm0, %v8684_v34  ;;  %900 = vmatprep.mubr.bf16.mxu1 %v8469_v33 }
  0x56   :  { %7942 = vmatprep.subr.bf16.mxu0 %v8808_v13  ;;  %8314 = vmatpush3.bf16.msra.mxu1 %v8973_v45 }
  0x57   :  { %8315 = vmatprep.subr.bf16.mxu1 %v8684_v34 }
  0x58   :  { %7943 = vmatpush3.bf16.msra.mxu0 %v8820_v15 }
  0x59   :  { %7944 = vmatprep.subr.bf16.mxu0 %v8832_v17 }
  0x5a   :  { %8316 = vmatpush3.bf16.msra.mxu1 %v8981_v46 }
  0x5b   :  { %8298 = vmatmul.mubr.msk.bf16.gmra.mxu0 %vm460_vm1, %v8471_v35  ;;  %8037 = vmatprep.subr.bf16.mxu1 %v8736_v1  ;;  %v8476_v1 = vld [vmem:[%s11781_s0 + $0x12c] ss:$20 sps:$4 sm:$0xff]  }
  0x5c   :  { %901 = vmatmul.mubr.bf16.gmra.mxu1 %v8472_v36  ;;  %7945 = vmatpush3.bf16.msra.mxu0 %v8844_v19 }
  0x5d   :  { %8301 = vmatprep.mubr.msk.bf16.mxu0 %vm8685_vm0, %v8684_v34  ;;  %908 = vmatprep.mubr.bf16.mxu1 %v8473_v38 }
  0x5e   :  { %7946 = vmatprep.subr.bf16.mxu0 %v8856_v21 }
  0x60   :  { %7947 = vmatpush3.bf16.msra.mxu0 %v8868_v23 }
  0x61   :  { %7948 = vmatprep.subr.bf16.mxu0 %v8880_v25 }
  0x63   :  { %8302 = vmatmul.mubr.msk.bf16.gmra.mxu0 %vm460_vm1, %v8475_v41 }
  0x64   :  { %909 = vmatmul.mubr.bf16.gmra.mxu1 %v8476_v1  ;;  %8305 = vmatprep.mubr.msk.bf16.mxu0 %vm8685_vm0, %v8684_v34 }
  0x65   :  { %916 = vmatprep.mubr.bf16.mxu1 %v7024_v42  ;;  %7949 = vmatpush3.bf16.msra.mxu0 %v8892_v27 }
  0x66   :  { %7950 = vmatprep.subr.bf16.mxu0 %v8904_v29 }
  0x69   :  { %7951 = vmatpush3.bf16.msra.mxu0 %v8916_v31 }
  0x6a   :  { %7991 = vmatprep.subr.bf16.mxu0 %v8731_v0  ;;  %v8486_v0 = vld [vmem:[%s11781_s0 + $0xe4] ss:$20 sps:$4 sm:$0xff]  }
  0x6b   :  { %8306 = vmatmul.mubr.msk.bf16.gmra.mxu0 %vm460_vm1, %v8478_v43 }
  0x6c   :  { %917 = vmatmul.mubr.bf16.gmra.mxu1 %v7023_v47  ;;  %956 = vmatprep.mubr.bf16.mxu0 %v8482_v44 }
  0x6d   :  { %8317 = vmatprep.mubr.msk.bf16.mxu1 %vm8685_vm0, %v8684_v34 }
  0x73   :  { %957 = vmatmul.mubr.bf16.vlgmr.msra.gmra.mxu0 %v8480_v48 }
  0x74   :  { %8318 = vmatmul.mubr.msk.bf16.vlgmr.msra.gmra.mxu1 %vm460_vm1, %v8483_v49  ;;  %7992 = vmatpush3.bf16.msra.mxu0 %v8742_v2  ;;  %v8488_v2 = vld [vmem:[%s11781_s0 + $0x110] ss:$20 sps:$4 sm:$0xff]  }
  0x75   :  { %7993 = vmatprep.subr.bf16.mxu0 %v8754_v4  ;;  %964 = vmatprep.mubr.bf16.mxu0 %v8484_v50  ;;  %v8491_v4 = vld [vmem:[%s11781_s0 + $0x114] ss:$20 sps:$4 sm:$0xff]  }
  0x76   :  { %8321 = vmatprep.mubr.msk.bf16.mxu1 %vm8685_vm0, %v8684_v34  ;;  %8038 = vmatpush3.bf16.msra.mxu1 %v8748_v3  ;;  %v8490_v3 = vld [vmem:[%s11781_s0 + $0x10c] ss:$20 sps:$4 sm:$0xff]  }
  0x77   :  { %8039 = vmatprep.subr.bf16.mxu1 %v8760_v5  ;;  %v8492_v5 = vld [vmem:[%s11781_s0 + $0x138] ss:$20 sps:$4 sm:$0xff]  }
  0x78   :  { %7994 = vmatpush3.bf16.msra.mxu0 %v8766_v6  ;;  %v7001_v6 = vld [vmem:[%s11781_s0 + $0x15c] sm:$0xff] }
  0x79   :  { %7995 = vmatprep.subr.bf16.mxu0 %v8778_v8  ;;  %v8495_v8 = vld [vmem:[%s11781_s0 + $0x13c] ss:$20 sps:$4 sm:$0xff]  }
  0x7a   :  { %8040 = vmatpush3.bf16.msra.mxu1 %v8772_v7  ;;  %v8494_v7 = vld [vmem:[%s11781_s0 + $0x134] ss:$20 sps:$4 sm:$0xff]  }
  0x7b   :  { %965 = vmatmul.mubr.bf16.gmra.mxu0 %v8486_v0  ;;  %8041 = vmatprep.subr.bf16.mxu1 %v8784_v9  ;;  %v7026_v9 = vcombine.high %v7001_v6, %v7001_v6 }
  0x7c   :  { %8322 = vmatmul.mubr.msk.bf16.gmra.mxu1 %vm460_vm1, %v8487_v51  ;;  %7996 = vmatpush3.bf16.msra.mxu0 %v8790_v10 }
  0x7d   :  { %972 = vmatprep.mubr.bf16.mxu0 %v8488_v2  ;;  %8325 = vmatprep.mubr.msk.bf16.mxu1 %vm8685_vm0, %v8684_v34 }
  0x7e   :  { %7997 = vmatprep.subr.bf16.mxu0 %v8802_v12  ;;  %8042 = vmatpush3.bf16.msra.mxu1 %v8796_v11 }
  0x7f   :  { %8043 = vmatprep.subr.bf16.mxu1 %v8808_v13 }
  0x80   :  { %7998 = vmatpush3.bf16.msra.mxu0 %v8814_v14 }
  0x81   :  { %7999 = vmatprep.subr.bf16.mxu0 %v8826_v16 }
  0x82   :  { %8044 = vmatpush3.bf16.msra.mxu1 %v8820_v15 }
  0x83   :  { %973 = vmatmul.mubr.bf16.gmra.mxu0 %v8490_v3  ;;  %8045 = vmatprep.subr.bf16.mxu1 %v8832_v17 }
  0x84   :  { %8326 = vmatmul.mubr.msk.bf16.gmra.mxu1 %vm460_vm1, %v8491_v4  ;;  %8000 = vmatpush3.bf16.msra.mxu0 %v8838_v18 }
  0x85   :  { %980 = vmatprep.mubr.bf16.mxu0 %v8492_v5  ;;  %8329 = vmatprep.mubr.msk.bf16.mxu1 %vm8685_vm0, %v8684_v34 }
  0x86   :  { %8001 = vmatprep.subr.bf16.mxu0 %v8850_v20  ;;  %8046 = vmatpush3.bf16.msra.mxu1 %v8844_v19 }
  0x87   :  { %8047 = vmatprep.subr.bf16.mxu1 %v8856_v21 }
  0x88   :  { %8002 = vmatpush3.bf16.msra.mxu0 %v8862_v22 }
  0x89   :  { %8003 = vmatprep.subr.bf16.mxu0 %v8874_v24 }
  0x8a   :  { %8048 = vmatpush3.bf16.msra.mxu1 %v8868_v23 }
  0x8b   :  { %981 = vmatmul.mubr.bf16.gmra.mxu0 %v8494_v7  ;;  %8049 = vmatprep.subr.bf16.mxu1 %v8880_v25 }
  0x8c   :  { %8330 = vmatmul.mubr.msk.bf16.gmra.mxu1 %vm460_vm1, %v8495_v8  ;;  %988 = vmatprep.mubr.bf16.mxu0 %v7026_v9 }
  0x8d   :  { %8333 = vmatprep.mubr.msk.bf16.mxu1 %vm8685_vm0, %v8684_v34  ;;  %8004 = vmatpush3.bf16.msra.mxu0 %v8886_v26 }
  0x8e   :  { %12 = vsyncpa [#allocation3], 0  ;;  %8050 = vmatpush3.bf16.msra.mxu1 %v8892_v27  ;;  %8005 = vmatprep.subr.bf16.mxu0 %v8898_v28  ;;  %v7025_v10 = vcombine.low %v7001_v6, %v7001_v6  ;;  %v8498_v11 = vld [vmem:[%s11781_s0 + $0x164] ss:$0 sps:$4 sm:$0xff]   ;;  %v8501_v12 = vld [vmem:[%s11781_s0 + $0x16c] ss:$20 sps:$4 sm:$0xff]  }
  0x8f   :  { %8051 = vmatprep.subr.bf16.mxu1 %v8904_v29  ;;  %v8504_v13 = vld [vmem:[%s11781_s0 + $0x174] ss:$20 sps:$4 sm:$0xff]   ;;  %v8629_v14 = vld [vmem:[%s11782_s1 + $0x78] sm:$0xff]   ;;  %v8502_v16 = vld [vmem:[%s11781_s0 + $0x170] ss:$20 sps:$4 sm:$0xff]   ;;  %s8687_s8 = smov [#allocation2]  }
  0x90   :  { %v8499_v15 = vld [vmem:[%s11781_s0 + $0x168] ss:$20 sps:$4 sm:$0xff]   ;;  %v8509_v20 = vld [vmem:[%s11781_s0 + $0x190] ss:$20 sps:$4 sm:$0xff]   ;;  %v8510_v22 = vld [vmem:[%s11781_s0 + $0x198] ss:$20 sps:$4 sm:$0xff]  }
  0x91   :  { %8006 = vmatpush3.bf16.msra.mxu0 %v8910_v30  ;;  %v8505_v17 = vld [vmem:[%s11781_s0 + $0x194] ss:$20 sps:$4 sm:$0xff]   ;;  %v8507_v18 = vld [vmem:[%s11781_s0 + $0x19c] ss:$20 sps:$4 sm:$0xff]   ;;  %v8513_v24 = vld [vmem:[%s11781_s0 + $0x1c4] ss:$20 sps:$4 sm:$0xff]  }
  0x92   :  { %8052 = vmatpush3.bf16.msra.mxu1 %v8916_v31  ;;  %8337 = vmatprep.subr.bf16.mxu0 %v8684_v34  ;;  %v8630_v19 = vld [vmem:[%s11782_s1 + $0x38] sm:$0xff]   ;;  %v8631_v21 = vld [vmem:[%s11782_s1 + $0x70] sm:$0xff]   ;;  %v8633_v26 = vld [vmem:[%s11782_s1 + $0x68] sm:$0xff]   ;;  %vm6894_vm2 = vcmask 74752  }
  0x93   :  { %989 = vmatmul.mubr.bf16.gmra.mxu0 %v7025_v10  ;;  %8092 = vmatprep.subr.bf16.mxu1 %v8629_v14  ;;  %v8511_v23 = vld [vmem:[%s11781_s0 + $0x1bc] ss:$20 sps:$4 sm:$0xff]   ;;  %v8634_v27 = vld [vmem:[%s11782_s1 + $0x28] sm:$0xff]   ;;  %v8635_v29 = vld [vmem:[%s11782_s1 + $0x60] sm:$0xff]  }
  0x94   :  { %8334 = vmatmul.mubr.msk.bf16.gmra.mxu1 %vm460_vm1, %v8498_v11  ;;  %1269 = vmatprep.mubr.bf16.mxu0 %v8501_v12  ;;  %v8632_v25 = vld [vmem:[%s11782_s1 + $0x30] sm:$0xff]   ;;  %v8515_v28 = vld [vmem:[%s11781_s0 + $0x1b8] ss:$20 sps:$4 sm:$0xff]   ;;  %v8636_v54 = vld [vmem:[%s11782_s1 + $0x20] sm:$0xff]  }
  0x95   :  { %1341 = vmatprep.mubr.bf16.mxu1 %v8504_v13  ;;  %v8516_v31 = vld [vmem:[%s11781_s0 + $0x1c0] ss:$20 sps:$4 sm:$0xff]   ;;  %v8517_v52 = vld [vmem:[%s11781_s0 + $0x1e4] ss:$20 sps:$4 sm:$0xff]   ;;  %v7057_v57 = vld [vmem:[%s11781_s0 + $0x208] sm:$0xff] }
  0x96   :  { %v8519_v53 = vld [vmem:[%s11781_s0 + $0x1ec] ss:$20 sps:$4 sm:$0xff]   ;;  %v8637_v55 = vld [vmem:[%s11782_s1 + $0xf8] sm:$0xff]   ;;  %v7058_v59 = vld [vmem:[%s11781_s0 + $0x210] sm:$0xff]  ;;  %v7081_v63 = vcombine.high %v7057_v57, %v7057_v57  ;;  %v7080_v38 = vcombine.low %v7057_v57, %v7057_v57 }
  0x97   :  { %v8638_v56 = vld [vmem:[%s11782_s1 + $0x58] sm:$0xff]   ;;  %v8521_v60 = vld [vmem:[%s11781_s0 + $0x1e0] ss:$20 sps:$4 sm:$0xff]   ;;  %v7083_v32 = vcombine.high %v7058_v59, %v7058_v59  ;;  %v8642_v35 = vld [vmem:[%s11782_s1 + $0x48] sm:$0xff]   ;;  %v7082_v41 = vcombine.low %v7058_v59, %v7058_v59 }
  0x98   :  { %v8639_v58 = vld [vmem:[%s11782_s1 + $0x18] sm:$0xff]   ;;  %v8640_v61 = vld [vmem:[%s11782_s1 + $0x50] sm:$0xff]   ;;  %v8643_v36 = vld [vmem:[%s11782_s1 + $0x8] sm:$0xff]  }
  0x99   :  { %v8522_v62 = vld [vmem:[%s11781_s0 + $0x1e8] ss:$20 sps:$4 sm:$0xff]   ;;  %v8641_v33 = vld [vmem:[%s11782_s1 + $0x10] sm:$0xff]   ;;  %v8644_v39 = vld [vmem:[%s11782_s1 + $0x40] sm:$0xff]  }
  0x9a   :  { %v8530_v1 = vld [vmem:[%s11781_s0 + $0x220] ss:$20 sps:$4 sm:$0xff]   ;;  %v8527_v42 = vld [vmem:[%s11781_s0 + $0x178] ss:$20 sps:$4 sm:$0xff]   ;;  %v8528_v43 = vld [vmem:[%s11781_s0 + $0x21c] ss:$20 sps:$4 sm:$0xff]  }
  0x9b   :  { %1270 = vmatmul.mubr.bf16.vlgmr.msra.gmra.mxu0 %v8499_v15  ;;  %v8645_v44 = vld [vmem:[%s11782_s1 + $0xb8] sm:$0xff]   ;;  %v8646_v47 = vld [vmem:[%s11782_s1 + $0xf0] sm:$0xff]   ;;  %v8649_v51 = vld [vmem:[%s11782_s1 + $0xa8] sm:$0xff]  }
  0x9c   :  { %1342 = vmatmul.mubr.bf16.vlgmr.msra.gmra.mxu1 %v8502_v16  ;;  %8338 = vmatpush3.bf16.msra.mxu0 %v8937_v37  ;;  %v8531_v48 = vld [vmem:[%s11781_s0 + $0x1a0] ss:$20 sps:$4 sm:$0xff]   ;;  %v8534_v50 = vld [vmem:[%s11781_s0 + $0x244] ss:$20 sps:$4 sm:$0xff]   ;;  %v8656_v11 = vld [vmem:[%s11782_s1 + $0xc8] sm:$0xff]  }
  0x9d   :  { %1277 = vmatprep.mubr.bf16.mxu0 %v8505_v17  ;;  %1349 = vmatprep.mubr.bf16.mxu1 %v8507_v18  ;;  %v8647_v49 = vld [vmem:[%s11782_s1 + $0xb0] sm:$0xff]   ;;  %v8650_v2 = vld [vmem:[%s11782_s1 + $0xe0] sm:$0xff]   ;;  %v8652_v5 = vld [vmem:[%s11782_s1 + $0xd8] sm:$0xff]  }
  0x9e   :  { %8093 = vmatpush3.bf16.msra.mxu1 %v8630_v19  ;;  %8339 = vmatprep.subr.bf16.mxu0 %v8684_v34  ;;  %v8536_v0 = vld [vmem:[%s11781_s0 + $0x270] ss:$20 sps:$4 sm:$0xff]   ;;  %v8538_v4 = vld [vmem:[%s11781_s0 + $0x26c] ss:$20 sps:$4 sm:$0xff]   ;;  %v8653_v6 = vld [vmem:[%s11782_s1 + $0x98] sm:$0xff]  }
  0x9f   :  { %8094 = vmatprep.subr.bf16.mxu1 %v8631_v21  ;;  %v8651_v3 = vld [vmem:[%s11782_s1 + $0xa0] sm:$0xff]   ;;  %v8654_v7 = vld [vmem:[%s11782_s1 + $0xd0] sm:$0xff]   ;;  %v8657_v13 = vld [vmem:[%s11782_s1 + $0x88] sm:$0xff]  }
  0xa0   :  { %8340 = vmatpush3.bf16.msra.mxu0 %v8951_v40  ;;  %v8539_v8 = vld [vmem:[%s11781_s0 + $0x1f0] ss:$20 sps:$4 sm:$0xff]   ;;  %v8542_v9 = vld [vmem:[%s11781_s0 + $0x294] ss:$20 sps:$4 sm:$0xff]   ;;  %v8543_v15 = vld [vmem:[%s11781_s0 + $0x218] ss:$0 sps:$4 sm:$0xff]  }
  0xa1   :  { %8341 = vmatprep.subr.bf16.mxu0 %v8684_v34  ;;  %v8655_v10 = vld [vmem:[%s11782_s1 + $0x90] sm:$0xff]   ;;  %v8658_v14 = vld [vmem:[%s11782_s1 + $0xc0] sm:$0xff]   ;;  %v8548_v17 = vld [vmem:[%s11781_s0 + $0x228] ss:$20 sps:$4 sm:$0xff]  }
  0xa2   :  { %8095 = vmatpush3.bf16.msra.mxu1 %v8632_v25  ;;  %v8659_v18 = vld [vmem:[%s11782_s1 + $0x80] sm:$0xff]  }
  0xa3   :  { %1278 = vmatmul.mubr.bf16.gmra.mxu0 %v8509_v20  ;;  %8096 = vmatprep.subr.bf16.mxu1 %v8633_v26  ;;  %v8546_v26 = vld [vmem:[%s11781_s0 + $0x224] ss:$20 sps:$4 sm:$0xff]  }
  0xa4   :  { %1350 = vmatmul.mubr.bf16.gmra.mxu1 %v8510_v22  ;;  %1285 = vmatprep.mubr.bf16.mxu0 %v8511_v23 }
  0xa5   :  { %1357 = vmatprep.mubr.bf16.mxu1 %v8513_v24  ;;  %8342 = vmatpush3.bf16.msra.mxu0 %v8973_v45 }
  0xa6   :  { %8097 = vmatpush3.bf16.msra.mxu1 %v8634_v27  ;;  %8343 = vmatprep.subr.bf16.mxu0 %v8684_v34 }
  0xa7   :  { %8098 = vmatprep.subr.bf16.mxu1 %v8635_v29  ;;  %v8550_v29 = vld [vmem:[%s11781_s0 + $0x250] ss:$20 sps:$4 sm:$0xff]  }
  0xa9   :  { %8344 = vmatpush3.bf16.msra.mxu0 %v8981_v46 }
  0xaa   :  { %8099 = vmatpush3.bf16.msra.mxu1 %v8636_v54  ;;  %8138 = vmatprep.subr.bf16.mxu0 %v8637_v55 }
  0xab   :  { %1286 = vmatmul.mubr.bf16.gmra.mxu0 %v8515_v28  ;;  %8100 = vmatprep.subr.bf16.mxu1 %v8638_v56  ;;  %v8549_v28 = vld [vmem:[%s11781_s0 + $0x22c] ss:$20 sps:$4 sm:$0xff]  }
  0xac   :  { %1358 = vmatmul.mubr.bf16.gmra.mxu1 %v8516_v31  ;;  %1293 = vmatprep.mubr.bf16.mxu0 %v8517_v52 }
  0xad   :  { %1365 = vmatprep.mubr.bf16.mxu1 %v8519_v53 }
  0xae   :  { %8101 = vmatpush3.bf16.msra.mxu1 %v8639_v58 }
  0xaf   :  { %8102 = vmatprep.subr.bf16.mxu1 %v8640_v61 }
  0xb2   :  { %8103 = vmatpush3.bf16.msra.mxu1 %v8641_v33 }
  0xb3   :  { %1294 = vmatmul.mubr.bf16.gmra.mxu0 %v8521_v60  ;;  %8104 = vmatprep.subr.bf16.mxu1 %v8642_v35  ;;  %v8553_v35 = vld [vmem:[%s11781_s0 + $0x254] ss:$20 sps:$4 sm:$0xff]  }
  0xb4   :  { %1366 = vmatmul.mubr.bf16.gmra.mxu1 %v8522_v62  ;;  %1301 = vmatprep.mubr.bf16.mxu0 %v7081_v63 }
  0xb5   :  { %1373 = vmatprep.mubr.bf16.mxu1 %v7083_v32  ;;  %v8552_v32 = vld [vmem:[%s11781_s0 + $0x24c] ss:$20 sps:$4 sm:$0xff]  }
  0xb6   :  { %8105 = vmatpush3.bf16.msra.mxu1 %v8643_v36  ;;  %v8554_v36 = vld [vmem:[%s11781_s0 + $0x278] ss:$20 sps:$4 sm:$0xff]  }
  0xb7   :  { %8106 = vmatprep.subr.bf16.mxu1 %v8644_v39 }
  0xba   :  { %8107 = vmatpush3.bf16.msra.mxu1 %v8910_v30  ;;  %v8532_v30 = vld [vmem:[%s11781_s0 + $0x248] ss:$20 sps:$4 sm:$0xff]  }
  0xbb   :  { %1302 = vmatmul.mubr.bf16.gmra.mxu0 %v7080_v38  ;;  %8365 = vmatprep.subr.bf16.mxu1 %v8684_v34 }
  0xbc   :  { %1374 = vmatmul.mubr.bf16.gmra.mxu1 %v7082_v41  ;;  %8345 = vmatprep.mubr.msk.bf16.mxu0 %vm8685_vm0, %v8684_v34 }
  0xbd   :  { %1645 = vmatprep.mubr.bf16.mxu1 %v8530_v1 }
  0xc3   :  { %8346 = vmatmul.mubr.msk.bf16.vlgmr.msra.gmra.mxu0 %vm460_vm1, %v8527_v42 }
  0xc4   :  { %1646 = vmatmul.mubr.bf16.vlgmr.msra.gmra.mxu1 %v8528_v43  ;;  %8139 = vmatpush3.bf16.msra.mxu0 %v8645_v44 }
  0xc5   :  { %8140 = vmatprep.subr.bf16.mxu0 %v8646_v47  ;;  %8349 = vmatprep.mubr.msk.bf16.mxu0 %vm8685_vm0, %v8684_v34 }
  0xc6   :  { %8366 = vmatpush3.bf16.msra.mxu1 %v8937_v37  ;;  %1653 = vmatprep.mubr.bf16.mxu1 %v8532_v30  ;;  %v8648_v37 = vld [vmem:[%s11782_s1 + $0xe8] sm:$0xff]  }
  0xc7   :  { %8367 = vmatprep.subr.bf16.mxu1 %v8684_v34 }
  0xc8   :  { %8141 = vmatpush3.bf16.msra.mxu0 %v8647_v49 }
  0xc9   :  { %8142 = vmatprep.subr.bf16.mxu0 %v8648_v37 }
  0xca   :  { %8368 = vmatpush3.bf16.msra.mxu1 %v8951_v40  ;;  %v8535_v40 = vld [vmem:[%s11781_s0 + $0x1c8] ss:$20 sps:$4 sm:$0xff]  }
  0xcb   :  { %8350 = vmatmul.mubr.msk.bf16.gmra.mxu0 %vm460_vm1, %v8531_v48  ;;  %8369 = vmatprep.subr.bf16.mxu1 %v8684_v34 }
  0xcc   :  { %1654 = vmatmul.mubr.bf16.gmra.mxu1 %v8534_v50  ;;  %8143 = vmatpush3.bf16.msra.mxu0 %v8649_v51 }
  0xcd   :  { %8353 = vmatprep.mubr.msk.bf16.mxu0 %vm8685_vm0, %v8684_v34  ;;  %8144 = vmatprep.subr.bf16.mxu0 %v8650_v2  ;;  %v8557_v2 = vld [vmem:[%s11781_s0 + $0x27c] ss:$20 sps:$4 sm:$0xff]  }
  0xce   :  { %1661 = vmatprep.mubr.bf16.mxu1 %v8536_v0  ;;  %8370 = vmatpush3.bf16.msra.mxu1 %v8973_v45  ;;  %v8540_v45 = vld [vmem:[%s11781_s0 + $0x298] ss:$20 sps:$4 sm:$0xff]   ;;  %v8556_v0 = vld [vmem:[%s11781_s0 + $0x274] ss:$20 sps:$4 sm:$0xff]  }
  0xcf   :  { %8371 = vmatprep.subr.bf16.mxu1 %v8684_v34 }
  0xd0   :  { %8145 = vmatpush3.bf16.msra.mxu0 %v8651_v3 }
  0xd1   :  { %8146 = vmatprep.subr.bf16.mxu0 %v8652_v5 }
  0xd2   :  { %8372 = vmatpush3.bf16.msra.mxu1 %v8981_v46  ;;  %v7114_v46 = vld [vmem:[%s11781_s0 + $0x2bc] sm:$0xff] }
  0xd3   :  { %8354 = vmatmul.mubr.msk.bf16.gmra.mxu0 %vm460_vm1, %v8535_v40  ;;  %v7138_v12 = vcombine.high %v7114_v46, %v7114_v46  ;;  %v7137_v16 = vcombine.low %v7114_v46, %v7114_v46  ;;  %v8560_v40 = vld [vmem:[%s11781_s0 + $0x2a0] ss:$20 sps:$4 sm:$0xff]  }
  0xd4   :  { %1662 = vmatmul.mubr.bf16.gmra.mxu1 %v8538_v4  ;;  %8147 = vmatpush3.bf16.msra.mxu0 %v8653_v6 }
  0xd5   :  { %8357 = vmatprep.mubr.msk.bf16.mxu0 %vm8685_vm0, %v8684_v34  ;;  %1669 = vmatprep.mubr.bf16.mxu1 %v8540_v45 }
  0xd6   :  { %8148 = vmatprep.subr.bf16.mxu0 %v8654_v7 }
  0xd8   :  { %8149 = vmatpush3.bf16.msra.mxu0 %v8655_v10 }
  0xd9   :  { %8150 = vmatprep.subr.bf16.mxu0 %v8656_v11 }
  0xdb   :  { %8358 = vmatmul.mubr.msk.bf16.gmra.mxu0 %vm460_vm1, %v8539_v8 }
  0xdc   :  { %1670 = vmatmul.mubr.bf16.gmra.mxu1 %v8542_v9  ;;  %8361 = vmatprep.mubr.msk.bf16.mxu0 %vm8685_vm0, %v8684_v34  ;;  %v7115_v9 = vld [vmem:[%s11781_s0 + $0x2c4] sm:$0xff] }
  0xdd   :  { %8151 = vmatpush3.bf16.msra.mxu0 %v8657_v13  ;;  %1677 = vmatprep.mubr.bf16.mxu1 %v7138_v12 }
  0xde   :  { %8152 = vmatprep.subr.bf16.mxu0 %v8658_v14 }
  0xe1   :  { %8153 = vmatpush3.bf16.msra.mxu0 %v8659_v18  ;;  %v7140_v18 = vcombine.high %v7115_v9, %v7115_v9 }
  0xe3   :  { %v7805_v19 = vpop.f32.mrf.mxu0  ;;  %8362 = vmatmul.mubr.msk.bf16.gmra.mxu0 %vm460_vm1, %v8543_v15  ;;  %v8558_v15 = vld [vmem:[%s11781_s0 + $0x29c] ss:$20 sps:$4 sm:$0xff]  }
  0xe4   :  { %v7851_v20 = vpop.f32.mrf.mxu1  ;;  %1678 = vmatmul.mubr.bf16.gmra.mxu1 %v7137_v16  ;;  %1717 = vmatprep.mubr.bf16.mxu0 %v8548_v17  ;;  %v8561_v17 = vld [vmem:[%s11781_s0 + $0x2a4] ss:$20 sps:$4 sm:$0xff]  }
  0xe5   :  { %v7806_v21 = vpop.f32.mrf.mxu0  ;;  %8373 = vmatprep.mubr.msk.bf16.mxu1 %vm8685_vm0, %v8684_v34 }
  0xe6   :  { %v7807_v22 = vadd.f32 %v7806_v21, %v7805_v19  ;;  %v7852_v23 = vpop.f32.mrf.mxu1  ;;  %v1937_v19 = vld [vmem:[%s11784_s3 + $0x1c0] sm:$0xff] }
  0xe7   :  { %v7853_v24 = vadd.f32 %v7852_v23, %v7851_v20  ;;  %v7808_v25 = vpop.f32.mrf.mxu0  ;;  %v1941_v20 = vld [vmem:[%s11784_s3 + $0x1e0] sm:$0xff] }
  0xe8   :  { %v7854_v27 = vpop.f32.mrf.mxu1  ;;  %v7205_v23 = vcombine.high %v1937_v19, %v1941_v20 }
  0xe9   :  { %v7809_v31 = vpop.f32.mrf.mxu0  ;;  %v9423_v52 = vadd.f32 %v7853_v24, %v7807_v22 }
  0xea   :  { %v7810_v53 = vadd.f32 %v7809_v31, %v7808_v25  ;;  %v7855_v54 = vpop.f32.mrf.mxu1  ;;  %5379 = vmatprep.subr.bf16.mxu0 %v7205_v23  ;;  %v1929_v31 = vld [vmem:[%s11784_s3 + $0x180] sm:$0xff] }
  0xeb   :  { %v7856_v55 = vadd.f32 %v7855_v54, %v7854_v27  ;;  %v7811_v56 = vpop.f32.mrf.mxu0  ;;  %1718 = vmatmul.mubr.bf16.vlgmr.msra.gmra.mxu0 %v8546_v26  ;;  %v7204_v26 = vcombine.low %v1937_v19, %v1941_v20 }
  0xec   :  { %v7857_v57 = vpop.f32.mrf.mxu1  ;;  %8374 = vmatmul.mubr.msk.bf16.vlgmr.msra.gmra.mxu1 %vm460_vm1, %v8549_v28  ;;  %1725 = vmatprep.mubr.bf16.mxu0 %v8550_v29 }
  0xed   :  { %v7812_v58 = vpop.f32.mrf.mxu0  ;;  %8377 = vmatprep.mubr.msk.bf16.mxu1 %vm8685_vm0, %v8684_v34  ;;  %v9428_v59 = vadd.f32 %v7856_v55, %v7810_v53  ;;  %v1933_v53 = vld [vmem:[%s11784_s3 + $0x1a0] sm:$0xff]  ;;  %5380 = vmatpush1.bf16.msra.mxu0 %v7204_v26 }
  0xee   :  { %v7813_v60 = vadd.f32 %v7812_v58, %v7811_v56  ;;  %v7858_v61 = vpop.f32.mrf.mxu1  ;;  %v7197_v56 = vcombine.high %v1929_v31, %v1933_v53  ;;  %v1901_v26 = vld [vmem:[%s11784_s3 + $0xa0] sm:$0xff] }
  0xef   :  { %v7859_v62 = vadd.f32 %v7858_v61, %v7857_v57  ;;  %v7814_v63 = vpop.f32.mrf.mxu0 }
  0xf0   :  { %v7860_v33 = vpop.f32.mrf.mxu1  ;;  %5381 = vmatprep.subr.bf16.mxu0 %v7197_v56 }
  0xf1   :  { %v7815_v38 = vpop.f32.mrf.mxu0  ;;  %v9439_v39 = vadd.f32 %v7859_v62, %v7813_v60  ;;  %v7196_v60 = vcombine.low %v1929_v31, %v1933_v53 }
  0xf2   :  { %v7816_v41 = vadd.f32 %v7815_v38, %v7814_v63  ;;  %v7861_v1 = vpop.f32.mrf.mxu1  ;;  %v7139_v63 = vcombine.low %v7115_v9, %v7115_v9 }
  0xf3   :  { %v7862_v42 = vadd.f32 %v7861_v1, %v7860_v33  ;;  %v7817_v43 = vpop.f32.mrf.mxu0  ;;  %1726 = vmatmul.mubr.bf16.gmra.mxu0 %v8552_v32  ;;  %v8564_v32 = vld [vmem:[%s11781_s0 + $0x2cc] ss:$0 sps:$4 sm:$0xff]   ;;  %s6902_s0 = sshll.u32 %s8687_s8, 4  ;;  %s6903_s0 = int_to_ptr.vmem [resolvable:$true] %s6902_s0 }
  0xf4   :  { %v7863_v30 = vpop.f32.mrf.mxu1  ;;  %8378 = vmatmul.mubr.msk.bf16.gmra.mxu1 %vm460_vm1, %v8553_v35  ;;  %1733 = vmatprep.mubr.bf16.mxu0 %v8554_v36  ;;  %v1925_v35 = vld [vmem:[%s11784_s3 + $0x160] sm:$0xff]  ;;  %p8667_p1 = scmp.lt.s32.totalorder %s6903_s0, %s6903_s0 }
  0xf5   :  { %v7818_v44 = vpop.f32.mrf.mxu0  ;;  %8381 = vmatprep.mubr.msk.bf16.mxu1 %vm8685_vm0, %v8684_v34  ;;  %v9444_v47 = vadd.f32 %v7862_v42, %v7816_v41  ;;  %v2065_v36 = vld [vmem:[%s11784_s3 + $0x5c0] sm:$0xff]  ;;  %5382 = vmatpush1.bf16.msra.mxu0 %v7196_v60 }
  0xf6   :  { %v7819_v48 = vadd.f32 %v7818_v44, %v7817_v43  ;;  %v7864_v49 = vpop.f32.mrf.mxu1  ;;  %v2069_v42 = vld [vmem:[%s11784_s3 + $0x5e0] sm:$0xff] }
  0xf7   :  { %v7865_v50 = vadd.f32 %v7864_v49, %v7863_v30  ;;  %v7820_v37 = vpop.f32.mrf.mxu0  ;;  %v7332_v44 = vcombine.low %v2065_v36, %v2069_v42 }
  0xf8   :  { %v7866_v51 = vpop.f32.mrf.mxu1 }
  0xf9   :  { %v7821_v3 = vpop.f32.mrf.mxu0  ;;  %v9455_v4 = vadd.f32 %v7865_v50, %v7819_v48  ;;  %v7333_v48 = vcombine.high %v2065_v36, %v2069_v42 }
  0xfa   :  { %v7822_v5 = vadd.f32 %v7821_v3, %v7820_v37  ;;  %v7867_v45 = vpop.f32.mrf.mxu1  ;;  %v2061_v3 = vld [vmem:[%s11784_s3 + $0x5a0] sm:$0xff] }
  0xfb   :  { %v7868_v6 = vadd.f32 %v7867_v45, %v7866_v51  ;;  %v7823_v7 = vpop.f32.mrf.mxu0  ;;  %1734 = vmatmul.mubr.bf16.gmra.mxu0 %v8556_v0  ;;  %5420 = vmatprep.subr.bf16.mxu1 %v7333_v48  ;;  %v1913_v0 = vld [vmem:[%s11784_s3 + $0x100] sm:$0xff] }
  0xfc   :  { %v7869_v46 = vpop.f32.mrf.mxu1  ;;  %8382 = vmatmul.mubr.msk.bf16.gmra.mxu1 %vm460_vm1, %v8557_v2  ;;  %1741 = vmatprep.mubr.bf16.mxu0 %v8560_v40  ;;  %v1917_v51 = vld [vmem:[%s11784_s3 + $0x120] sm:$0xff] }
  0xfd   :  { %v7824_v8 = vpop.f32.mrf.mxu0  ;;  %8385 = vmatprep.mubr.msk.bf16.mxu1 %vm8685_vm0, %v8684_v34  ;;  %v9463_v10 = vadd.f32 %v7868_v6, %v7822_v5  ;;  %v2057_v2 = vld [vmem:[%s11784_s3 + $0x580] sm:$0xff]  ;;  %5421 = vmatpush1.bf16.msra.mxu1 %v7332_v44  ;;  %v7180_v45 = vcombine.low %v1913_v0, %v1917_v51 }
  0xfe   :  { %v7825_v11 = vadd.f32 %v7824_v8, %v7823_v7  ;;  %v7870_v12 = vpop.f32.mrf.mxu1  ;;  %v7324_v6 = vcombine.low %v2057_v2, %v2061_v3  ;;  %v7325_v7 = vcombine.high %v2057_v2, %v2061_v3  ;;  %v1881_v44 = vld [vmem:[%s11784_s3] sm:$0xff] }
  0xff   :  { %v7871_v13 = vadd.f32 %v7870_v12, %v7869_v46  ;;  %v7826_v14 = vpop.f32.mrf.mxu0  ;;  %v1905_v12 = vld [vmem:[%s11784_s3 + $0xc0] sm:$0xff] }
 0x100   :  { %v7872_v16 = vpop.f32.mrf.mxu1  ;;  %5422 = vmatprep.subr.bf16.mxu1 %v7325_v7  ;;  %v1885_v48 = vld [vmem:[%s11784_s3 + $0x20] sm:$0xff] }
 0x101   :  { %v7827_v21 = vpop.f32.mrf.mxu0  ;;  %v9477_v22 = vadd.f32 %v7871_v13, %v7825_v11  ;;  %v1909_v13 = vld [vmem:[%s11784_s3 + $0xe0] sm:$0xff]  ;;  %5423 = vmatpush1.bf16.msra.mxu1 %v7324_v6  ;;  %v7148_v2 = vcombine.low %v1881_v44, %v1885_v48 }
 0x102   :  { %v7828_v24 = vadd.f32 %v7827_v21, %v7826_v14  ;;  %v7873_v25 = vpop.f32.mrf.mxu1  ;;  %v2049_v14 = vld [vmem:[%s11784_s3 + $0x540] sm:$0xff] }
 0x103   :  { %v7874_v27 = vadd.f32 %v7873_v25, %v7872_v16  ;;  %v7829_v28 = vpop.f32.mrf.mxu0  ;;  %1742 = vmatmul.mubr.bf16.gmra.mxu0 %v8558_v15  ;;  %v2053_v16 = vld [vmem:[%s11784_s3 + $0x560] sm:$0xff] }
 0x104   :  { %v7875_v29 = vpop.f32.mrf.mxu1  ;;  %8386 = vmatmul.mubr.msk.bf16.gmra.mxu1 %vm460_vm1, %v8561_v17  ;;  %1749 = vmatprep.mubr.bf16.mxu0 %v7140_v18  ;;  %v7172_v18 = vcombine.low %v1905_v12, %v1909_v13  ;;  %v7316_v19 = vcombine.low %v2049_v14, %v2053_v16  ;;  %v7317_v20 = vcombine.high %v2049_v14, %v2053_v16  ;;  %v1897_v25 = vld [vmem:[%s11784_s3 + $0x80] sm:$0xff] }
 0x105   :  { %v7830_v54 = vpop.f32.mrf.mxu0  ;;  %8389 = vmatprep.mubr.msk.bf16.mxu1 %vm8685_vm0, %v8684_v34  ;;  %v9488_v55 = vadd.f32 %v7874_v27, %v7828_v24  ;;  %v1921_v34 = vld [vmem:[%s11784_s3 + $0x140] sm:$0xff]  ;;  %v7164_v53 = vcombine.low %v1897_v25, %v1901_v26 }
 0x106   :  { %v7831_v57 = vadd.f32 %v7830_v54, %v7829_v28  ;;  %v7876_v58 = vpop.f32.mrf.mxu1  ;;  %v7189_v1 = vcombine.high %v1921_v34, %v1925_v35  ;;  %v7188_v30 = vcombine.low %v1921_v34, %v1925_v35  ;;  %5424 = vmatprep.subr.bf16.mxu1 %v7317_v20  ;;  %v2041_v27 = vld [vmem:[%s11784_s3 + $0x500] sm:$0xff] }
 0x107   :  { %v7877_v61 = vadd.f32 %v7876_v58, %v7875_v29  ;;  %v7832_v62 = vpop.f32.mrf.mxu0  ;;  %5425 = vmatpush1.bf16.msra.mxu1 %v7316_v19  ;;  %v7165_v29 = vcombine.high %v1897_v25, %v1901_v26  ;;  %v2037_v34 = vld [vmem:[%s11784_s3 + $0x4e0] sm:$0xff] }
 0x108   :  { %v7878_v33 = vpop.f32.mrf.mxu1  ;;  %5383 = vmatprep.subr.bf16.mxu0 %v7189_v1  ;;  %v1889_v62 = vld [vmem:[%s11784_s3 + $0x40] sm:$0xff] }
 0x109   :  { %v7833_v38 = vpop.f32.mrf.mxu0  ;;  %v9502_v41 = vadd.f32 %v7877_v61, %v7831_v57  ;;  %5384 = vmatpush1.bf16.msra.mxu0 %v7188_v30  ;;  %v2001_v7 = vld [vmem:[%s11784_s3 + $0x3c0] sm:$0xff] }
 0x10a   :  { %v7879_v43 = vpop.f32.mrf.mxu1  ;;  %v2021_v14 = vld [vmem:[%s11784_s3 + $0x460] sm:$0xff] }
 0x10b   :  { %v654_v49 = vpop.f32.mrf.mxu0  ;;  %1750 = vmatmul.mubr.bf16.gmra.mxu0 %v7139_v63  ;;  %v1893_v63 = vld [vmem:[%s11784_s3 + $0x60] sm:$0xff] }
 0x10c   :  { %v9508_v50 = vadd.f32 %v654_v49, %v9423_v52  ;;  %v7906_v37 = vpop.f32.mrf.mxu1  ;;  %8390 = vmatmul.mubr.msk.bf16.gmra.mxu1 %vm460_vm1, %v8564_v32  ;;  %v7181_v52 = vcombine.high %v1913_v0, %v1917_v51  ;;  %v2033_v32 = vld [vmem:[%s11784_s3 + $0x4c0] sm:$0xff]  ;;  %v7156_v36 = vcombine.low %v1889_v62, %v1893_v63  ;;  %v7149_v0 = vcombine.high %v1881_v44, %v1885_v48 }
 0x10d   :  { %v8291_v40 = vpop.f32.mrf.mxu0  ;;  %v7300_v38 = vcombine.low %v2033_v32, %v2037_v34  ;;  %v7301_v1 = vcombine.high %v2033_v32, %v2037_v34  ;;  %v2025_v49 = vld [vmem:[%s11784_s3 + $0x480] sm:$0xff] }
 0x10e   :  { %v7907_v5 = vpop.f32.mrf.mxu1  ;;  %5385 = vmatprep.subr.bf16.mxu0 %v7181_v52  ;;  %v1997_v25 = vld [vmem:[%s11784_s3 + $0x3a0] sm:$0xff] }
 0x10f   :  { %v9523_v46 = vadd.f32 %v7907_v5, %v7906_v37  ;;  %v657_v8 = vpop.f32.mrf.mxu0  ;;  %5386 = vmatpush1.bf16.msra.mxu0 %v7180_v45  ;;  %v2009_v26 = vld [vmem:[%s11784_s3 + $0x400] sm:$0xff] }
 0x110   :  { %v9526_v9 = vadd.f32 %v657_v8, %v9428_v59  ;;  %v9528_v11 = vpop.f32.mrf.mxu1  ;;  %v7173_v59 = vcombine.high %v1905_v12, %v1909_v13  ;;  %v2005_v8 = vld [vmem:[%s11784_s3 + $0x3e0] sm:$0xff] }
 0x111   :  { %v8292_v15 = vpop.f32.mrf.mxu0  ;;  %v2017_v12 = vld [vmem:[%s11784_s3 + $0x440] sm:$0xff] }
 0x112   :  { %v9542_v17 = vpop.f32.mrf.mxu1  ;;  %5387 = vmatprep.subr.bf16.mxu0 %v7173_v59  ;;  %v7268_v59 = vcombine.low %v2001_v7, %v2005_v8  ;;  %v7284_v16 = vcombine.low %v2017_v12, %v2021_v14  ;;  %v1989_v32 = vld [vmem:[%s11784_s3 + $0x360] sm:$0xff] }
 0x113   :  { %v662_v21 = vpop.f32.mrf.mxu0  ;;  %5388 = vmatpush1.bf16.msra.mxu0 %v7172_v18  ;;  %v7285_v18 = vcombine.high %v2017_v12, %v2021_v14  ;;  %v2133_v34 = vld [vmem:[%s11784_s3 + $0x7e0] sm:$0xff] }
 0x114   :  { %v9545_v23 = vadd.f32 %v662_v21, %v9439_v39  ;;  %v7912_v24 = vpop.f32.mrf.mxu1  ;;  %v2045_v39 = vld [vmem:[%s11784_s3 + $0x520] sm:$0xff]  ;;  %5389 = vmatprep.subr.bf16.mxu0 %v7165_v29 }
 0x115   :  { %v8295_v28 = vpop.f32.mrf.mxu0  ;;  %v7308_v54 = vcombine.low %v2041_v27, %v2045_v39  ;;  %v7309_v56 = vcombine.high %v2041_v27, %v2045_v39  ;;  %v2113_v14 = vld [vmem:[%s11784_s3 + $0x740] sm:$0xff] }
 0x116   :  { %v7913_v31 = vpop.f32.mrf.mxu1 }
 0x117   :  { %v9559_v57 = vadd.f32 %v7913_v31, %v7912_v24  ;;  %v665_v58 = vpop.f32.mrf.mxu0  ;;  %5426 = vmatprep.subr.bf16.mxu1 %v7309_v56  ;;  %5390 = vmatpush1.bf16.msra.mxu0 %v7164_v53  ;;  %v1993_v24 = vld [vmem:[%s11784_s3 + $0x380] sm:$0xff] }
 0x118   :  { %v9562_v60 = vadd.f32 %v665_v58, %v9444_v47  ;;  %v9564_v61 = vpop.f32.mrf.mxu1  ;;  %5427 = vmatpush1.bf16.msra.mxu1 %v7308_v54  ;;  %v7157_v47 = vcombine.high %v1889_v62, %v1893_v63  ;;  %v7261_v28 = vcombine.high %v1993_v24, %v1997_v25  ;;  %v7260_v39 = vcombine.low %v1993_v24, %v1997_v25  ;;  %v1985_v63 = vld [vmem:[%s11784_s3 + $0x340] sm:$0xff] }
 0x119   :  { %v8296_v33 = vpop.f32.mrf.mxu0  ;;  %5428 = vmatprep.subr.bf16.mxu1 %v7301_v1 }
 0x11a   :  { %v9578_v35 = vpop.f32.mrf.mxu1  ;;  %5391 = vmatprep.subr.bf16.mxu0 %v7157_v47  ;;  %v2129_v33 = vld [vmem:[%s11784_s3 + $0x7c0] sm:$0xff] }
 0x11b   :  { %v670_v42 = vpop.f32.mrf.mxu0  ;;  %5392 = vmatpush1.bf16.msra.mxu0 %v7156_v36  ;;  %v7396_v1 = vcombine.low %v2129_v33, %v2133_v34 }
 0x11c   :  { %v9581_v43 = vadd.f32 %v670_v42, %v9455_v4  ;;  %v7918_v30 = vpop.f32.mrf.mxu1  ;;  %5429 = vmatpush1.bf16.msra.mxu1 %v7300_v38  ;;  %v2029_v4 = vld [vmem:[%s11784_s3 + $0x4a0] sm:$0xff]  ;;  %5393 = vmatprep.subr.bf16.mxu0 %v7149_v0  ;;  %v7252_v38 = vcombine.low %v1985_v63, %v1989_v32  ;;  %v7397_v42 = vcombine.high %v2129_v33, %v2133_v34 }
 0x11d   :  { %v8299_v37 = vpop.f32.mrf.mxu0  ;;  %v7292_v40 = vcombine.low %v2025_v49, %v2029_v4  ;;  %v7293_v52 = vcombine.high %v2025_v49, %v2029_v4  ;;  %v1977_v49 = vld [vmem:[%s11784_s3 + $0x300] sm:$0xff] }
 0x11e   :  { %v7919_v51 = vpop.f32.mrf.mxu1  ;;  %v1981_v37 = vld [vmem:[%s11784_s3 + $0x320] sm:$0xff] }
 0x11f   :  { %v9595_v3 = vadd.f32 %v7919_v51, %v7918_v30  ;;  %v673_v5 = vpop.f32.mrf.mxu0  ;;  %5430 = vmatprep.subr.bf16.mxu1 %v7293_v52  ;;  %5394 = vmatpush1.bf16.msra.mxu0 %v7148_v2  ;;  %v2121_v0 = vld [vmem:[%s11784_s3 + $0x780] sm:$0xff]  ;;  %v7245_v51 = vcombine.high %v1977_v49, %v1981_v37 }
 0x120   :  { %v9598_v45 = vadd.f32 %v673_v5, %v9463_v10  ;;  %v9600_v6 = vpop.f32.mrf.mxu1  ;;  %5431 = vmatpush1.bf16.msra.mxu1 %v7292_v40  ;;  %v7269_v10 = vcombine.high %v2001_v7, %v2005_v8  ;;  %v7244_v40 = vcombine.low %v1977_v49, %v1981_v37  ;;  %v2101_v37 = vld [vmem:[%s11784_s3 + $0x6e0] sm:$0xff] }
 0x121   :  { %v8300_v13 = vpop.f32.mrf.mxu0  ;;  %5432 = vmatprep.subr.bf16.mxu1 %v7285_v18  ;;  %v2117_v18 = vld [vmem:[%s11784_s3 + $0x760] sm:$0xff] }
 0x122   :  { %v9614_v15 = vpop.f32.mrf.mxu1  ;;  %5395 = vmatprep.subr.bf16.mxu0 %v7269_v10  ;;  %v1969_v13 = vld [vmem:[%s11784_s3 + $0x2c0] sm:$0xff]  ;;  %v7380_v24 = vcombine.low %v2113_v14, %v2117_v18  ;;  %v7381_v25 = vcombine.high %v2113_v14, %v2117_v18 }
 0x123   :  { %v678_v19 = vpop.f32.mrf.mxu0  ;;  %5396 = vmatpush2.bf16.msra.mxu0 %v7268_v59  ;;  %v1973_v10 = vld [vmem:[%s11784_s3 + $0x2e0] sm:$0xff] }
 0x124   :  { %v9617_v20 = vadd.f32 %v678_v19, %v9477_v22  ;;  %v7924_v21 = vpop.f32.mrf.mxu1  ;;  %5433 = vmatpush1.bf16.msra.mxu1 %v7284_v16  ;;  %v2013_v22 = vld [vmem:[%s11784_s3 + $0x420] sm:$0xff]  ;;  %5397 = vmatprep.subr.bf16.mxu0 %v7261_v28  ;;  %v7237_v16 = vcombine.high %v1969_v13, %v1973_v10 }
 0x125   :  { %v8303_v27 = vpop.f32.mrf.mxu0  ;;  %v7276_v31 = vcombine.low %v2009_v26, %v2013_v22  ;;  %v7277_v53 = vcombine.high %v2009_v26, %v2013_v22  ;;  %v1961_v28 = vld [vmem:[%s11784_s3 + $0x280] sm:$0xff] }
 0x126   :  { %v7925_v29 = vpop.f32.mrf.mxu1  ;;  %v1965_v22 = vld [vmem:[%s11784_s3 + $0x2a0] sm:$0xff] }
 0x127   :  { %v9631_v54 = vadd.f32 %v7925_v29, %v7924_v21  ;;  %v681_v56 = vpop.f32.mrf.mxu0  ;;  %5434 = vmatprep.subr.bf16.mxu1 %v7277_v53  ;;  %5398 = vmatpush2.bf16.msra.mxu0 %v7260_v39  ;;  %v7236_v21 = vcombine.low %v1969_v13, %v1973_v10  ;;  %v2105_v29 = vld [vmem:[%s11784_s3 + $0x700] sm:$0xff] }
 0x128   :  { %v9634_v58 = vadd.f32 %v681_v56, %v9488_v55  ;;  %v9636_v62 = vpop.f32.mrf.mxu1  ;;  %5435 = vmatpush1.bf16.msra.mxu1 %v7276_v31  ;;  %v7253_v55 = vcombine.high %v1985_v63, %v1989_v32  ;;  %v7229_v31 = vcombine.high %v1961_v28, %v1965_v22  ;;  %v2109_v53 = vld [vmem:[%s11784_s3 + $0x720] sm:$0xff]  ;;  %v7228_v32 = vcombine.low %v1961_v28, %v1965_v22 }
 0x129   :  { %v8304_v47 = vpop.f32.mrf.mxu0  ;;  %5436 = vmatprep.subr.bf16.mxu1 %v7397_v42  ;;  %v7372_v33 = vcombine.low %v2105_v29, %v2109_v53  ;;  %v1957_v42 = vld [vmem:[%s11784_s3 + $0x260] sm:$0xff] }
 0x12a   :  { %11794 = vst [vmem:[#allocation5_spill] sm:$0xff] %v9634_v58  ;;  %v9650_v36 = vpop.f32.mrf.mxu1  ;;  %5399 = vmatprep.subr.bf16.mxu0 %v7253_v55  ;;  %v7373_v47 = vcombine.high %v2105_v29, %v2109_v53  ;;  %v2089_v13 = vld [vmem:[%s11784_s3 + $0x680] sm:$0xff]  ;;  %v7917_v53 = vadd.f32 %v9578_v35, %v9564_v61 }
 0x12b   :  { %v686_v30 = vpop.f32.mrf.mxu0  ;;  %5400 = vmatpush2.bf16.msra.mxu0 %v7252_v38  ;;  %v2081_v29 = vld [vmem:[%s11784_s3 + $0x640] sm:$0xff] }
 0x12c   :  { %v9653_v44 = vadd.f32 %v686_v30, %v9502_v41  ;;  %v7930_v48 = vpop.f32.mrf.mxu1  ;;  %5437 = vmatpush2.bf16.msra.mxu1 %v7396_v1  ;;  %v2125_v41 = vld [vmem:[%s11784_s3 + $0x7a0] sm:$0xff]  ;;  %5401 = vmatprep.subr.bf16.mxu0 %v7245_v51 }
 0x12d   :  { %v8307_v4 = vpop.f32.mrf.mxu0  ;;  %v7388_v52 = vcombine.low %v2121_v0, %v2125_v41  ;;  %v7389_v5 = vcombine.high %v2121_v0, %v2125_v41  ;;  %v1953_v1 = vld [vmem:[%s11784_s3 + $0x240] sm:$0xff] }
 0x12e   :  { %11795 = vst [vmem:[#allocation6_spill] sm:$0xff] %v9653_v44  ;;  %v7931_v2 = vpop.f32.mrf.mxu1  ;;  %v2097_v30 = vld [vmem:[%s11784_s3 + $0x6c0] sm:$0xff]  ;;  %v7220_v41 = vcombine.low %v1953_v1, %v1957_v42 }
 0x12f   :  { %v9667_v7 = vadd.f32 %v7931_v2, %v7930_v48  ;;  %v689_v8 = vpop.f32.mrf.mxu0  ;;  %5438 = vmatprep.subr.bf16.mxu1 %v7389_v5  ;;  %5402 = vmatpush2.bf16.msra.mxu0 %v7244_v40  ;;  %v7911_v48 = vadd.f32 %v9542_v17, %v9528_v11  ;;  %v7364_v2 = vcombine.low %v2097_v30, %v2101_v37 }
 0x130   :  { %v7933_v12 = vpop.f32.mrf.mxu1  ;;  %5439 = vmatpush2.bf16.msra.mxu1 %v7388_v52  ;;  %5403 = vmatprep.subr.bf16.mxu0 %v7237_v16  ;;  %v7365_v52 = vcombine.high %v2097_v30, %v2101_v37  ;;  %v1945_v8 = vld [vmem:[%s11784_s3 + $0x200] sm:$0xff] }
 0x131   :  { %v8308_v59 = vpop.f32.mrf.mxu0  ;;  %5440 = vmatprep.subr.bf16.mxu1 %v7381_v25  ;;  %v1949_v12 = vld [vmem:[%s11784_s3 + $0x220] sm:$0xff] }
 0x132   :  { %v7934_v19 = vpop.f32.mrf.mxu1  ;;  %v7213_v14 = vcombine.high %v1945_v8, %v1949_v12  ;;  %v2093_v59 = vld [vmem:[%s11784_s3 + $0x6a0] sm:$0xff] }
 0x133   :  { %v7952_v26 = vpop.f32.mrf.mxu0  ;;  %5404 = vmatpush2.bf16.msra.mxu0 %v7236_v21  ;;  %v7212_v21 = vcombine.low %v1945_v8, %v1949_v12  ;;  %v2073_v30 = vld [vmem:[%s11784_s3 + $0x600] sm:$0xff] }
 0x134   :  { %v1030_v27 = vpop.f32.mrf.mxu1  ;;  %5441 = vmatpush2.bf16.msra.mxu1 %v7380_v24  ;;  %5405 = vmatprep.subr.bf16.mxu0 %v7229_v31  ;;  %v7356_v24 = vcombine.low %v2089_v13, %v2093_v59  ;;  %v9738_v31 = vld [vmem:[%s11784_s3 + $0x9c0] sm:$0xff] }
 0x135   :  { %v7953_v39 = vpop.f32.mrf.mxu0  ;;  %5442 = vmatprep.subr.bf16.mxu1 %v7373_v47  ;;  %v9774_v12 = vld [vmem:[%s11784_s3 + $0xde0] sm:$0xff] }
 0x136   :  { %v7954_v56 = vadd.f32 %v7953_v39, %v7952_v26  ;;  %v8319_v63 = vpop.f32.mrf.mxu1  ;;  %v7357_v26 = vcombine.high %v2089_v13, %v2093_v59  ;;  %v2085_v39 = vld [vmem:[%s11784_s3 + $0x660] sm:$0xff]  ;;  %v7923_v13 = vadd.f32 %v9614_v15, %v9600_v6 }
 0x137   :  { %v7955_v55 = vpop.f32.mrf.mxu0  ;;  %5406 = vmatpush2.bf16.msra.mxu0 %v7228_v32  ;;  %v9745_v63 = vld [vmem:[%s11784_s3 + $0x9e0] sm:$0xff] }
 0x138   :  { %v959_v34 = vadd.f32 %v7954_v56, %v9523_v46  ;;  %v1033_v38 = vpop.f32.mrf.mxu1  ;;  %5443 = vmatpush2.bf16.msra.mxu1 %v7372_v33  ;;  %v7221_v46 = vcombine.high %v1953_v1, %v1957_v42  ;;  %v7461_v61 = vcombine.high %v9738_v31, %v9745_v63 }
 0x139   :  { %v7956_v49 = vpop.f32.mrf.mxu0  ;;  %5444 = vmatprep.subr.bf16.mxu1 %v7365_v52 }
 0x13a   :  { %v9708_v0 = vadd.f32 %v1030_v27, %v959_v34  ;;  %v7957_v4 = vadd.f32 %v7956_v49, %v7955_v55  ;;  %v8320_v51 = vpop.f32.mrf.mxu1  ;;  %5407 = vmatprep.subr.bf16.mxu0 %v7221_v46  ;;  %v7348_v55 = vcombine.low %v2081_v29, %v2085_v39 }
 0x13b   :  { %v7958_v40 = vpop.f32.mrf.mxu0  ;;  %5408 = vmatpush2.bf16.msra.mxu0 %v7220_v41 }
 0x13c   :  { %v962_v17 = vadd.f32 %v7957_v4, %v7911_v48  ;;  %v1038_v5 = vpop.f32.mrf.mxu1  ;;  %5445 = vmatpush2.bf16.msra.mxu1 %v7364_v2  ;;  %5409 = vmatprep.subr.bf16.mxu0 %v7213_v14  ;;  %v2077_v48 = vld [vmem:[%s11784_s3 + $0x620] sm:$0xff] }
 0x13d   :  { %v7959_v10 = vpop.f32.mrf.mxu0  ;;  %5446 = vmatprep.subr.bf16.mxu1 %v7357_v26  ;;  %v7341_v46 = vcombine.high %v2073_v30, %v2077_v48  ;;  %v7340_v41 = vcombine.low %v2073_v30, %v2077_v48 }
 0x13e   :  { %v9724_v16 = vadd.f32 %v1033_v38, %v962_v17  ;;  %v7960_v18 = vadd.f32 %v7959_v10, %v7958_v40  ;;  %v8323_v19 = vpop.f32.mrf.mxu1 }
 0x13f   :  { %v7961_v25 = vpop.f32.mrf.mxu0  ;;  %5410 = vmatpush2.bf16.msra.mxu0 %v7212_v21 }
 0x140   :  { %v967_v28 = vadd.f32 %v7960_v18, %v9559_v57  ;;  %v1041_v22 = vpop.f32.mrf.mxu1  ;;  %v7349_v57 = vcombine.high %v2081_v29, %v2085_v39  ;;  %5447 = vmatpush2.bf16.msra.mxu1 %v7356_v24  ;;  %5461 = vmatprep.subr.bf16.mxu0 %v7461_v61 }
 0x141   :  { %v7962_v56 = vpop.f32.mrf.mxu0 }
 0x142   :  { %v9747_v32 = vadd.f32 %v1038_v5, %v967_v28  ;;  %v7963_v33 = vadd.f32 %v7962_v56, %v7961_v25  ;;  %v8324_v47 = vpop.f32.mrf.mxu1  ;;  %5448 = vmatprep.subr.bf16.mxu1 %v7349_v57  ;;  %v9769_v5 = vld [vmem:[%s11784_s3 + $0xdc0] sm:$0xff]  ;;  %v7929_v57 = vadd.f32 %v9650_v36, %v9636_v62 }
 0x143   :  { %v7964_v38 = vpop.f32.mrf.mxu0  ;;  %v7589_v19 = vcombine.high %v9769_v5, %v9774_v12 }
 0x144   :  { %v970_v1 = vadd.f32 %v7963_v33, %v7917_v53  ;;  %v1046_v42 = vpop.f32.mrf.mxu1  ;;  %5449 = vmatpush2.bf16.msra.mxu1 %v7348_v55 }
 0x145   :  { %v7965_v49 = vpop.f32.mrf.mxu0  ;;  %5450 = vmatprep.subr.bf16.mxu1 %v7341_v46 }
 0x146   :  { %v9761_v37 = vadd.f32 %v1041_v22, %v970_v1  ;;  %v7966_v4 = vadd.f32 %v7965_v49, %v7964_v38  ;;  %v8327_v51 = vpop.f32.mrf.mxu1 }
 0x147   :  { %v7967_v2 = vpop.f32.mrf.mxu0 }
 0x148   :  { %v975_v52 = vadd.f32 %v7966_v4, %v9595_v3  ;;  %v1049_v17 = vpop.f32.mrf.mxu1  ;;  %5451 = vmatpush2.bf16.msra.mxu1 %v7340_v41 }
 0x149   :  { %v7968_v8 = vpop.f32.mrf.mxu0  ;;  %5502 = vmatprep.subr.bf16.mxu1 %v7589_v19 }
 0x14a   :  { %v9778_v10 = vadd.f32 %v1046_v42, %v975_v52  ;;  %v7969_v14 = vadd.f32 %v7968_v8, %v7967_v2  ;;  %v8328_v59 = vpop.f32.mrf.mxu1 }
 0x14b   :  { %v7970_v18 = vpop.f32.mrf.mxu0 }
 0x14c   :  { %v978_v21 = vadd.f32 %v7969_v14, %v7923_v13  ;;  %v1054_v24 = vpop.f32.mrf.mxu1 }
 0x14d   :  { %v7971_v26 = vpop.f32.mrf.mxu0 }
 0x14e   :  { %v9786_v6 = vadd.f32 %v1049_v17, %v978_v21  ;;  %v7972_v15 = vadd.f32 %v7971_v26, %v7970_v18  ;;  %v8331_v28 = vpop.f32.mrf.mxu1 }
 0x14f   :  { %v7973_v22 = vpop.f32.mrf.mxu0 }
 0x150   :  { %v983_v29 = vadd.f32 %v7972_v15, %v9631_v54  ;;  %v1057_v39 = vpop.f32.mrf.mxu1 }
 0x151   :  { %v7974_v56 = vpop.f32.mrf.mxu0 }
 0x152   :  { %v9793_v33 = vadd.f32 %v1054_v24, %v983_v29  ;;  %v7975_v47 = vadd.f32 %v7974_v56, %v7973_v22  ;;  %v8332_v55 = vpop.f32.mrf.mxu1 }
 0x153   :  { %v7976_v38 = vpop.f32.mrf.mxu0 }
 0x154   :  { %11796 = vst [vmem:[#allocation7_spill] sm:$0xff] %v9793_v33  ;;  %v986_v61 = vadd.f32 %v7975_v47, %v7929_v57  ;;  %v1062_v1 = vpop.f32.mrf.mxu1 }
 0x155   :  { %v7977_v30 = vpop.f32.mrf.mxu0 }
 0x156   :  { %v9797_v54 = vadd.f32 %v1057_v39, %v986_v61  ;;  %v7978_v48 = vadd.f32 %v7977_v30, %v7976_v38  ;;  %v8335_v49 = vpop.f32.mrf.mxu1 }
 0x157   :  { %v7979_v46 = vpop.f32.mrf.mxu0 }
 0x158   :  { %11797 = vst [vmem:[#allocation8_spill] sm:$0xff] %v9797_v54  ;;  %v991_v4 = vadd.f32 %v7978_v48, %v9667_v7  ;;  %v1065_v51 = vpop.f32.mrf.mxu1 }
 0x159   :  { %v7980_v36 = vpop.f32.mrf.mxu0 }
 0x15a   :  { %v9802_v41 = vadd.f32 %v1062_v1, %v991_v4  ;;  %v8336_v2 = vpop.f32.mrf.mxu1 }
 0x15b   :  { %v8007_v52 = vpop.f32.mrf.mxu0 }
 0x15c   :  { %11798 = vst [vmem:[#allocation9_spill] sm:$0xff] %v9802_v41  ;;  %v8053_v17 = vpop.f32.mrf.mxu1 }
 0x15d   :  { %v8008_v13 = vpop.f32.mrf.mxu0 }
 0x15e   :  { %v8009_v14 = vadd.f32 %v8008_v13, %v8007_v52  ;;  %v8054_v59 = vpop.f32.mrf.mxu1 }
 0x15f   :  { %v8055_v18 = vadd.f32 %v8054_v59, %v8053_v17  ;;  %v8010_v19 = vpop.f32.mrf.mxu0 }
 0x160   :  { %v8056_v21 = vpop.f32.mrf.mxu1 }
 0x161   :  { %v8011_v7 = vpop.f32.mrf.mxu0  ;;  %v9806_v24 = vadd.f32 %v8055_v18, %v8009_v14 }
 0x162   :  { %v8012_v26 = vadd.f32 %v8011_v7, %v8010_v19  ;;  %v8057_v15 = vpop.f32.mrf.mxu1 }
 0x163   :  { %v8058_v28 = vadd.f32 %v8057_v15, %v8056_v21  ;;  %v8013_v22 = vpop.f32.mrf.mxu0 }
 0x164   :  { %v8059_v29 = vpop.f32.mrf.mxu1 }
 0x165   :  { %v8014_v39 = vpop.f32.mrf.mxu0  ;;  %v9808_v56 = vadd.f32 %v8058_v28, %v8012_v26 }
 0x166   :  { %v8015_v57 = vadd.f32 %v8014_v39, %v8013_v22  ;;  %v8060_v47 = vpop.f32.mrf.mxu1 }
 0x167   :  { %v8061_v55 = vadd.f32 %v8060_v47, %v8059_v29  ;;  %v8016_v38 = vpop.f32.mrf.mxu0 }
 0x168   :  { %v8062_v61 = vpop.f32.mrf.mxu1 }
 0x169   :  { %v8017_v1 = vpop.f32.mrf.mxu0  ;;  %v9810_v30 = vadd.f32 %v8061_v55, %v8015_v57 }
 0x16a   :  { %v8018_v48 = vadd.f32 %v8017_v1, %v8016_v38  ;;  %v8063_v49 = vpop.f32.mrf.mxu1 }
 0x16b   :  { %v8064_v46 = vadd.f32 %v8063_v49, %v8062_v61  ;;  %v8019_v4 = vpop.f32.mrf.mxu0 }
 0x16c   :  { %v8065_v51 = vpop.f32.mrf.mxu1 }
 0x16d   :  { %v8020_v36 = vpop.f32.mrf.mxu0  ;;  %v9812_v2 = vadd.f32 %v8064_v46, %v8018_v48 }
 0x16e   :  { %v8021_v52 = vadd.f32 %v8020_v36, %v8019_v4  ;;  %v8066_v17 = vpop.f32.mrf.mxu1 }
 0x16f   :  { %v8067_v13 = vadd.f32 %v8066_v17, %v8065_v51  ;;  %v8022_v14 = vpop.f32.mrf.mxu0 }
 0x170   :  { %v8068_v59 = vpop.f32.mrf.mxu1 }
 0x171   :  { %v8023_v18 = vpop.f32.mrf.mxu0  ;;  %v1360_v19 = vadd.f32 %v8067_v13, %v8021_v52 }
 0x172   :  { %v8024_v21 = vadd.f32 %v8023_v18, %v8022_v14  ;;  %v8069_v7 = vpop.f32.mrf.mxu1 }
 0x173   :  { %v8070_v26 = vadd.f32 %v8069_v7, %v8068_v59  ;;  %v8025_v15 = vpop.f32.mrf.mxu0 }
 0x174   :  { %v8071_v28 = vpop.f32.mrf.mxu1 }
 0x175   :  { %v8026_v22 = vpop.f32.mrf.mxu0  ;;  %v9814_v29 = vadd.f32 %v8070_v26, %v8024_v21 }
 0x176   :  { %v8027_v39 = vadd.f32 %v8026_v22, %v8025_v15  ;;  %v8072_v57 = vpop.f32.mrf.mxu1 }
 0x177   :  { %v8073_v47 = vadd.f32 %v8072_v57, %v8071_v28  ;;  %v8028_v55 = vpop.f32.mrf.mxu0 }
 0x178   :  { %v8074_v38 = vpop.f32.mrf.mxu1 }
 0x179   :  { %v8029_v61 = vpop.f32.mrf.mxu0  ;;  %v1368_v1 = vadd.f32 %v8073_v47, %v8027_v39 }
 0x17a   :  { %v8030_v48 = vadd.f32 %v8029_v61, %v8028_v55  ;;  %v8075_v49 = vpop.f32.mrf.mxu1 }
 0x17b   :  { %v8076_v46 = vadd.f32 %v8075_v49, %v8074_v38  ;;  %v8031_v4 = vpop.f32.mrf.mxu0 }
 0x17c   :  { %v8077_v51 = vpop.f32.mrf.mxu1 }
 0x17d   :  { %v8032_v36 = vpop.f32.mrf.mxu0  ;;  %v9816_v52 = vadd.f32 %v8076_v46, %v8030_v48 }
 0x17e   :  { %v8033_v17 = vadd.f32 %v8032_v36, %v8031_v4  ;;  %v8078_v13 = vpop.f32.mrf.mxu1 }
 0x17f   :  { %11799 = vst [vmem:[#allocation10_spill] sm:$0xff] %v9816_v52  ;;  %v8079_v14 = vadd.f32 %v8078_v13, %v8077_v51  ;;  %v8034_v59 = vpop.f32.mrf.mxu0 }
 0x180   :  { %v8080_v18 = vpop.f32.mrf.mxu1 }
 0x181   :  { %v8035_v21 = vpop.f32.mrf.mxu0  ;;  %v1376_v7 = vadd.f32 %v8079_v14, %v8033_v17 }
 0x182   :  { %v8081_v26 = vpop.f32.mrf.mxu1 }
 0x183   :  { %v1415_v15 = vpop.f32.mrf.mxu0 }
 0x184   :  { %v8108_v28 = vpop.f32.mrf.mxu1 }
 0x185   :  { %v8347_v22 = vpop.f32.mrf.mxu0 }
 0x186   :  { %v8109_v39 = vpop.f32.mrf.mxu1 }
 0x187   :  { %v1418_v57 = vpop.f32.mrf.mxu0  ;;  %v8110_v44 = vadd.f32 %v8109_v39, %v8108_v28 }
 0x188   :  { %v8111_v47 = vpop.f32.mrf.mxu1 }
 0x189   :  { %v8348_v55 = vpop.f32.mrf.mxu0 }
 0x18a   :  { %v8112_v38 = vpop.f32.mrf.mxu1 }
 0x18b   :  { %v9818_v61 = vpop.f32.mrf.mxu0 }
 0x18c   :  { %v8114_v48 = vpop.f32.mrf.mxu1 }
 0x18d   :  { %v8351_v49 = vpop.f32.mrf.mxu0 }
 0x18e   :  { %v8115_v46 = vpop.f32.mrf.mxu1 }
 0x18f   :  { %v9820_v4 = vpop.f32.mrf.mxu0  ;;  %v8116_v28 = vadd.f32 %v8115_v46, %v8114_v48 }
 0x190   :  { %v9822_v51 = vpop.f32.mrf.mxu1 }
 0x191   :  { %v8352_v36 = vpop.f32.mrf.mxu0 }
 0x192   :  { %v9824_v17 = vpop.f32.mrf.mxu1 }
 0x193   :  { %v1431_v13 = vpop.f32.mrf.mxu0 }
 0x194   :  { %v9826_v14 = vadd.f32 %v1431_v13, %v1360_v19  ;;  %v8120_v59 = vpop.f32.mrf.mxu1 }
 0x195   :  { %v8355_v18 = vpop.f32.mrf.mxu0 }
 0x196   :  { %v8121_v21 = vpop.f32.mrf.mxu1 }
 0x197   :  { %v9828_v26 = vadd.f32 %v8121_v21, %v8120_v59  ;;  %v9830_v22 = vpop.f32.mrf.mxu0 }
 0x198   :  { %v9832_v55 = vpop.f32.mrf.mxu1 }
 0x199   :  { %v8356_v49 = vpop.f32.mrf.mxu0 }
 0x19a   :  { %v9834_v8 = vpop.f32.mrf.mxu1 }
 0x19b   :  { %v1439_v62 = vpop.f32.mrf.mxu0 }
 0x19c   :  { %v9836_v42 = vadd.f32 %v1439_v62, %v1368_v1  ;;  %v8126_v36 = vpop.f32.mrf.mxu1 }
 0x19d   :  { %v8359_v3 = vpop.f32.mrf.mxu0 }
 0x19e   :  { %v8127_v53 = vpop.f32.mrf.mxu1 }
 0x19f   :  { %v9838_v19 = vadd.f32 %v8127_v53, %v8126_v36  ;;  %v9840_v13 = vpop.f32.mrf.mxu0 }
 0x1a0   :  { %11800 = vst [vmem:[#allocation11_spill] sm:$0xff] %v9840_v13  ;;  %v9842_v18 = vpop.f32.mrf.mxu1 }
 0x1a1   :  { %v8360_v59 = vpop.f32.mrf.mxu0 }
 0x1a2   :  { %v9844_v21 = vpop.f32.mrf.mxu1 }
 0x1a3   :  { %v1447_v25 = vpop.f32.mrf.mxu0 }
 0x1a4   :  { %v9846_v34 = vadd.f32 %v1447_v25, %v1376_v7  ;;  %v8132_v49 = vpop.f32.mrf.mxu1  ;;  %v1416_v7 = vadd.f32 %v1415_v15, %v9806_v24 }
 0x1a5   :  { %v8363_v40 = vpop.f32.mrf.mxu0 }
 0x1a6   :  { %11801 = vst [vmem:[#allocation12_spill] sm:$0xff] %v9846_v34  ;;  %v8133_v35 = vpop.f32.mrf.mxu1  ;;  %v8113_v40 = vadd.f32 %v8112_v38, %v8111_v47 }
 0x1a7   :  { %v9848_v62 = vadd.f32 %v8133_v35, %v8132_v49  ;;  %v1450_v1 = vpop.f32.mrf.mxu0 }
 0x1a8   :  { %v8135_v3 = vpop.f32.mrf.mxu1 }
 0x1a9   :  { %11802 = vst [vmem:[#allocation13_spill] sm:$0xff] %v9848_v62  ;;  %v8364_v27 = vpop.f32.mrf.mxu0  ;;  %v1419_v62 = vadd.f32 %v1418_v57, %v9808_v56  ;;  %v1424_v56 = vadd.f32 %v9818_v61, %v9810_v30  ;;  %v1427_v30 = vadd.f32 %v9820_v4, %v9812_v2 }
 0x1aa   :  { %v8136_v53 = vpop.f32.mrf.mxu1 }
 0x1ab   :  { %v8154_v36 = vpop.f32.mrf.mxu0 }
 0x1ac   :  { %v1791_v11 = vpop.f32.mrf.mxu1 }
 0x1ad   :  { %v8155_v41 = vpop.f32.mrf.mxu0 }
 0x1ae   :  { %v8156_v54 = vadd.f32 %v8155_v41, %v8154_v36  ;;  %v8375_v59 = vpop.f32.mrf.mxu1  ;;  %v11803_v41 = vmax.f32 %v9508_v50, %v9708_v0  ;;  %v8119_v50 = vadd.f32 %v9824_v17, %v9822_v51  ;;  %v11804_v0 = vmax.f32 %v9526_v9, %v9724_v16 }
 0x1af   :  { %v8157_v58 = vpop.f32.mrf.mxu0  ;;  %v11805_v51 = vmax.f32 %v9545_v23, %v9747_v32 }
 0x1b0   :  { %v1720_v13 = vadd.f32 %v8156_v54, %v8110_v44  ;;  %v1794_v52 = vpop.f32.mrf.mxu1  ;;  %v9858_v54 = vld [vmem:[%s11783_s2] ss:$0 sm:$0xff] }
 0x1b1   :  { %v8158_v25 = vpop.f32.mrf.mxu0 }
 0x1b2   :  { %v1792_v34 = vadd.f32 %v1791_v11, %v1720_v13  ;;  %v8159_v35 = vadd.f32 %v8158_v25, %v8157_v58  ;;  %v8376_v49 = vpop.f32.mrf.mxu1 }
 0x1b3   :  { %v8160_v1 = vpop.f32.mrf.mxu0  ;;  %v2185_v49 = vld [vmem:[%s11784_s3 + $0x980] sm:$0xff] }
 0x1b4   :  { %v1829_v3 = vmax.f32 %v1416_v7, %v1792_v34  ;;  %v1723_v27 = vadd.f32 %v8159_v35, %v8113_v40  ;;  %v1799_v53 = vpop.f32.mrf.mxu1 }
 0x1b5   :  { %v8161_v33 = vpop.f32.mrf.mxu0 }
 0x1b6   :  { %v1838_v44 = vmax.f32 %v11803_v41, %v1829_v3  ;;  %v1795_v11 = vadd.f32 %v1794_v52, %v1723_v27  ;;  %v8162_v58 = vadd.f32 %v8161_v33, %v8160_v1  ;;  %v8379_v24 = vpop.f32.mrf.mxu1  ;;  %v2189_v1 = vld [vmem:[%s11784_s3 + $0x9a0] sm:$0xff] }
 0x1b7   :  { %v8163_v15 = vpop.f32.mrf.mxu0  ;;  %v7453_v41 = vcombine.high %v2185_v49, %v2189_v1 }
 0x1b8   :  { %v1830_v34 = vmax.f32 %v1419_v62, %v1795_v11  ;;  %v1728_v39 = vadd.f32 %v8162_v58, %v8116_v28  ;;  %v1802_v47 = vpop.f32.mrf.mxu1  ;;  %v1854_v57 = vadd.f32 %v9858_v54, %v1838_v44  ;;  %v8125_v44 = vadd.f32 %v9834_v8, %v9832_v55 }
 0x1b9   :  { %v8164_v38 = vpop.f32.mrf.mxu0  ;;  %v11806_v11 = vmax.f32 %v9562_v60, %v9761_v37  ;;  %v11807_v60 = vcombine.low %v9738_v31, %v9745_v63  ;;  %v7452_v55 = vcombine.low %v2185_v49, %v2189_v1  ;;  %v11808_v31 = vmax.f32 %v9581_v43, %v9778_v10 }
 0x1ba   :  { %v1839_v48 = vmax.f32 %v11804_v0, %v1830_v34  ;;  %v1800_v52 = vadd.f32 %v1799_v53, %v1728_v39  ;;  %v8165_v33 = vadd.f32 %v8164_v38, %v8163_v15  ;;  %v8380_v46 = vpop.f32.mrf.mxu1  ;;  %v1863_v61 = vmax.f32 %v1854_v57, 0.0  ;;  %v2177_v34 = vld [vmem:[%s11784_s3 + $0x940] sm:$0xff] }
 0x1bb   :  { %v8166_v13 = vpop.f32.mrf.mxu0  ;;  %v2181_v39 = vld [vmem:[%s11784_s3 + $0x960] sm:$0xff]  ;;  %v1435_v38 = vadd.f32 %v9830_v22, %v9814_v29 }
 0x1bc   :  { %v1831_v62 = vmax.f32 %v1424_v56, %v1800_v52  ;;  %v1731_v36 = vadd.f32 %v8165_v33, %v8119_v50  ;;  %v1807_v59 = vpop.f32.mrf.mxu1  ;;  %v1855_v25 = vadd.f32 %v9858_v54, %v1839_v48  ;;  %v9883_v32 = vpack.c.bf16 %v1863_v61, %v1863_v61  ;;  %v2173_v29 = vld [vmem:[%s11784_s3 + $0x920] sm:$0xff] }
 0x1bd   :  { %v8167_v7 = vpop.f32.mrf.mxu0  ;;  %v7445_v48 = vcombine.high %v2177_v34, %v2181_v39  ;;  %v2313_v22 = vld [vmem:[%s11784_s3 + $0xd80] sm:$0xff] }
 0x1be   :  { %v1840_v17 = vmax.f32 %v11805_v51, %v1831_v62  ;;  %v1803_v9 = vadd.f32 %v1802_v47, %v1731_v36  ;;  %v8168_v16 = vadd.f32 %v8167_v7, %v8166_v13  ;;  %v1864_v40 = vmax.f32 %v1855_v25, 0.0  ;;  %v8383_v35 = vpop.f32.mrf.mxu1  ;;  %v2317_v62 = vld [vmem:[%s11784_s3 + $0xda0] sm:$0xff] }
 0x1bf   :  { %v8169_v3 = vpop.f32.mrf.mxu0 }
 0x1c0   :  { %v1832_v2 = vmax.f32 %v1427_v30, %v1803_v9  ;;  %v1736_v4 = vadd.f32 %v8168_v16, %v9828_v26  ;;  %v9881_v27 = vpack.c.bf16 %v1864_v40, %v1864_v40  ;;  %v1810_v23 = vpop.f32.mrf.mxu1  ;;  %v1856_v53 = vadd.f32 %v9858_v54, %v1840_v17  ;;  %v2161_v16 = vld [vmem:[%s11784_s3 + $0x8c0] sm:$0xff] }
 0x1c1   :  { %v8170_v28 = vpop.f32.mrf.mxu0  ;;  %v7581_v9 = vcombine.high %v2313_v22, %v2317_v62  ;;  %v11809_v40 = vmax.f32 %v9598_v45, %v9786_v6  ;;  %v8131_v45 = vadd.f32 %v9844_v21, %v9842_v18 }
 0x1c2   :  { %v1841_v58 = vmax.f32 %v11806_v11, %v1832_v2  ;;  %v8171_v24 = vadd.f32 %v8170_v28, %v8169_v3  ;;  %v1808_v15 = vadd.f32 %v1807_v59, %v1736_v4  ;;  %5411 = vmatprep.mubr.bf16.mxu0 %v9881_v27  ;;  %v8384_v26 = vpop.f32.mrf.mxu1  ;;  %v1865_v50 = vmax.f32 %v1856_v53, 0.0  ;;  %v2165_v3 = vld [vmem:[%s11784_s3 + $0x8e0] sm:$0xff] }
 0x1c3   :  { %v8172_v47 = vpop.f32.mrf.mxu0  ;;  %5412 = vmatmul.mubr.bf16.vlgmr.msra.gmra.mxu0 %v9883_v32  ;;  %v7444_v59 = vcombine.low %v2177_v34, %v2181_v39  ;;  %v2305_v2 = vld [vmem:[%s11784_s3 + $0xd40] sm:$0xff]  ;;  %v7429_v18 = vcombine.high %v2161_v16, %v2165_v3 }
 0x1c4   :  { %v1833_v8 = vmax.f32 %v9826_v14, %v1808_v15  ;;  %5462 = vmatpush1.bf16.msra.mxu0 %v11807_v60  ;;  %v1739_v37 = vadd.f32 %v8171_v24, %v8125_v44  ;;  %v1815_v56 = vpop.f32.mrf.mxu1  ;;  %v1857_v57 = vadd.f32 %v9858_v54, %v1841_v58  ;;  %v2169_v14 = vld [vmem:[%s11784_s3 + $0x900] sm:$0xff]  ;;  %v9927_v7 = vpack.c.bf16 %v1865_v50, %v1865_v50 }
 0x1c5   :  { %v8173_v0 = vpop.f32.mrf.mxu0  ;;  %5463 = vmatprep.subr.bf16.mxu0 %v7453_v41  ;;  %v7437_v17 = vcombine.high %v2169_v14, %v2173_v29  ;;  %v2309_v4 = vld [vmem:[%s11784_s3 + $0xd60] sm:$0xff]  ;;  %v11810_v41 = vcombine.low %v9769_v5, %v9774_v12  ;;  %v7580_v44 = vcombine.low %v2313_v22, %v2317_v62 }
 0x1c6   :  { %v1842_v63 = vmax.f32 %v11808_v31, %v1833_v8  ;;  %v8174_v52 = vadd.f32 %v8173_v0, %v8172_v47  ;;  %v1811_v33 = vadd.f32 %v1810_v23, %v1739_v37  ;;  %v1866_v46 = vmax.f32 %v1857_v57, 0.0  ;;  %v8387_v13 = vpop.f32.mrf.mxu1  ;;  %v2153_v15 = vld [vmem:[%s11784_s3 + $0x880] sm:$0xff]  ;;  %v11813_v37 = vld [vmem:[#allocation10_spill] sm:$0xff] }
 0x1c7   :  { %v8175_v36 = vpop.f32.mrf.mxu0  ;;  %v7436_v23 = vcombine.low %v2169_v14, %v2173_v29  ;;  %v7573_v21 = vcombine.high %v2305_v2, %v2309_v4  ;;  %v2157_v5 = vld [vmem:[%s11784_s3 + $0x8a0] sm:$0xff] }
 0x1c8   :  { %v9922_v43 = vadd.f32 %v9858_v54, %v1842_v63  ;;  %v1834_v10 = vmax.f32 %v1435_v38, %v1811_v33  ;;  %5464 = vmatpush1.bf16.msra.mxu0 %v7452_v55  ;;  %v1744_v25 = vadd.f32 %v8174_v52, %v9838_v19  ;;  %v9925_v30 = vpack.c.bf16 %v1866_v46, %v1866_v46  ;;  %v1818_v61 = vpop.f32.mrf.mxu1  ;;  %v2297_v12 = vld [vmem:[%s11784_s3 + $0xd00] sm:$0xff]  ;;  %v11814_v55 = vld [vmem:[#allocation11_spill] sm:$0xff] }
 0x1c9   :  { %v8176_v51 = vpop.f32.mrf.mxu0  ;;  %5465 = vmatprep.subr.bf16.mxu0 %v7445_v48  ;;  %v2301_v8 = vld [vmem:[%s11784_s3 + $0xd20] sm:$0xff]  ;;  %v7572_v38 = vcombine.low %v2305_v2, %v2309_v4  ;;  %v7421_v33 = vcombine.high %v2153_v15, %v2157_v5  ;;  %v11820_v2 = vld [vmem:[#allocation6_spill] sm:$0xff] }
 0x1ca   :  { %v1843_v35 = vmax.f32 %v11809_v40, %v1834_v10  ;;  %v8177_v49 = vadd.f32 %v8176_v51, %v8175_v36  ;;  %v1816_v1 = vadd.f32 %v1815_v56, %v1744_v25  ;;  %5452 = vmatprep.mubr.bf16.mxu1 %v9925_v30  ;;  %v8388_v19 = vpop.f32.mrf.mxu1  ;;  %v1443_v56 = vadd.f32 %v11814_v55, %v11813_v37  ;;  %v11815_v48 = vld [vmem:[#allocation13_spill] sm:$0xff] }
 0x1cb   :  { %v8178_v6 = vpop.f32.mrf.mxu0  ;;  %5453 = vmatmul.mubr.bf16.vlgmr.msra.gmra.mxu1 %v9927_v7  ;;  %v7565_v46 = vcombine.high %v2297_v12, %v2301_v8  ;;  %v2145_v13 = vld [vmem:[%s11784_s3 + $0x840] sm:$0xff]  ;;  %v7420_v40 = vcombine.low %v2153_v15, %v2157_v5 }
 0x1cc   :  { %v1859_v53 = vadd.f32 %v9858_v54, %v1843_v35  ;;  %v1835_v28 = vmax.f32 %v9836_v42, %v1816_v1  ;;  %5466 = vmatpush1.bf16.msra.mxu0 %v7444_v59  ;;  %5503 = vmatpush1.bf16.msra.mxu1 %v11810_v41  ;;  %v1823_v11 = vpop.f32.mrf.mxu1  ;;  %v1747_v24 = vadd.f32 %v8177_v49, %v8131_v45  ;;  %v11811_v42 = vld [vmem:[#allocation7_spill] sm:$0xff]  ;;  %v2149_v62 = vld [vmem:[%s11784_s3 + $0x860] sm:$0xff] }
 0x1cd   :  { %v8179_v58 = vpop.f32.mrf.mxu0  ;;  %5467 = vmatprep.subr.bf16.mxu0 %v7437_v17  ;;  %5504 = vmatprep.subr.bf16.mxu1 %v7581_v9  ;;  %v11812_v34 = vmax.f32 %v9617_v20, %v11811_v42  ;;  %v7428_v20 = vcombine.low %v2161_v16, %v2165_v3  ;;  %v2289_v36 = vld [vmem:[%s11784_s3 + $0xcc0] sm:$0xff]  ;;  %v7564_v35 = vcombine.low %v2297_v12, %v2301_v8 }
 0x1ce   :  { %v1868_v26 = vmax.f32 %v1859_v53, 0.0  ;;  %v8180_v47 = vadd.f32 %v8179_v58, %v8178_v6  ;;  %v8391_v60 = vpop.f32.mrf.mxu1  ;;  %v1819_v57 = vadd.f32 %v1818_v61, %v1747_v24  ;;  %v2293_v59 = vld [vmem:[%s11784_s3 + $0xce0] sm:$0xff]  ;;  %v7413_v1 = vcombine.high %v2145_v13, %v2149_v62 }
 0x1cf   :  { %v1844_v39 = vmax.f32 %v11812_v34, %v1835_v28  ;;  %v8181_v50 = vpop.f32.mrf.mxu0  ;;  %v11816_v25 = vld [vmem:[#allocation5_spill] sm:$0xff]  ;;  %v11817_v61 = vld [vmem:[#allocation8_spill] sm:$0xff]  ;;  %v7557_v19 = vcombine.high %v2289_v36, %v2293_v59  ;;  %v7556_v58 = vcombine.low %v2289_v36, %v2293_v59 }
 0x1d0   :  { %5468 = vmatpush1.bf16.msra.mxu0 %v7436_v23  ;;  %5505 = vmatpush1.bf16.msra.mxu1 %v7580_v44  ;;  %v1752_v14 = vadd.f32 %v8180_v47, %v11815_v48  ;;  %v9974_v31 = vpack.c.bf16 %v1868_v26, %v1868_v26  ;;  %v1826_v63 = vpop.f32.mrf.mxu1  ;;  %v1836_v52 = vmax.f32 %v1443_v56, %v1819_v57  ;;  %v11819_v9 = vld [vmem:[#allocation12_spill] sm:$0xff]  ;;  %v11821_v4 = vld [vmem:[#allocation9_spill] sm:$0xff] }
 0x1d1   :  { %v9971_v0 = vadd.f32 %v9858_v54, %v1844_v39  ;;  %5469 = vmatprep.subr.bf16.mxu0 %v7429_v18  ;;  %5506 = vmatprep.subr.bf16.mxu1 %v7573_v21  ;;  %v8182_v29 = vpop.f32.mrf.mxu0  ;;  %v11818_v51 = vmax.f32 %v11816_v25, %v11817_v61  ;;  %v2137_v3 = vld [vmem:[%s11784_s3 + $0x800] sm:$0xff]  ;;  %v11822_v45 = vmax.f32 %v11820_v2, %v11821_v4 }
 0x1d2   :  { %v1824_v22 = vadd.f32 %v1823_v11, %v1752_v14  ;;  %5493 = vmatprep.mubr.bf16.mxu0 %v9974_v31  ;;  %v8392_v10 = vpop.f32.mrf.mxu1  ;;  %v2141_v23 = vld [vmem:[%s11784_s3 + $0x820] sm:$0xff]  ;;  %v7412_v11 = vcombine.low %v2145_v13, %v2149_v62 }
 0x1d3   :  { %v1845_v17 = vmax.f32 %v11818_v51, %v1836_v52  ;;  %v2281_v53 = vld [vmem:[%s11784_s3 + $0xc80] sm:$0xff]  ;;  %v7405_v18 = vcombine.high %v2137_v3, %v2141_v23  ;;  %v7404_v34 = vcombine.low %v2137_v3, %v2141_v23 }
 0x1d4   :  { %v1837_v16 = vmax.f32 %v11819_v9, %v1824_v22  ;;  %5470 = vmatpush1.bf16.msra.mxu0 %v7428_v20  ;;  %5507 = vmatpush1.bf16.msra.mxu1 %v7572_v38  ;;  %v2285_v28 = vld [vmem:[%s11784_s3 + $0xca0] sm:$0xff] }
 0x1d5   :  { %v1861_v49 = vadd.f32 %v9858_v54, %v1845_v17  ;;  %5471 = vmatprep.subr.bf16.mxu0 %v7421_v33  ;;  %5508 = vmatprep.subr.bf16.mxu1 %v7565_v46  ;;  %v7549_v21 = vcombine.high %v2281_v53, %v2285_v28  ;;  %v2257_v15 = vld [vmem:[%s11784_s3 + $0xbc0] sm:$0xff]  ;;  %v7548_v39 = vcombine.low %v2281_v53, %v2285_v28 }
 0x1d6   :  { %v1846_v6 = vmax.f32 %v11822_v45, %v1837_v16  ;;  %v2261_v26 = vld [vmem:[%s11784_s3 + $0xbe0] sm:$0xff] }
 0x1d7   :  { %v1870_v41 = vmax.f32 %v1861_v49, 0.0  ;;  %v2277_v42 = vld [vmem:[%s11784_s3 + $0xc60] sm:$0xff]  ;;  %v7525_v47 = vcombine.high %v2257_v15, %v2261_v26  ;;  %v7524_v55 = vcombine.low %v2257_v15, %v2261_v26 }
 0x1d8   :  { %v10010_v44 = vadd.f32 %v9858_v54, %v1846_v6  ;;  %5472 = vmatpush1.bf16.msra.mxu0 %v7420_v40  ;;  %5509 = vmatpush1.bf16.msra.mxu1 %v7564_v35  ;;  %v2273_v54 = vld [vmem:[%s11784_s3 + $0xc40] sm:$0xff] }
 0x1d9   :  { %5473 = vmatprep.subr.bf16.mxu0 %v7413_v1  ;;  %5510 = vmatprep.subr.bf16.mxu1 %v7557_v19  ;;  %v10012_v24 = vpack.c.bf16 %v1870_v41, %v1870_v41  ;;  %v7541_v5 = vcombine.high %v2273_v54, %v2277_v42  ;;  %v2249_v12 = vld [vmem:[%s11784_s3 + $0xb80] sm:$0xff]  ;;  %v7540_v56 = vcombine.low %v2273_v54, %v2277_v42 }
 0x1da   :  { %v2253_v8 = vld [vmem:[%s11784_s3 + $0xba0] sm:$0xff] }
 0x1db   :  { %5534 = vmatprep.mubr.bf16.mxu1 %v10012_v24  ;;  %v2265_v60 = vld [vmem:[%s11784_s3 + $0xc00] sm:$0xff]  ;;  %v7517_v57 = vcombine.high %v2249_v12, %v2253_v8  ;;  %v7516_v63 = vcombine.low %v2249_v12, %v2253_v8 }
 0x1dc   :  { %5474 = vmatpush1.bf16.msra.mxu0 %v7412_v11  ;;  %5511 = vmatpush1.bf16.msra.mxu1 %v7556_v58  ;;  %v2269_v37 = vld [vmem:[%s11784_s3 + $0xc20] sm:$0xff] }
 0x1dd   :  { %5475 = vmatprep.subr.bf16.mxu0 %v7405_v18  ;;  %5512 = vmatprep.subr.bf16.mxu1 %v7549_v21  ;;  %v7533_v20 = vcombine.high %v2265_v60, %v2269_v37  ;;  %v2241_v38 = vld [vmem:[%s11784_s3 + $0xb40] sm:$0xff]  ;;  %v7532_v52 = vcombine.low %v2265_v60, %v2269_v37 }
 0x1de   :  { %v2245_v50 = vld [vmem:[%s11784_s3 + $0xb60] sm:$0xff] }
 0x1df   :  { %v2385_v48 = vld [vmem:[%s11784_s3 + $0xfc0] sm:$0xff]  ;;  %v7509_v33 = vcombine.high %v2241_v38, %v2245_v50  ;;  %v7508_v36 = vcombine.low %v2241_v38, %v2245_v50 }
 0x1e0   :  { %5476 = vmatpush1.bf16.msra.mxu0 %v7404_v34  ;;  %5513 = vmatpush1.bf16.msra.mxu1 %v7548_v39  ;;  %v2389_v14 = vld [vmem:[%s11784_s3 + $0xfe0] sm:$0xff] }
 0x1e1   :  { %5477 = vmatprep.subr.bf16.mxu0 %v7525_v47  ;;  %5514 = vmatprep.subr.bf16.mxu1 %v7541_v5  ;;  %v7653_v46 = vcombine.high %v2385_v48, %v2389_v14  ;;  %v2233_v13 = vld [vmem:[%s11784_s3 + $0xb00] sm:$0xff]  ;;  %v7652_v59 = vcombine.low %v2385_v48, %v2389_v14 }
 0x1e2   :  { %v2237_v29 = vld [vmem:[%s11784_s3 + $0xb20] sm:$0xff] }
 0x1e3   :  { %v2377_v22 = vld [vmem:[%s11784_s3 + $0xf80] sm:$0xff]  ;;  %v7501_v10 = vcombine.high %v2233_v13, %v2237_v29  ;;  %v7500_v16 = vcombine.low %v2233_v13, %v2237_v29 }
 0x1e4   :  { %5478 = vmatpush2.bf16.msra.mxu0 %v7524_v55  ;;  %5515 = vmatpush1.bf16.msra.mxu1 %v7540_v56  ;;  %v2381_v62 = vld [vmem:[%s11784_s3 + $0xfa0] sm:$0xff] }
 0x1e5   :  { %5479 = vmatprep.subr.bf16.mxu0 %v7517_v57  ;;  %5516 = vmatprep.subr.bf16.mxu1 %v7533_v20  ;;  %v7645_v25 = vcombine.high %v2377_v22, %v2381_v62  ;;  %v2225_v61 = vld [vmem:[%s11784_s3 + $0xac0] sm:$0xff]  ;;  %v7644_v40 = vcombine.low %v2377_v22, %v2381_v62  ;;  %v1867_v20 = vmax.f32 %v9922_v43, 0.0 }
 0x1e6   :  { %v2229_v51 = vld [vmem:[%s11784_s3 + $0xae0] sm:$0xff] }
 0x1e7   :  { %v2369_v17 = vld [vmem:[%s11784_s3 + $0xf40] sm:$0xff]  ;;  %v7493_v35 = vcombine.high %v2225_v61, %v2229_v51  ;;  %v7492_v4 = vcombine.low %v2225_v61, %v2229_v51  ;;  %v1869_v61 = vmax.f32 %v9971_v0, 0.0  ;;  %v1934_v0 = vld [vmem:[%s11784_s3 + $0x1a8] sm:$0xff] }
 0x1e8   :  { %5480 = vmatpush2.bf16.msra.mxu0 %v7516_v63  ;;  %5517 = vmatpush1.bf16.msra.mxu1 %v7532_v52  ;;  %v2373_v9 = vld [vmem:[%s11784_s3 + $0xf60] sm:$0xff] }
 0x1e9   :  { %5481 = vmatprep.subr.bf16.mxu0 %v7509_v33  ;;  %5518 = vmatprep.subr.bf16.mxu1 %v7653_v46  ;;  %v7637_v49 = vcombine.high %v2369_v17, %v2373_v9  ;;  %v2217_v1 = vld [vmem:[%s11784_s3 + $0xa80] sm:$0xff]  ;;  %v7636_v45 = vcombine.low %v2369_v17, %v2373_v9  ;;  %v10136_v46 = vpack.c.bf16 %v1867_v20, %v1867_v20  ;;  %v1898_v20 = vld [vmem:[%s11784_s3 + $0x88] sm:$0xff] }
 0x1ea   :  { %v2221_v19 = vld [vmem:[%s11784_s3 + $0xaa0] sm:$0xff] }
 0x1eb   :  { %v2361_v3 = vld [vmem:[%s11784_s3 + $0xf00] sm:$0xff]  ;;  %v7485_v6 = vcombine.high %v2217_v1, %v2221_v19  ;;  %v7484_v58 = vcombine.low %v2217_v1, %v2221_v19  ;;  %v10165_v19 = vpack.c.bf16 %v1869_v61, %v1869_v61  ;;  %v2058_v61 = vld [vmem:[%s11784_s3 + $0x588] sm:$0xff] }
 0x1ec   :  { %5482 = vmatpush2.bf16.msra.mxu0 %v7508_v36  ;;  %5519 = vmatpush2.bf16.msra.mxu1 %v7652_v59  ;;  %v2365_v2 = vld [vmem:[%s11784_s3 + $0xf20] sm:$0xff]  ;;  %v1938_v36 = vld [vmem:[%s11784_s3 + $0x1c8] sm:$0xff] }
 0x1ed   :  { %5483 = vmatprep.subr.bf16.mxu0 %v7501_v10  ;;  %5520 = vmatprep.subr.bf16.mxu1 %v7645_v25  ;;  %v7629_v23 = vcombine.high %v2361_v3, %v2365_v2  ;;  %v2209_v53 = vld [vmem:[%s11784_s3 + $0xa40] sm:$0xff]  ;;  %v7628_v18 = vcombine.low %v2361_v3, %v2365_v2  ;;  %v1942_v59 = vld [vmem:[%s11784_s3 + $0x1e8] sm:$0xff] }
 0x1ee   :  { %v2213_v28 = vld [vmem:[%s11784_s3 + $0xa60] sm:$0xff]  ;;  %v7207_v17 = vcombine.high %v1938_v36, %v1942_v59  ;;  %v7206_v1 = vcombine.low %v1938_v36, %v1942_v59 }
 0x1ef   :  { %v2353_v41 = vld [vmem:[%s11784_s3 + $0xec0] sm:$0xff]  ;;  %v7477_v21 = vcombine.high %v2209_v53, %v2213_v28  ;;  %v7476_v39 = vcombine.low %v2209_v53, %v2213_v28 }
 0x1f0   :  { %5484 = vmatpush2.bf16.msra.mxu0 %v7500_v16  ;;  %5521 = vmatpush2.bf16.msra.mxu1 %v7644_v40  ;;  %v2357_v11 = vld [vmem:[%s11784_s3 + $0xee0] sm:$0xff]  ;;  %v8686_v40 = vmov 0  }
 0x1f1   :  { %5485 = vmatprep.subr.bf16.mxu0 %v7493_v35  ;;  %5522 = vmatprep.subr.bf16.mxu1 %v7637_v49  ;;  %v7621_v15 = vcombine.high %v2353_v41, %v2357_v11  ;;  %v2201_v26 = vld [vmem:[%s11784_s3 + $0xa00] sm:$0xff]  ;;  %v7620_v47 = vcombine.low %v2353_v41, %v2357_v11  ;;  %v1930_v35 = vld [vmem:[%s11784_s3 + $0x188] sm:$0xff] }
 0x1f2   :  { %v2205_v54 = vld [vmem:[%s11784_s3 + $0xa20] sm:$0xff]  ;;  %v7198_v28 = vcombine.low %v1930_v35, %v1934_v0 }
 0x1f3   :  { %v2345_v42 = vld [vmem:[%s11784_s3 + $0xe80] sm:$0xff]  ;;  %v7469_v5 = vcombine.high %v2201_v26, %v2205_v54  ;;  %v7468_v56 = vcombine.low %v2201_v26, %v2205_v54 }
 0x1f4   :  { %5486 = vmatpush2.bf16.msra.mxu0 %v7492_v4  ;;  %5523 = vmatpush2.bf16.msra.mxu1 %v7636_v45  ;;  %v2349_v34 = vld [vmem:[%s11784_s3 + $0xea0] sm:$0xff]  ;;  %v7199_v4 = vcombine.high %v1930_v35, %v1934_v0  ;;  %v2002_v35 = vld [vmem:[%s11784_s3 + $0x3c8] sm:$0xff] }
 0x1f5   :  { %5487 = vmatprep.subr.bf16.mxu0 %v7485_v6  ;;  %5524 = vmatprep.subr.bf16.mxu1 %v7629_v23  ;;  %v7613_v12 = vcombine.high %v2345_v42, %v2349_v34  ;;  %v2337_v8 = vld [vmem:[%s11784_s3 + $0xe40] sm:$0xff]  ;;  %v7612_v57 = vcombine.low %v2345_v42, %v2349_v34  ;;  %v1922_v6 = vld [vmem:[%s11784_s3 + $0x148] sm:$0xff] }
 0x1f6   :  { %v2341_v60 = vld [vmem:[%s11784_s3 + $0xe60] sm:$0xff]  ;;  %v1926_v23 = vld [vmem:[%s11784_s3 + $0x168] sm:$0xff] }
 0x1f7   :  { %v2449_v37 = vld [vmem:[%s11784_s3 + $0x11c0] sm:$0xff]  ;;  %v7605_v38 = vcombine.high %v2337_v8, %v2341_v60  ;;  %v7604_v52 = vcombine.low %v2337_v8, %v2341_v60  ;;  %v7191_v11 = vcombine.high %v1922_v6, %v1926_v23  ;;  %v7190_v54 = vcombine.low %v1922_v6, %v1926_v23  ;;  %v1994_v23 = vld [vmem:[%s11784_s3 + $0x388] sm:$0xff] }
 0x1f8   :  { %5488 = vmatpush2.bf16.msra.mxu0 %v7484_v58  ;;  %5525 = vmatpush2.bf16.msra.mxu1 %v7628_v18  ;;  %v2453_v55 = vld [vmem:[%s11784_s3 + $0x11e0] sm:$0xff] }
 0x1f9   :  { %5489 = vmatprep.subr.bf16.mxu0 %v7477_v21  ;;  %5526 = vmatprep.subr.bf16.mxu1 %v7621_v15  ;;  %v7717_v50 = vcombine.high %v2449_v37, %v2453_v55  ;;  %v2329_v48 = vld [vmem:[%s11784_s3 + $0xe00] sm:$0xff]  ;;  %v7716_v33 = vcombine.low %v2449_v37, %v2453_v55  ;;  %v1914_v21 = vld [vmem:[%s11784_s3 + $0x108] sm:$0xff] }
 0x1fa   :  { %v2333_v14 = vld [vmem:[%s11784_s3 + $0xe20] sm:$0xff]  ;;  %v1918_v15 = vld [vmem:[%s11784_s3 + $0x128] sm:$0xff] }
 0x1fb   :  { %v2441_v63 = vld [vmem:[%s11784_s3 + $0x1180] sm:$0xff]  ;;  %v7597_v13 = vcombine.high %v2329_v48, %v2333_v14  ;;  %v7596_v10 = vcombine.low %v2329_v48, %v2333_v14  ;;  %v7183_v34 = vcombine.high %v1914_v21, %v1918_v15  ;;  %v7182_v60 = vcombine.low %v1914_v21, %v1918_v15  ;;  %v1986_v15 = vld [vmem:[%s11784_s3 + $0x348] sm:$0xff] }
 0x1fc   :  { %5490 = vmatpush2.bf16.msra.mxu0 %v7476_v39  ;;  %5527 = vmatpush2.bf16.msra.mxu1 %v7620_v47  ;;  %v2445_v43 = vld [vmem:[%s11784_s3 + $0x11a0] sm:$0xff] }
 0x1fd   :  { %5491 = vmatprep.subr.bf16.mxu0 %v7469_v5  ;;  %5528 = vmatprep.subr.bf16.mxu1 %v7613_v12  ;;  %v7709_v29 = vcombine.high %v2441_v63, %v2445_v43  ;;  %v2433_v22 = vld [vmem:[%s11784_s3 + $0x1140] sm:$0xff]  ;;  %v7708_v25 = vcombine.low %v2441_v63, %v2445_v43  ;;  %v1906_v5 = vld [vmem:[%s11784_s3 + $0xc8] sm:$0xff] }
 0x1fe   :  { %v2437_v62 = vld [vmem:[%s11784_s3 + $0x1160] sm:$0xff]  ;;  %v1910_v12 = vld [vmem:[%s11784_s3 + $0xe8] sm:$0xff] }
 0x1ff   :  { %v7701_v51 = vcombine.high %v2433_v22, %v2437_v62  ;;  %v2425_v9 = vld [vmem:[%s11784_s3 + $0x1100] sm:$0xff]  ;;  %v7700_v49 = vcombine.low %v2433_v22, %v2437_v62  ;;  %v7175_v55 = vcombine.high %v1906_v5, %v1910_v12  ;;  %v7174_v48 = vcombine.low %v1906_v5, %v1910_v12  ;;  %v1890_v43 = vld [vmem:[%s11784_s3 + $0x48] sm:$0xff] }
 0x200   :  { %5492 = vmatpush2.bf16.msra.mxu0 %v7468_v56  ;;  %5529 = vmatpush2.bf16.msra.mxu1 %v7612_v57  ;;  %v2429_v16 = vld [vmem:[%s11784_s3 + $0x1120] sm:$0xff]  ;;  %v1871_v62 = vmax.f32 %v10010_v44, 0.0  ;;  %v2062_v44 = vld [vmem:[%s11784_s3 + $0x5a8] sm:$0xff] }
 0x201   :  { %5530 = vmatprep.subr.bf16.mxu1 %v7605_v38  ;;  %5543 = vmatprep.subr.bf16.mxu0 %v7717_v50  ;;  %v7693_v3 = vcombine.high %v2425_v9, %v2429_v16  ;;  %v2417_v2 = vld [vmem:[%s11784_s3 + $0x10c0] sm:$0xff]  ;;  %v7692_v53 = vcombine.low %v2425_v9, %v2429_v16  ;;  %v1902_v38 = vld [vmem:[%s11784_s3 + $0xa8] sm:$0xff]  ;;  %v7327_v0 = vcombine.high %v2058_v61, %v2062_v44 }
 0x202   :  { %v2421_v45 = vld [vmem:[%s11784_s3 + $0x10e0] sm:$0xff]  ;;  %v7167_v63 = vcombine.high %v1898_v20, %v1902_v38  ;;  %v7166_v22 = vcombine.low %v1898_v20, %v1902_v38  ;;  %v10242_v9 = vpack.c.bf16 %v1871_v62, %v1871_v62  ;;  %v1978_v12 = vld [vmem:[%s11784_s3 + $0x308] sm:$0xff] }
 0x203   :  { %5494 = vmatmul.mubr.bf16.vlgmr.msra.gmra.mxu0 %v10136_v46  ;;  %v7685_v41 = vcombine.high %v2417_v2, %v2421_v45  ;;  %v2409_v58 = vld [vmem:[%s11784_s3 + $0x1080] sm:$0xff]  ;;  %v7684_v26 = vcombine.low %v2417_v2, %v2421_v45  ;;  %v1970_v38 = vld [vmem:[%s11784_s3 + $0x2c8] sm:$0xff] }
 0x204   :  { %5531 = vmatpush2.bf16.msra.mxu1 %v7604_v52  ;;  %5544 = vmatpush1.bf16.msra.mxu0 %v7716_v33  ;;  %v2413_v18 = vld [vmem:[%s11784_s3 + $0x10a0] sm:$0xff]  ;;  %v1894_v52 = vld [vmem:[%s11784_s3 + $0x68] sm:$0xff] }
 0x205   :  { %5532 = vmatprep.subr.bf16.mxu1 %v7597_v13  ;;  %5545 = vmatprep.subr.bf16.mxu0 %v7709_v29  ;;  %v7677_v42 = vcombine.high %v2409_v58, %v2413_v18  ;;  %v2401_v39 = vld [vmem:[%s11784_s3 + $0x1040] sm:$0xff]  ;;  %v7676_v8 = vcombine.low %v2409_v58, %v2413_v18  ;;  %v2066_v33 = vld [vmem:[%s11784_s3 + $0x5c8] sm:$0xff]  ;;  %v7159_v36 = vcombine.high %v1890_v43, %v1894_v52 }
 0x206   :  { %5575 = vmatprep.mubr.bf16.mxu0 %v8686_v40  ;;  %v2405_v47 = vld [vmem:[%s11784_s3 + $0x1060] sm:$0xff]  ;;  %v2070_v13 = vld [vmem:[%s11784_s3 + $0x5e8] sm:$0xff] }
 0x207   :  { %v7669_v37 = vcombine.high %v2401_v39, %v2405_v47  ;;  %v2393_v56 = vld [vmem:[%s11784_s3 + $0x1000] sm:$0xff]  ;;  %v7668_v50 = vcombine.low %v2401_v39, %v2405_v47  ;;  %v7335_v59 = vcombine.high %v2066_v33, %v2070_v13  ;;  %v2014_v62 = vld [vmem:[%s11784_s3 + $0x428] sm:$0xff] }
 0x208   :  { %5533 = vmatpush2.bf16.msra.mxu1 %v7596_v10  ;;  %5546 = vmatpush1.bf16.msra.mxu0 %v7708_v25  ;;  %v2397_v57 = vld [vmem:[%s11784_s3 + $0x1020] sm:$0xff]  ;;  %v1882_v10 = vld [vmem:[%s11784_s3 + $0x8] sm:$0xff] }
 0x209   :  { %5547 = vmatprep.subr.bf16.mxu0 %v7701_v51  ;;  %5584 = vmatprep.subr.bf16.mxu1 %v7207_v17  ;;  %v7661_v14 = vcombine.high %v2393_v56, %v2397_v57  ;;  %v7660_v29 = vcombine.low %v2393_v56, %v2397_v57  ;;  %v1886_v25 = vld [vmem:[%s11784_s3 + $0x28] sm:$0xff]  ;;  %v7158_v51 = vcombine.low %v1890_v43, %v1894_v52 }
 0x20a   :  { %v7334_v17 = vcombine.low %v2066_v33, %v2070_v13  ;;  %v7151_v16 = vcombine.high %v1882_v10, %v1886_v25  ;;  %v7150_v2 = vcombine.low %v1882_v10, %v1886_v25  ;;  %v1962_v13 = vld [vmem:[%s11784_s3 + $0x288] sm:$0xff] }
 0x20b   :  { %5535 = vmatmul.mubr.bf16.vlgmr.msra.gmra.mxu1 %v10165_v19 }
 0x20c   :  { %5548 = vmatpush1.bf16.msra.mxu0 %v7700_v49  ;;  %5585 = vmatpush1.bf16.msra.mxu1 %v7206_v1  ;;  %v2006_v49 = vld [vmem:[%s11784_s3 + $0x3e8] sm:$0xff] }
 0x20d   :  { %5616 = vmatprep.mubr.bf16.mxu1 %v9881_v27  ;;  %5549 = vmatprep.subr.bf16.mxu0 %v7693_v3  ;;  %v2050_v1 = vld [vmem:[%s11784_s3 + $0x548] sm:$0xff]  ;;  %v7271_v45 = vcombine.high %v2002_v35, %v2006_v49 }
 0x20e   :  { %5586 = vmatprep.subr.bf16.mxu1 %v7199_v4  ;;  %v2054_v3 = vld [vmem:[%s11784_s3 + $0x568] sm:$0xff]  ;;  %v7326_v4 = vcombine.low %v2058_v61, %v2062_v44 }
 0x20f   :  { %v7319_v6 = vcombine.high %v2050_v1, %v2054_v3  ;;  %v7318_v58 = vcombine.low %v2050_v1, %v2054_v3  ;;  %v1954_v61 = vld [vmem:[%s11784_s3 + $0x248] sm:$0xff] }
 0x210   :  { %5550 = vmatpush1.bf16.msra.mxu0 %v7692_v53  ;;  %5587 = vmatpush1.bf16.msra.mxu1 %v7198_v28  ;;  %v1998_v53 = vld [vmem:[%s11784_s3 + $0x3a8] sm:$0xff] }
 0x211   :  { %5551 = vmatprep.subr.bf16.mxu0 %v7685_v41  ;;  %5588 = vmatprep.subr.bf16.mxu1 %v7191_v11  ;;  %v2042_v28 = vld [vmem:[%s11784_s3 + $0x508] sm:$0xff]  ;;  %v7270_v11 = vcombine.low %v2002_v35, %v2006_v49  ;;  %v7263_v18 = vcombine.high %v1994_v23, %v1998_v53 }
 0x212   :  { %v2046_v41 = vld [vmem:[%s11784_s3 + $0x528] sm:$0xff] }
 0x213   :  { %v7311_v21 = vcombine.high %v2042_v28, %v2046_v41  ;;  %v7310_v39 = vcombine.low %v2042_v28, %v2046_v41  ;;  %v1958_v44 = vld [vmem:[%s11784_s3 + $0x268] sm:$0xff] }
 0x214   :  { %5552 = vmatpush1.bf16.msra.mxu0 %v7684_v26  ;;  %5589 = vmatpush1.bf16.msra.mxu1 %v7190_v54  ;;  %v1990_v26 = vld [vmem:[%s11784_s3 + $0x368] sm:$0xff] }
 0x215   :  { %5553 = vmatprep.subr.bf16.mxu0 %v7677_v42  ;;  %5590 = vmatprep.subr.bf16.mxu1 %v7183_v34  ;;  %v2034_v54 = vld [vmem:[%s11784_s3 + $0x4c8] sm:$0xff]  ;;  %v7262_v34 = vcombine.low %v1994_v23, %v1998_v53  ;;  %v7255_v47 = vcombine.high %v1986_v15, %v1990_v26 }
 0x216   :  { %v2038_v42 = vld [vmem:[%s11784_s3 + $0x4e8] sm:$0xff] }
 0x217   :  { %v7303_v5 = vcombine.high %v2034_v54, %v2038_v42  ;;  %v7302_v56 = vcombine.low %v2034_v54, %v2038_v42  ;;  %v1946_v1 = vld [vmem:[%s11784_s3 + $0x208] sm:$0xff] }
 0x218   :  { %5554 = vmatpush1.bf16.msra.mxu0 %v7676_v8  ;;  %5591 = vmatpush1.bf16.msra.mxu1 %v7182_v60  ;;  %v1982_v8 = vld [vmem:[%s11784_s3 + $0x328] sm:$0xff] }
 0x219   :  { %5555 = vmatprep.subr.bf16.mxu0 %v7669_v37  ;;  %5592 = vmatprep.subr.bf16.mxu1 %v7175_v55  ;;  %v2026_v60 = vld [vmem:[%s11784_s3 + $0x488] sm:$0xff]  ;;  %v7254_v55 = vcombine.low %v1986_v15, %v1990_v26  ;;  %v7247_v57 = vcombine.high %v1978_v12, %v1982_v8 }
 0x21a   :  { %v2030_v37 = vld [vmem:[%s11784_s3 + $0x4a8] sm:$0xff] }
 0x21b   :  { %v7295_v20 = vcombine.high %v2026_v60, %v2030_v37  ;;  %v7294_v43 = vcombine.low %v2026_v60, %v2030_v37  ;;  %v1950_v3 = vld [vmem:[%s11784_s3 + $0x228] sm:$0xff] }
 0x21c   :  { %5556 = vmatpush1.bf16.msra.mxu0 %v7668_v50  ;;  %5593 = vmatpush1.bf16.msra.mxu1 %v7174_v48  ;;  %v1974_v50 = vld [vmem:[%s11784_s3 + $0x2e8] sm:$0xff]  ;;  %v7215_v23 = vcombine.high %v1946_v1, %v1950_v3 }
 0x21d   :  { %5557 = vmatprep.subr.bf16.mxu0 %v7661_v14  ;;  %5594 = vmatprep.subr.bf16.mxu1 %v7167_v63  ;;  %v2018_v48 = vld [vmem:[%s11784_s3 + $0x448] sm:$0xff]  ;;  %v7246_v63 = vcombine.low %v1978_v12, %v1982_v8  ;;  %v7239_v52 = vcombine.high %v1970_v38, %v1974_v50 }
 0x21e   :  { %v2022_v14 = vld [vmem:[%s11784_s3 + $0x468] sm:$0xff] }
 0x21f   :  { %v7287_v33 = vcombine.high %v2018_v48, %v2022_v14  ;;  %v2114_v28 = vld [vmem:[%s11784_s3 + $0x748] sm:$0xff] }
 0x220   :  { %5558 = vmatpush1.bf16.msra.mxu0 %v7660_v29  ;;  %5595 = vmatpush1.bf16.msra.mxu1 %v7166_v22  ;;  %v1966_v29 = vld [vmem:[%s11784_s3 + $0x2a8] sm:$0xff] }
 0x221   :  { %5596 = vmatprep.subr.bf16.mxu1 %v7159_v36  ;;  %5625 = vmatprep.subr.bf16.mxu0 %v7335_v59  ;;  %v2010_v22 = vld [vmem:[%s11784_s3 + $0x408] sm:$0xff]  ;;  %v7238_v36 = vcombine.low %v1970_v38, %v1974_v50  ;;  %v7286_v59 = vcombine.low %v2018_v48, %v2022_v14  ;;  %v7231_v10 = vcombine.high %v1962_v13, %v1966_v29 }
 0x222   :  { %v7279_v25 = vcombine.high %v2010_v22, %v2014_v62  ;;  %v7278_v35 = vcombine.low %v2010_v22, %v2014_v62  ;;  %v2118_v41 = vld [vmem:[%s11784_s3 + $0x768] sm:$0xff] }
 0x223   :  { %5576 = vmatmul.mubr.bf16.vlgmr.msra.gmra.mxu0 %v10242_v9  ;;  %v7383_v15 = vcombine.high %v2114_v28, %v2118_v41  ;;  %v2106_v54 = vld [vmem:[%s11784_s3 + $0x708] sm:$0xff] }
 0x224   :  { %5597 = vmatpush1.bf16.msra.mxu1 %v7158_v51  ;;  %5626 = vmatpush1.bf16.msra.mxu0 %v7334_v17  ;;  %v2130_v51 = vld [vmem:[%s11784_s3 + $0x7c8] sm:$0xff] }
 0x225   :  { %5657 = vmatprep.mubr.bf16.mxu0 %v9925_v30  ;;  %5598 = vmatprep.subr.bf16.mxu1 %v7151_v16  ;;  %v2134_v17 = vld [vmem:[%s11784_s3 + $0x7e8] sm:$0xff]  ;;  %v7230_v16 = vcombine.low %v1962_v13, %v1966_v29 }
 0x226   :  { %5627 = vmatprep.subr.bf16.mxu0 %v7327_v0  ;;  %v7223_v0 = vcombine.high %v1954_v61, %v1958_v44  ;;  %v7399_v49 = vcombine.high %v2130_v51, %v2134_v17  ;;  %v2110_v42 = vld [vmem:[%s11784_s3 + $0x728] sm:$0xff] }
 0x227   :  { %v7375_v12 = vcombine.high %v2106_v54, %v2110_v42  ;;  %v2098_v8 = vld [vmem:[%s11784_s3 + $0x6c8] sm:$0xff] }
 0x228   :  { %5599 = vmatpush1.bf16.msra.mxu1 %v7150_v2  ;;  %5628 = vmatpush1.bf16.msra.mxu0 %v7326_v4  ;;  %v2122_v2 = vld [vmem:[%s11784_s3 + $0x788] sm:$0xff] }
 0x229   :  { %5600 = vmatprep.subr.bf16.mxu1 %v7271_v45  ;;  %5629 = vmatprep.subr.bf16.mxu0 %v7319_v6  ;;  %v2126_v4 = vld [vmem:[%s11784_s3 + $0x7a8] sm:$0xff]  ;;  %v7222_v45 = vcombine.low %v1954_v61, %v1958_v44  ;;  %v7398_v6 = vcombine.low %v2130_v51, %v2134_v17 }
 0x22a   :  { %v7391_v53 = vcombine.high %v2122_v2, %v2126_v4  ;;  %v2102_v37 = vld [vmem:[%s11784_s3 + $0x6e8] sm:$0xff] }
 0x22b   :  { %v7367_v38 = vcombine.high %v2098_v8, %v2102_v37  ;;  %v2090_v48 = vld [vmem:[%s11784_s3 + $0x688] sm:$0xff] }
 0x22c   :  { %5601 = vmatpush2.bf16.msra.mxu1 %v7270_v11  ;;  %5630 = vmatpush1.bf16.msra.mxu0 %v7318_v58  ;;  %v2194_v11 = vld [vmem:[%s11784_s3 + $0x9c8] sm:$0xff] }
 0x22d   :  { %5602 = vmatprep.subr.bf16.mxu1 %v7263_v18  ;;  %5631 = vmatprep.subr.bf16.mxu0 %v7311_v21  ;;  %v2198_v58 = vld [vmem:[%s11784_s3 + $0x9e8] sm:$0xff]  ;;  %v7214_v18 = vcombine.low %v1946_v1, %v1950_v3  ;;  %v7390_v21 = vcombine.low %v2122_v2, %v2126_v4 }
 0x22e   :  { %v7463_v26 = vcombine.high %v2194_v11, %v2198_v58  ;;  %v2094_v14 = vld [vmem:[%s11784_s3 + $0x6a8] sm:$0xff] }
 0x22f   :  { %v7359_v13 = vcombine.high %v2090_v48, %v2094_v14  ;;  %v2082_v22 = vld [vmem:[%s11784_s3 + $0x648] sm:$0xff] }
 0x230   :  { %5603 = vmatpush2.bf16.msra.mxu1 %v7262_v34  ;;  %5632 = vmatpush1.bf16.msra.mxu0 %v7310_v39  ;;  %v2186_v34 = vld [vmem:[%s11784_s3 + $0x988] sm:$0xff] }
 0x231   :  { %5604 = vmatprep.subr.bf16.mxu1 %v7255_v47  ;;  %5633 = vmatprep.subr.bf16.mxu0 %v7303_v5  ;;  %v2190_v39 = vld [vmem:[%s11784_s3 + $0x9a8] sm:$0xff]  ;;  %v7382_v47 = vcombine.low %v2114_v28, %v2118_v41  ;;  %v7462_v5 = vcombine.low %v2194_v11, %v2198_v58 }
 0x232   :  { %v7455_v60 = vcombine.high %v2186_v34, %v2190_v39  ;;  %v2086_v62 = vld [vmem:[%s11784_s3 + $0x668] sm:$0xff] }
 0x233   :  { %v7351_v61 = vcombine.high %v2082_v22, %v2086_v62  ;;  %v2074_v51 = vld [vmem:[%s11784_s3 + $0x608] sm:$0xff] }
 0x234   :  { %5605 = vmatpush2.bf16.msra.mxu1 %v7254_v55  ;;  %5634 = vmatpush1.bf16.msra.mxu0 %v7302_v56  ;;  %v2178_v55 = vld [vmem:[%s11784_s3 + $0x948] sm:$0xff] }
 0x235   :  { %5606 = vmatprep.subr.bf16.mxu1 %v7247_v57  ;;  %5635 = vmatprep.subr.bf16.mxu0 %v7295_v20  ;;  %v2182_v56 = vld [vmem:[%s11784_s3 + $0x968] sm:$0xff]  ;;  %v7374_v57 = vcombine.low %v2106_v54, %v2110_v42  ;;  %v7454_v20 = vcombine.low %v2186_v34, %v2190_v39 }
 0x236   :  { %v7447_v50 = vcombine.high %v2178_v55, %v2182_v56  ;;  %v2078_v17 = vld [vmem:[%s11784_s3 + $0x628] sm:$0xff] }
 0x237   :  { %v7343_v1 = vcombine.high %v2074_v51, %v2078_v17  ;;  %v2146_v2 = vld [vmem:[%s11784_s3 + $0x848] sm:$0xff] }
 0x238   :  { %5607 = vmatpush2.bf16.msra.mxu1 %v7246_v63  ;;  %5636 = vmatpush1.bf16.msra.mxu0 %v7294_v43  ;;  %v2170_v63 = vld [vmem:[%s11784_s3 + $0x908] sm:$0xff] }
 0x239   :  { %5608 = vmatprep.subr.bf16.mxu1 %v7239_v52  ;;  %5637 = vmatprep.subr.bf16.mxu0 %v7287_v33  ;;  %v2174_v43 = vld [vmem:[%s11784_s3 + $0x928] sm:$0xff]  ;;  %v7366_v52 = vcombine.low %v2098_v8, %v2102_v37  ;;  %v7446_v33 = vcombine.low %v2178_v55, %v2182_v56 }
 0x23a   :  { %v7439_v29 = vcombine.high %v2170_v63, %v2174_v43  ;;  %v2150_v4 = vld [vmem:[%s11784_s3 + $0x868] sm:$0xff] }
 0x23b   :  { %v7415_v28 = vcombine.high %v2146_v2, %v2150_v4  ;;  %v2138_v11 = vld [vmem:[%s11784_s3 + $0x808] sm:$0xff] }
 0x23c   :  { %5609 = vmatpush2.bf16.msra.mxu1 %v7238_v36  ;;  %5638 = vmatpush1.bf16.msra.mxu0 %v7286_v59  ;;  %v2162_v36 = vld [vmem:[%s11784_s3 + $0x8c8] sm:$0xff] }
 0x23d   :  { %5610 = vmatprep.subr.bf16.mxu1 %v7231_v10  ;;  %5639 = vmatprep.subr.bf16.mxu0 %v7279_v25  ;;  %v2166_v59 = vld [vmem:[%s11784_s3 + $0x8e8] sm:$0xff]  ;;  %v7358_v10 = vcombine.low %v2090_v48, %v2094_v14  ;;  %v7438_v25 = vcombine.low %v2170_v63, %v2174_v43 }
 0x23e   :  { %v7431_v44 = vcombine.high %v2162_v36, %v2166_v59  ;;  %v2142_v58 = vld [vmem:[%s11784_s3 + $0x828] sm:$0xff] }
 0x23f   :  { %v7407_v54 = vcombine.high %v2138_v11, %v2142_v58  ;;  %v2258_v42 = vld [vmem:[%s11784_s3 + $0xbc8] sm:$0xff] }
 0x240   :  { %5611 = vmatpush2.bf16.msra.mxu1 %v7230_v16  ;;  %5640 = vmatpush1.bf16.msra.mxu0 %v7278_v35  ;;  %v2154_v16 = vld [vmem:[%s11784_s3 + $0x888] sm:$0xff] }
 0x241   :  { %5612 = vmatprep.subr.bf16.mxu1 %v7223_v0  ;;  %5641 = vmatprep.subr.bf16.mxu0 %v7399_v49  ;;  %v2158_v35 = vld [vmem:[%s11784_s3 + $0x8a8] sm:$0xff]  ;;  %v7350_v0 = vcombine.low %v2082_v22, %v2086_v62  ;;  %v7430_v49 = vcombine.low %v2162_v36, %v2166_v59 }
 0x242   :  { %v7423_v3 = vcombine.high %v2154_v16, %v2158_v35  ;;  %v2262_v39 = vld [vmem:[%s11784_s3 + $0xbe8] sm:$0xff] }
 0x243   :  { %v2250_v55 = vld [vmem:[%s11784_s3 + $0xb88] sm:$0xff] }
 0x244   :  { %5613 = vmatpush2.bf16.msra.mxu1 %v7222_v45  ;;  %5642 = vmatpush2.bf16.msra.mxu0 %v7398_v6  ;;  %v2322_v45 = vld [vmem:[%s11784_s3 + $0xdc8] sm:$0xff] }
 0x245   :  { %5614 = vmatprep.subr.bf16.mxu1 %v7215_v23  ;;  %5643 = vmatprep.subr.bf16.mxu0 %v7391_v53  ;;  %v2326_v6 = vld [vmem:[%s11784_s3 + $0xde8] sm:$0xff]  ;;  %v7342_v23 = vcombine.low %v2074_v51, %v2078_v17  ;;  %v7422_v53 = vcombine.low %v2154_v16, %v2158_v35 }
 0x246   :  { %v7591_v41 = vcombine.high %v2322_v45, %v2326_v6  ;;  %v2254_v56 = vld [vmem:[%s11784_s3 + $0xba8] sm:$0xff] }
 0x247   :  { %v7519_v48 = vcombine.high %v2250_v55, %v2254_v56  ;;  %v2242_v63 = vld [vmem:[%s11784_s3 + $0xb48] sm:$0xff] }
 0x248   :  { %5615 = vmatpush2.bf16.msra.mxu1 %v7214_v18  ;;  %5644 = vmatpush2.bf16.msra.mxu0 %v7390_v21  ;;  %v2314_v18 = vld [vmem:[%s11784_s3 + $0xd88] sm:$0xff] }
 0x249   :  { %5645 = vmatprep.subr.bf16.mxu0 %v7383_v15  ;;  %5666 = vmatprep.subr.bf16.mxu1 %v7463_v26  ;;  %v2318_v21 = vld [vmem:[%s11784_s3 + $0xda8] sm:$0xff]  ;;  %v7414_v15 = vcombine.low %v2146_v2, %v2150_v4  ;;  %v7590_v26 = vcombine.low %v2322_v45, %v2326_v6 }
 0x24a   :  { %v7583_v34 = vcombine.high %v2314_v18, %v2318_v21  ;;  %v7582_v8 = vcombine.low %v2314_v18, %v2318_v21  ;;  %v2246_v43 = vld [vmem:[%s11784_s3 + $0xb68] sm:$0xff] }
 0x24b   :  { %5617 = vmatmul.mubr.bf16.vlgmr.msra.gmra.mxu1 %v9883_v32  ;;  %v7511_v22 = vcombine.high %v2242_v63, %v2246_v43  ;;  %v2234_v36 = vld [vmem:[%s11784_s3 + $0xb08] sm:$0xff] }
 0x24c   :  { %5646 = vmatpush2.bf16.msra.mxu0 %v7382_v47  ;;  %5667 = vmatpush1.bf16.msra.mxu1 %v7462_v5  ;;  %v2306_v47 = vld [vmem:[%s11784_s3 + $0xd48] sm:$0xff] }
 0x24d   :  { %5698 = vmatprep.mubr.bf16.mxu1 %v9974_v31  ;;  %5647 = vmatprep.subr.bf16.mxu0 %v7375_v12  ;;  %v2310_v5 = vld [vmem:[%s11784_s3 + $0xd68] sm:$0xff]  ;;  %v7406_v12 = vcombine.low %v2138_v11, %v2142_v58 }
 0x24e   :  { %5668 = vmatprep.subr.bf16.mxu1 %v7455_v60  ;;  %v7527_v60 = vcombine.high %v2258_v42, %v2262_v39  ;;  %v7575_v37 = vcombine.high %v2306_v47, %v2310_v5  ;;  %v2238_v59 = vld [vmem:[%s11784_s3 + $0xb28] sm:$0xff] }
 0x24f   :  { %v7503_v51 = vcombine.high %v2234_v36, %v2238_v59  ;;  %v2226_v16 = vld [vmem:[%s11784_s3 + $0xac8] sm:$0xff] }
 0x250   :  { %5648 = vmatpush2.bf16.msra.mxu0 %v7374_v57  ;;  %5669 = vmatpush1.bf16.msra.mxu1 %v7454_v20  ;;  %v2298_v57 = vld [vmem:[%s11784_s3 + $0xd08] sm:$0xff] }
 0x251   :  { %5649 = vmatprep.subr.bf16.mxu0 %v7367_v38  ;;  %5670 = vmatprep.subr.bf16.mxu1 %v7447_v50  ;;  %v2302_v20 = vld [vmem:[%s11784_s3 + $0xd28] sm:$0xff]  ;;  %v7526_v38 = vcombine.low %v2258_v42, %v2262_v39  ;;  %v7574_v50 = vcombine.low %v2306_v47, %v2310_v5 }
 0x252   :  { %v7567_v14 = vcombine.high %v2298_v57, %v2302_v20  ;;  %v2230_v35 = vld [vmem:[%s11784_s3 + $0xae8] sm:$0xff] }
 0x253   :  { %v7495_v2 = vcombine.high %v2226_v16, %v2230_v35  ;;  %v2218_v45 = vld [vmem:[%s11784_s3 + $0xa88] sm:$0xff] }
 0x254   :  { %5650 = vmatpush2.bf16.msra.mxu0 %v7366_v52  ;;  %5671 = vmatpush1.bf16.msra.mxu1 %v7446_v33  ;;  %v2290_v52 = vld [vmem:[%s11784_s3 + $0xcc8] sm:$0xff] }
 0x255   :  { %5651 = vmatprep.subr.bf16.mxu0 %v7359_v13  ;;  %5672 = vmatprep.subr.bf16.mxu1 %v7439_v29  ;;  %v2294_v33 = vld [vmem:[%s11784_s3 + $0xce8] sm:$0xff]  ;;  %v7518_v13 = vcombine.low %v2250_v55, %v2254_v56  ;;  %v7566_v29 = vcombine.low %v2298_v57, %v2302_v20 }
 0x256   :  { %v7559_v62 = vcombine.high %v2290_v52, %v2294_v33  ;;  %v2222_v6 = vld [vmem:[%s11784_s3 + $0xaa8] sm:$0xff] }
 0x257   :  { %v7487_v11 = vcombine.high %v2218_v45, %v2222_v6  ;;  %v2210_v18 = vld [vmem:[%s11784_s3 + $0xa48] sm:$0xff]  ;;  %v7486_v42 = vcombine.low %v2218_v45, %v2222_v6 }
 0x258   :  { %5652 = vmatpush2.bf16.msra.mxu0 %v7358_v10  ;;  %5673 = vmatpush1.bf16.msra.mxu1 %v7438_v25  ;;  %v2282_v10 = vld [vmem:[%s11784_s3 + $0xc88] sm:$0xff] }
 0x259   :  { %5653 = vmatprep.subr.bf16.mxu0 %v7351_v61  ;;  %5674 = vmatprep.subr.bf16.mxu1 %v7431_v44  ;;  %v2286_v25 = vld [vmem:[%s11784_s3 + $0xca8] sm:$0xff]  ;;  %v7510_v61 = vcombine.low %v2242_v63, %v2246_v43  ;;  %v7558_v44 = vcombine.low %v2290_v52, %v2294_v33  ;;  %v2457_v43 = vld [vmem:[%s11785_s4] sm:$0xff] }
 0x25a   :  { %v7551_v17 = vcombine.high %v2282_v10, %v2286_v25  ;;  %v2214_v21 = vld [vmem:[%s11784_s3 + $0xa68] sm:$0xff] }
 0x25b   :  { %v7479_v39 = vcombine.high %v2210_v18, %v2214_v21  ;;  %v2202_v5 = vld [vmem:[%s11784_s3 + $0xa08] sm:$0xff]  ;;  %v7478_v55 = vcombine.low %v2210_v18, %v2214_v21 }
 0x25c   :  { %5654 = vmatpush2.bf16.msra.mxu0 %v7350_v0  ;;  %5675 = vmatpush1.bf16.msra.mxu1 %v7430_v49  ;;  %v2274_v0 = vld [vmem:[%s11784_s3 + $0xc48] sm:$0xff] }
 0x25d   :  { %5655 = vmatprep.subr.bf16.mxu0 %v7343_v1  ;;  %5676 = vmatprep.subr.bf16.mxu1 %v7423_v3  ;;  %v2278_v49 = vld [vmem:[%s11784_s3 + $0xc68] sm:$0xff]  ;;  %v7502_v1 = vcombine.low %v2234_v36, %v2238_v59  ;;  %v7550_v3 = vcombine.low %v2282_v10, %v2286_v25 }
 0x25e   :  { %v7543_v4 = vcombine.high %v2274_v0, %v2278_v49  ;;  %v2454_v63 = vld [vmem:[%s11784_s3 + $0x11e8] sm:$0xff] }
 0x25f   :  { %v2362_v59 = vld [vmem:[%s11784_s3 + $0xf08] sm:$0xff] }
 0x260   :  { %5656 = vmatpush2.bf16.msra.mxu0 %v7342_v23  ;;  %5677 = vmatpush1.bf16.msra.mxu1 %v7422_v53  ;;  %v2266_v23 = vld [vmem:[%s11784_s3 + $0xc08] sm:$0xff] }
 0x261   :  { %5678 = vmatprep.subr.bf16.mxu1 %v7415_v28  ;;  %5707 = vmatprep.subr.bf16.mxu0 %v7591_v41  ;;  %v2270_v53 = vld [vmem:[%s11784_s3 + $0xc28] sm:$0xff]  ;;  %v7494_v28 = vcombine.low %v2226_v16, %v2230_v35  ;;  %v7542_v41 = vcombine.low %v2274_v0, %v2278_v49 }
 0x262   :  { %v7535_v58 = vcombine.high %v2266_v23, %v2270_v53  ;;  %v2366_v25 = vld [vmem:[%s11784_s3 + $0xf28] sm:$0xff] }
 0x263   :  { %5658 = vmatmul.mubr.bf16.vlgmr.msra.gmra.mxu0 %v9927_v7  ;;  %v7631_v49 = vcombine.high %v2362_v59, %v2366_v25  ;;  %v2434_v45 = vld [vmem:[%s11784_s3 + $0x1148] sm:$0xff] }
 0x264   :  { %5679 = vmatpush1.bf16.msra.mxu1 %v7414_v15  ;;  %5708 = vmatpush1.bf16.msra.mxu0 %v7590_v26  ;;  %v2386_v15 = vld [vmem:[%s11784_s3 + $0xfc8] sm:$0xff] }
 0x265   :  { %5739 = vmatprep.mubr.bf16.mxu0 %v10012_v24  ;;  %5680 = vmatprep.subr.bf16.mxu1 %v7407_v54  ;;  %v2390_v26 = vld [vmem:[%s11784_s3 + $0xfe8] sm:$0xff]  ;;  %v2459_v54 = vlaneseq }
 0x266   :  { %5709 = vmatprep.subr.bf16.mxu0 %v7583_v34  ;;  %v7534_v34 = vcombine.low %v2266_v23, %v2270_v53  ;;  %v7655_v47 = vcombine.high %v2386_v15, %v2390_v26  ;;  %v7654_v56 = vcombine.low %v2386_v15, %v2390_v26  ;;  %v2438_v6 = vld [vmem:[%s11784_s3 + $0x1168] sm:$0xff]  ;;  %v7630_v53 = vcombine.low %v2362_v59, %v2366_v25  ;;  %v1943_v25 = vld [vmem:[%s11784_s3 + $0x1f0] sm:$0xff] }
 0x267   :  { %v7703_v21 = vcombine.high %v2434_v45, %v2438_v6  ;;  %v2346_v15 = vld [vmem:[%s11784_s3 + $0xe88] sm:$0xff] }
 0x268   :  { %5681 = vmatpush1.bf16.msra.mxu1 %v7406_v12  ;;  %5710 = vmatpush1.bf16.msra.mxu0 %v7582_v8  ;;  %v10529_v12 = vshrl.u32 %v2459_v54, 7  ;;  %v2206_v8 = vld [vmem:[%s11784_s3 + $0xa28] sm:$0xff] }
 0x269   :  { %5682 = vmatprep.subr.bf16.mxu1 %v7527_v60  ;;  %5711 = vmatprep.subr.bf16.mxu0 %v7575_v37  ;;  %v2378_v60 = vld [vmem:[%s11784_s3 + $0xf88] sm:$0xff]  ;;  %v7471_v57 = vcombine.high %v2202_v5, %v2206_v8 }
 0x26a   :  { %v2382_v37 = vld [vmem:[%s11784_s3 + $0xfa8] sm:$0xff]  ;;  %v2465_v33 = vsub.s32 1, %v10529_v12 }
 0x26b   :  { %v7647_v20 = vcombine.high %v2378_v60, %v2382_v37  ;;  %v2350_v54 = vld [vmem:[%s11784_s3 + $0xea8] sm:$0xff] }
 0x26c   :  { %5683 = vmatpush2.bf16.msra.mxu1 %v7526_v38  ;;  %5712 = vmatpush1.bf16.msra.mxu0 %v7574_v50  ;;  %v2370_v38 = vld [vmem:[%s11784_s3 + $0xf48] sm:$0xff]  ;;  %v2461_v50 = vsub.s32 0, %v10529_v12 }
 0x26d   :  { %5684 = vmatprep.subr.bf16.mxu1 %v7519_v48  ;;  %5713 = vmatprep.subr.bf16.mxu0 %v7567_v14  ;;  %v2374_v48 = vld [vmem:[%s11784_s3 + $0xf68] sm:$0xff] }
 0x26e   :  { %v2450_v14 = vld [vmem:[%s11784_s3 + $0x11c8] sm:$0xff]  ;;  %v2462_v10 = vrot.slane %v2457_v43, %v2461_v50  ;;  %v7638_v16 = vcombine.low %v2370_v38, %v2374_v48 }
 0x26f   :  { %v7719_v36 = vcombine.high %v2450_v14, %v2454_v63  ;;  %v7718_v35 = vcombine.low %v2450_v14, %v2454_v63  ;;  %v2330_v63 = vld [vmem:[%s11784_s3 + $0xe08] sm:$0xff] }
 0x270   :  { %5685 = vmatpush2.bf16.msra.mxu1 %v7518_v13  ;;  %5714 = vmatpush1.bf16.msra.mxu0 %v7566_v29  ;;  %v7470_v13 = vcombine.low %v2202_v5, %v2206_v8  ;;  %v7646_v29 = vcombine.low %v2378_v60, %v2382_v37  ;;  %v7702_v5 = vcombine.low %v2434_v45, %v2438_v6  ;;  %v2406_v59 = vld [vmem:[%s11784_s3 + $0x1068] sm:$0xff]  ;;  %v1927_v6 = vld [vmem:[%s11784_s3 + $0x170] sm:$0xff] }
 0x271   :  { %5686 = vmatprep.subr.bf16.mxu1 %v7511_v22  ;;  %5715 = vmatprep.subr.bf16.mxu0 %v7559_v62  ;;  %v7639_v62 = vcombine.high %v2370_v38, %v2374_v48  ;;  %v7615_v60 = vcombine.high %v2346_v15, %v2350_v54  ;;  %v7614_v38 = vcombine.low %v2346_v15, %v2350_v54  ;;  %v1919_v15 = vld [vmem:[%s11784_s3 + $0x130] sm:$0xff] }
 0x272   :  { %v2059_v54 = vld [vmem:[%s11784_s3 + $0x590] sm:$0xff] }
 0x274   :  { %5687 = vmatpush2.bf16.msra.mxu1 %v7510_v61  ;;  %5716 = vmatpush1.bf16.msra.mxu0 %v7558_v44  ;;  %v2442_v61 = vld [vmem:[%s11784_s3 + $0x1188] sm:$0xff] }
 0x275   :  { %5688 = vmatprep.subr.bf16.mxu1 %v7503_v51  ;;  %5717 = vmatprep.subr.bf16.mxu0 %v7551_v17  ;;  %v2446_v44 = vld [vmem:[%s11784_s3 + $0x11a8] sm:$0xff]  ;;  %v2466_v17 = vrot.slane %v2457_v43, %v2465_v33 }
 0x276   :  { %v2334_v43 = vld [vmem:[%s11784_s3 + $0xe28] sm:$0xff] }
 0x277   :  { %v2414_v33 = vld [vmem:[%s11784_s3 + $0x10a8] sm:$0xff] }
 0x278   :  { %5689 = vmatpush2.bf16.msra.mxu1 %v7502_v1  ;;  %5718 = vmatpush1.bf16.msra.mxu0 %v7550_v3  ;;  %v7711_v1 = vcombine.high %v2442_v61, %v2446_v44  ;;  %v2354_v3 = vld [vmem:[%s11784_s3 + $0xec8] sm:$0xff] }
 0x279   :  { %5690 = vmatprep.subr.bf16.mxu1 %v7495_v2  ;;  %5719 = vmatprep.subr.bf16.mxu0 %v7543_v4  ;;  %v2358_v4 = vld [vmem:[%s11784_s3 + $0xee8] sm:$0xff] }
 0x27a   :  { %v7623_v18 = vcombine.high %v2354_v3, %v2358_v4 }
 0x27c   :  { %5691 = vmatpush2.bf16.msra.mxu1 %v7494_v28  ;;  %5720 = vmatpush1.bf16.msra.mxu0 %v7542_v41 }
 0x27d   :  { %5692 = vmatprep.subr.bf16.mxu1 %v7487_v11  ;;  %5721 = vmatprep.subr.bf16.mxu0 %v7535_v58  ;;  %v7710_v11 = vcombine.low %v2442_v61, %v2446_v44  ;;  %v7598_v61 = vcombine.low %v2330_v63, %v2334_v43 }
 0x280   :  { %5693 = vmatpush2.bf16.msra.mxu1 %v7486_v42  ;;  %5722 = vmatpush1.bf16.msra.mxu0 %v7534_v34  ;;  %v2426_v42 = vld [vmem:[%s11784_s3 + $0x1108] sm:$0xff] }
 0x281   :  { %5694 = vmatprep.subr.bf16.mxu1 %v7479_v39  ;;  %5723 = vmatprep.subr.bf16.mxu0 %v7655_v47  ;;  %v2430_v34 = vld [vmem:[%s11784_s3 + $0x1128] sm:$0xff]  ;;  %v7622_v47 = vcombine.low %v2354_v3, %v2358_v4  ;;  %v1923_v4 = vld [vmem:[%s11784_s3 + $0x150] sm:$0xff] }
 0x282   :  { %v7695_v37 = vcombine.high %v2426_v42, %v2430_v34  ;;  %v7694_v50 = vcombine.low %v2426_v42, %v2430_v34  ;;  %v2063_v42 = vld [vmem:[%s11784_s3 + $0x5b0] sm:$0xff]  ;;  %v7192_v34 = vcombine.low %v1923_v4, %v1927_v6 }
 0x283   :  { %v5413_v52 = vpop.f32.mrf.mxu0 }
 0x284   :  { %5695 = vmatpush2.bf16.msra.mxu1 %v7478_v55  ;;  %5724 = vmatpush2.bf16.msra.mxu0 %v7654_v56  ;;  %v5414_v2 = vadd.f32 %v5413_v52, %v2462_v10  ;;  %v2338_v55 = vld [vmem:[%s11784_s3 + $0xe48] sm:$0xff]  ;;  %v1939_v10 = vld [vmem:[%s11784_s3 + $0x1d0] sm:$0xff] }
 0x285   :  { %v5415_v22 = vpop.f32.mrf.mxu0  ;;  %5696 = vmatprep.subr.bf16.mxu1 %v7471_v57  ;;  %5725 = vmatprep.subr.bf16.mxu0 %v7647_v20  ;;  %v2342_v56 = vld [vmem:[%s11784_s3 + $0xe68] sm:$0xff]  ;;  %v7208_v3 = vcombine.low %v1939_v10, %v1943_v25 }
 0x286   :  { %v5416_v28 = vadd.f32 %v5415_v22, %v2466_v17  ;;  %v2418_v57 = vld [vmem:[%s11784_s3 + $0x10c8] sm:$0xff]  ;;  %v7607_v48 = vcombine.high %v2338_v55, %v2342_v56  ;;  %v7599_v22 = vcombine.high %v2330_v63, %v2334_v43  ;;  %v7209_v17 = vcombine.high %v1939_v10, %v1943_v25  ;;  %v2047_v63 = vld [vmem:[%s11784_s3 + $0x530] sm:$0xff] }
 0x287   :  { %v5417_v51 = vpop.f32.mrf.mxu0  ;;  %v2422_v20 = vld [vmem:[%s11784_s3 + $0x10e8] sm:$0xff] }
 0x288   :  { %5697 = vmatpush2.bf16.msra.mxu1 %v7470_v13  ;;  %5726 = vmatpush2.bf16.msra.mxu0 %v7646_v29  ;;  %v7687_v14 = vcombine.high %v2418_v57, %v2422_v20  ;;  %v2410_v52 = vld [vmem:[%s11784_s3 + $0x1088] sm:$0xff]  ;;  %v7606_v13 = vcombine.low %v2338_v55, %v2342_v56  ;;  %v7686_v29 = vcombine.low %v2418_v57, %v2422_v20  ;;  %v2055_v55 = vld [vmem:[%s11784_s3 + $0x570] sm:$0xff] }
 0x289   :  { %v5418_v0 = vpop.f32.mrf.mxu0  ;;  %5727 = vmatprep.subr.bf16.mxu0 %v7639_v62  ;;  %5748 = vmatprep.subr.bf16.mxu1 %v7719_v36  ;;  %v7679_v62 = vcombine.high %v2410_v52, %v2414_v33  ;;  %v2402_v36 = vld [vmem:[%s11784_s3 + $0x1048] sm:$0xff]  ;;  %v7678_v44 = vcombine.low %v2410_v52, %v2414_v33  ;;  %v7328_v57 = vcombine.low %v2059_v54, %v2063_v42 }
 0x28a   :  { %v7671_v51 = vcombine.high %v2402_v36, %v2406_v59  ;;  %v1931_v0 = vld [vmem:[%s11784_s3 + $0x190] sm:$0xff] }
 0x28b   :  { %5699 = vmatmul.mubr.bf16.vlgmr.msra.gmra.mxu1 %v10136_v46  ;;  %v5454_v23 = vpop.f32.mrf.mxu1 }
 0x28c   :  { %v10582_v41 = vadd.f32 %v5454_v23, %v5414_v2  ;;  %5728 = vmatpush2.bf16.msra.mxu0 %v7638_v16  ;;  %5749 = vmatpush1.bf16.msra.mxu1 %v7718_v35  ;;  %v2394_v16 = vld [vmem:[%s11784_s3 + $0x1008] sm:$0xff]  ;;  %v2067_v23 = vld [vmem:[%s11784_s3 + $0x5d0] sm:$0xff] }
 0x28d   :  { %v5456_v58 = vpop.f32.mrf.mxu1  ;;  %5729 = vmatprep.subr.bf16.mxu0 %v7631_v49  ;;  %5750 = vmatprep.subr.bf16.mxu1 %v7711_v1  ;;  %v2398_v35 = vld [vmem:[%s11784_s3 + $0x1028] sm:$0xff]  ;;  %v1935_v49 = vld [vmem:[%s11784_s3 + $0x1b0] sm:$0xff]  ;;  %v7670_v1 = vcombine.low %v2402_v36, %v2406_v59 }
 0x28e   :  { %v10587_v26 = vadd.f32 %v5456_v58, %v5416_v28  ;;  %5780 = vmatprep.mubr.bf16.mxu1 %v8686_v40  ;;  %v7663_v2 = vcombine.high %v2394_v16, %v2398_v35  ;;  %v7201_v45 = vcombine.high %v1931_v0, %v1935_v49  ;;  %v7662_v28 = vcombine.low %v2394_v16, %v2398_v35  ;;  %v2039_v36 = vld [vmem:[%s11784_s3 + $0x4f0] sm:$0xff] }
 0x28f   :  { %v5458_v39 = vpop.f32.mrf.mxu1  ;;  %v7193_v58 = vcombine.high %v1923_v4, %v1927_v6  ;;  %v2031_v16 = vld [vmem:[%s11784_s3 + $0x4b0] sm:$0xff] }
 0x290   :  { %5730 = vmatpush2.bf16.msra.mxu0 %v7630_v53  ;;  %5751 = vmatpush1.bf16.msra.mxu1 %v7710_v11  ;;  %v2071_v53 = vld [vmem:[%s11784_s3 + $0x5f0] sm:$0xff]  ;;  %v7200_v11 = vcombine.low %v1931_v0, %v1935_v49 }
 0x291   :  { %v5459_v8 = vpop.f32.mrf.mxu1  ;;  %5731 = vmatprep.subr.bf16.mxu0 %v7623_v18  ;;  %5752 = vmatprep.subr.bf16.mxu1 %v7703_v21  ;;  %v7337_v18 = vcombine.high %v2067_v23, %v2071_v53  ;;  %v1915_v21 = vld [vmem:[%s11784_s3 + $0x110] sm:$0xff]  ;;  %v7336_v39 = vcombine.low %v2067_v23, %v2071_v53 }
 0x292   :  { %v7329_v8 = vcombine.high %v2059_v54, %v2063_v42  ;;  %v7184_v56 = vcombine.low %v1915_v21, %v1919_v15  ;;  %v2019_v4 = vld [vmem:[%s11784_s3 + $0x450] sm:$0xff] }
 0x294   :  { %5732 = vmatpush2.bf16.msra.mxu0 %v7622_v47  ;;  %5753 = vmatpush1.bf16.msra.mxu1 %v7702_v5  ;;  %v7185_v47 = vcombine.high %v1915_v21, %v1919_v15  ;;  %v1907_v5 = vld [vmem:[%s11784_s3 + $0xd0] sm:$0xff] }
 0x295   :  { %5733 = vmatprep.subr.bf16.mxu0 %v7615_v60  ;;  %5754 = vmatprep.subr.bf16.mxu1 %v7695_v37  ;;  %v1911_v60 = vld [vmem:[%s11784_s3 + $0xf0] sm:$0xff] }
 0x296   :  { %v2051_v37 = vld [vmem:[%s11784_s3 + $0x550] sm:$0xff]  ;;  %v7177_v20 = vcombine.high %v1907_v5, %v1911_v60  ;;  %v7176_v43 = vcombine.low %v1907_v5, %v1911_v60 }
 0x297   :  { %v7320_v52 = vcombine.low %v2051_v37, %v2055_v55  ;;  %v2015_v21 = vld [vmem:[%s11784_s3 + $0x430] sm:$0xff] }
 0x298   :  { %5734 = vmatpush2.bf16.msra.mxu0 %v7614_v38  ;;  %5755 = vmatpush1.bf16.msra.mxu1 %v7694_v50  ;;  %v7321_v38 = vcombine.high %v2051_v37, %v2055_v55  ;;  %v1899_v50 = vld [vmem:[%s11784_s3 + $0x90] sm:$0xff] }
 0x299   :  { %5735 = vmatprep.subr.bf16.mxu0 %v7607_v48  ;;  %5756 = vmatprep.subr.bf16.mxu1 %v7687_v14  ;;  %v1903_v48 = vld [vmem:[%s11784_s3 + $0xb0] sm:$0xff] }
 0x29a   :  { %v2043_v14 = vld [vmem:[%s11784_s3 + $0x510] sm:$0xff]  ;;  %v7169_v33 = vcombine.high %v1899_v50, %v1903_v48  ;;  %v7168_v59 = vcombine.low %v1899_v50, %v1903_v48 }
 0x29b   :  { %v7312_v10 = vcombine.low %v2043_v14, %v2047_v63  ;;  %v2131_v5 = vld [vmem:[%s11784_s3 + $0x7d0] sm:$0xff] }
 0x29c   :  { %5736 = vmatpush2.bf16.msra.mxu0 %v7606_v13  ;;  %5757 = vmatpush1.bf16.msra.mxu1 %v7686_v29  ;;  %v7313_v13 = vcombine.high %v2043_v14, %v2047_v63  ;;  %v1891_v29 = vld [vmem:[%s11784_s3 + $0x50] sm:$0xff] }
 0x29d   :  { %5737 = vmatprep.subr.bf16.mxu0 %v7599_v22  ;;  %5758 = vmatprep.subr.bf16.mxu1 %v7679_v62  ;;  %v1895_v22 = vld [vmem:[%s11784_s3 + $0x70] sm:$0xff] }
 0x29e   :  { %v2035_v62 = vld [vmem:[%s11784_s3 + $0x4d0] sm:$0xff]  ;;  %v7161_v25 = vcombine.high %v1891_v29, %v1895_v22  ;;  %v7160_v35 = vcombine.low %v1891_v29, %v1895_v22 }
 0x29f   :  { %v7304_v0 = vcombine.low %v2035_v62, %v2039_v36  ;;  %v1979_v50 = vld [vmem:[%s11784_s3 + $0x310] sm:$0xff] }
 0x2a0   :  { %5738 = vmatpush2.bf16.msra.mxu0 %v7598_v61  ;;  %5759 = vmatpush1.bf16.msra.mxu1 %v7678_v44  ;;  %v7305_v61 = vcombine.high %v2035_v62, %v2039_v36  ;;  %v1883_v44 = vld [vmem:[%s11784_s3 + $0x10] sm:$0xff] }
 0x2a1   :  { %5760 = vmatprep.subr.bf16.mxu1 %v7671_v51  ;;  %5789 = vmatprep.subr.bf16.mxu0 %v7209_v17  ;;  %v1887_v51 = vld [vmem:[%s11784_s3 + $0x30] sm:$0xff] }
 0x2a2   :  { %v2027_v17 = vld [vmem:[%s11784_s3 + $0x490] sm:$0xff]  ;;  %v7153_v49 = vcombine.high %v1883_v44, %v1887_v51  ;;  %v7152_v6 = vcombine.low %v1883_v44, %v1887_v51 }
 0x2a3   :  { %5740 = vmatmul.mubr.bf16.vlgmr.msra.gmra.mxu0 %v10165_v19  ;;  %v7296_v23 = vcombine.low %v2027_v17, %v2031_v16  ;;  %v1983_v14 = vld [vmem:[%s11784_s3 + $0x330] sm:$0xff] }
 0x2a4   :  { %5761 = vmatpush1.bf16.msra.mxu1 %v7670_v1  ;;  %5790 = vmatpush1.bf16.msra.mxu0 %v7208_v3  ;;  %v7297_v1 = vcombine.high %v2027_v17, %v2031_v16  ;;  %v2003_v3 = vld [vmem:[%s11784_s3 + $0x3d0] sm:$0xff] }
 0x2a5   :  { %5821 = vmatprep.mubr.bf16.mxu0 %v9881_v27  ;;  %5762 = vmatprep.subr.bf16.mxu1 %v7663_v2  ;;  %v2007_v2 = vld [vmem:[%s11784_s3 + $0x3f0] sm:$0xff] }
 0x2a6   :  { %5791 = vmatprep.subr.bf16.mxu0 %v7201_v45  ;;  %v2023_v45 = vld [vmem:[%s11784_s3 + $0x470] sm:$0xff]  ;;  %v7273_v53 = vcombine.high %v2003_v3, %v2007_v2  ;;  %v7272_v15 = vcombine.low %v2003_v3, %v2007_v2 }
 0x2a7   :  { %v7288_v54 = vcombine.low %v2019_v4, %v2023_v45  ;;  %v2127_v63 = vld [vmem:[%s11784_s3 + $0x7b0] sm:$0xff] }
 0x2a8   :  { %5763 = vmatpush1.bf16.msra.mxu1 %v7662_v28  ;;  %5792 = vmatpush1.bf16.msra.mxu0 %v7200_v11  ;;  %v7289_v28 = vcombine.high %v2019_v4, %v2023_v45  ;;  %v1995_v11 = vld [vmem:[%s11784_s3 + $0x390] sm:$0xff] }
 0x2a9   :  { %5793 = vmatprep.subr.bf16.mxu0 %v7193_v58  ;;  %5830 = vmatprep.subr.bf16.mxu1 %v7337_v18  ;;  %v1999_v58 = vld [vmem:[%s11784_s3 + $0x3b0] sm:$0xff] }
 0x2aa   :  { %v2011_v18 = vld [vmem:[%s11784_s3 + $0x410] sm:$0xff]  ;;  %v7265_v42 = vcombine.high %v1995_v11, %v1999_v58  ;;  %v7264_v55 = vcombine.low %v1995_v11, %v1999_v58 }
 0x2ab   :  { %5781 = vmatmul.mubr.bf16.vlgmr.msra.gmra.mxu1 %v10242_v9  ;;  %v1971_v22 = vld [vmem:[%s11784_s3 + $0x2d0] sm:$0xff] }
 0x2ac   :  { %5794 = vmatpush1.bf16.msra.mxu0 %v7192_v34  ;;  %5831 = vmatpush1.bf16.msra.mxu1 %v7336_v39  ;;  %v7281_v34 = vcombine.high %v2011_v18, %v2015_v21  ;;  %v1987_v39 = vld [vmem:[%s11784_s3 + $0x350] sm:$0xff] }
 0x2ad   :  { %5862 = vmatprep.mubr.bf16.mxu1 %v9925_v30  ;;  %5795 = vmatprep.subr.bf16.mxu0 %v7185_v47  ;;  %v1991_v47 = vld [vmem:[%s11784_s3 + $0x370] sm:$0xff] }
 0x2ae   :  { %5832 = vmatprep.subr.bf16.mxu1 %v7329_v8  ;;  %v2135_v8 = vld [vmem:[%s11784_s3 + $0x7f0] sm:$0xff] }
 0x2af   :  { %v1975_v62 = vld [vmem:[%s11784_s3 + $0x2f0] sm:$0xff] }
 0x2b0   :  { %5796 = vmatpush1.bf16.msra.mxu0 %v7184_v56  ;;  %5833 = vmatpush1.bf16.msra.mxu1 %v7328_v57  ;;  %v7280_v56 = vcombine.low %v2011_v18, %v2015_v21  ;;  %v2115_v36 = vld [vmem:[%s11784_s3 + $0x750] sm:$0xff]  ;;  %v7241_v17 = vcombine.high %v1971_v22, %v1975_v62  ;;  %v7240_v4 = vcombine.low %v1971_v22, %v1975_v62 }
 0x2b1   :  { %5797 = vmatprep.subr.bf16.mxu0 %v7177_v20  ;;  %5834 = vmatprep.subr.bf16.mxu1 %v7321_v38  ;;  %v7257_v20 = vcombine.high %v1987_v39, %v1991_v47  ;;  %v7401_v38 = vcombine.high %v2131_v5, %v2135_v8  ;;  %v2111_v3 = vld [vmem:[%s11784_s3 + $0x730] sm:$0xff] }
 0x2b2   :  { %v1959_v11 = vld [vmem:[%s11784_s3 + $0x270] sm:$0xff] }
 0x2b3   :  { %v2099_v58 = vld [vmem:[%s11784_s3 + $0x6d0] sm:$0xff] }
 0x2b4   :  { %5798 = vmatpush1.bf16.msra.mxu0 %v7176_v43  ;;  %5835 = vmatpush1.bf16.msra.mxu1 %v7320_v52  ;;  %v7256_v52 = vcombine.low %v1987_v39, %v1991_v47  ;;  %v2103_v18 = vld [vmem:[%s11784_s3 + $0x6f0] sm:$0xff] }
 0x2b5   :  { %5799 = vmatprep.subr.bf16.mxu0 %v7169_v33  ;;  %5836 = vmatprep.subr.bf16.mxu1 %v7313_v13  ;;  %v7400_v33 = vcombine.low %v2131_v5, %v2135_v8  ;;  %v1951_v39 = vld [vmem:[%s11784_s3 + $0x230] sm:$0xff] }
 0x2b6   :  { %v2091_v47 = vld [vmem:[%s11784_s3 + $0x690] sm:$0xff] }
 0x2b7   :  { %v2095_v5 = vld [vmem:[%s11784_s3 + $0x6b0] sm:$0xff] }
 0x2b8   :  { %5800 = vmatpush1.bf16.msra.mxu0 %v7168_v59  ;;  %5837 = vmatpush1.bf16.msra.mxu1 %v7312_v10  ;;  %v2119_v59 = vld [vmem:[%s11784_s3 + $0x770] sm:$0xff] }
 0x2b9   :  { %5801 = vmatprep.subr.bf16.mxu0 %v7161_v25  ;;  %5838 = vmatprep.subr.bf16.mxu1 %v7305_v61  ;;  %v7248_v61 = vcombine.low %v1979_v50, %v1983_v14  ;;  %v7385_v16 = vcombine.high %v2115_v36, %v2119_v59  ;;  %v7384_v45 = vcombine.low %v2115_v36, %v2119_v59  ;;  %v2179_v22 = vld [vmem:[%s11784_s3 + $0x950] sm:$0xff] }
 0x2ba   :  { %v2183_v36 = vld [vmem:[%s11784_s3 + $0x970] sm:$0xff] }
 0x2bb   :  { %v2323_v59 = vld [vmem:[%s11784_s3 + $0xdd0] sm:$0xff] }
 0x2bc   :  { %5802 = vmatpush1.bf16.msra.mxu0 %v7160_v35  ;;  %5839 = vmatpush1.bf16.msra.mxu1 %v7304_v0  ;;  %v1963_v35 = vld [vmem:[%s11784_s3 + $0x290] sm:$0xff] }
 0x2bd   :  { %5803 = vmatprep.subr.bf16.mxu0 %v7153_v49  ;;  %5840 = vmatprep.subr.bf16.mxu1 %v7297_v1  ;;  %v1967_v49 = vld [vmem:[%s11784_s3 + $0x2b0] sm:$0xff] }
 0x2be   :  { %v2107_v1 = vld [vmem:[%s11784_s3 + $0x710] sm:$0xff]  ;;  %v7232_v21 = vcombine.low %v1963_v35, %v1967_v49 }
 0x2c0   :  { %5804 = vmatpush1.bf16.msra.mxu0 %v7152_v6  ;;  %5841 = vmatpush1.bf16.msra.mxu1 %v7296_v23  ;;  %v7233_v23 = vcombine.high %v1963_v35, %v1967_v49  ;;  %v7449_v35 = vcombine.high %v2179_v22, %v2183_v36 }
 0x2c1   :  { %5805 = vmatprep.subr.bf16.mxu0 %v7273_v53  ;;  %5842 = vmatprep.subr.bf16.mxu1 %v7289_v28  ;;  %v7377_v53 = vcombine.high %v2107_v1, %v2111_v3  ;;  %v1955_v28 = vld [vmem:[%s11784_s3 + $0x250] sm:$0xff] }
 0x2c2   :  { %v7224_v8 = vcombine.low %v1955_v28, %v1959_v11 }
 0x2c3   :  { %v5495_v60 = vpop.f32.mrf.mxu0 }
 0x2c4   :  { %v5496_v37 = vadd.f32 %v5495_v60, %v10582_v41  ;;  %5806 = vmatpush2.bf16.msra.mxu0 %v7272_v15  ;;  %5843 = vmatpush1.bf16.msra.mxu1 %v7288_v54  ;;  %v2123_v41 = vld [vmem:[%s11784_s3 + $0x790] sm:$0xff]  ;;  %v7376_v15 = vcombine.low %v2107_v1, %v2111_v3  ;;  %v7225_v54 = vcombine.high %v1955_v28, %v1959_v11 }
 0x2c5   :  { %v5497_v57 = vpop.f32.mrf.mxu0  ;;  %5807 = vmatprep.subr.bf16.mxu0 %v7265_v42  ;;  %5844 = vmatprep.subr.bf16.mxu1 %v7281_v34  ;;  %v7393_v29 = vcombine.high %v2123_v41, %v2127_v63  ;;  %v7392_v44 = vcombine.low %v2123_v41, %v2127_v63  ;;  %v7369_v42 = vcombine.high %v2099_v58, %v2103_v18  ;;  %v1947_v34 = vld [vmem:[%s11784_s3 + $0x210] sm:$0xff] }
 0x2c6   :  { %v5498_v48 = vadd.f32 %v5497_v57, %v10587_v26  ;;  %v7249_v26 = vcombine.high %v1979_v50, %v1983_v14  ;;  %v7368_v60 = vcombine.low %v2099_v58, %v2103_v18  ;;  %v2087_v57 = vld [vmem:[%s11784_s3 + $0x670] sm:$0xff]  ;;  %v7216_v50 = vcombine.low %v1947_v34, %v1951_v39 }
 0x2c7   :  { %v5499_v43 = vpop.f32.mrf.mxu0  ;;  %v2075_v63 = vld [vmem:[%s11784_s3 + $0x610] sm:$0xff] }
 0x2c8   :  { %5808 = vmatpush2.bf16.msra.mxu0 %v7264_v55  ;;  %5845 = vmatpush1.bf16.msra.mxu1 %v7280_v56  ;;  %v7361_v55 = vcombine.high %v2091_v47, %v2095_v5  ;;  %v2083_v56 = vld [vmem:[%s11784_s3 + $0x650] sm:$0xff] }
 0x2c9   :  { %v5500_v13 = vpop.f32.mrf.mxu0  ;;  %5809 = vmatprep.subr.bf16.mxu0 %v7257_v20  ;;  %5846 = vmatprep.subr.bf16.mxu1 %v7401_v38  ;;  %v2195_v20 = vld [vmem:[%s11784_s3 + $0x9d0] sm:$0xff]  ;;  %v7353_v14 = vcombine.high %v2083_v56, %v2087_v57 }
 0x2ca   :  { %v2199_v38 = vld [vmem:[%s11784_s3 + $0x9f0] sm:$0xff]  ;;  %v7352_v13 = vcombine.low %v2083_v56, %v2087_v57 }
 0x2cb   :  { %v5536_v10 = vpop.f32.mrf.mxu1  ;;  %v7465_v41 = vcombine.high %v2195_v20, %v2199_v38  ;;  %v2079_v43 = vld [vmem:[%s11784_s3 + $0x630] sm:$0xff] }
 0x2cc   :  { %v10785_v25 = vadd.f32 %v5536_v10, %v5496_v37  ;;  %5810 = vmatpush2.bf16.msra.mxu0 %v7256_v52  ;;  %5847 = vmatpush2.bf16.msra.mxu1 %v7400_v33  ;;  %v7217_v37 = vcombine.high %v1947_v34, %v1951_v39  ;;  %v2187_v52 = vld [vmem:[%s11784_s3 + $0x990] sm:$0xff] }
 0x2cd   :  { %v5538_v51 = vpop.f32.mrf.mxu1  ;;  %5811 = vmatprep.subr.bf16.mxu0 %v7249_v26  ;;  %5848 = vmatprep.subr.bf16.mxu1 %v7393_v29  ;;  %v2191_v33 = vld [vmem:[%s11784_s3 + $0x9b0] sm:$0xff]  ;;  %v7464_v26 = vcombine.low %v2195_v20, %v2199_v38  ;;  %v7345_v29 = vcombine.high %v2075_v63, %v2079_v43 }
 0x2ce   :  { %v10790_v0 = vadd.f32 %v5538_v51, %v5498_v48  ;;  %v7360_v48 = vcombine.low %v2091_v47, %v2095_v5  ;;  %v7457_v62 = vcombine.high %v2187_v52, %v2191_v33  ;;  %v2327_v10 = vld [vmem:[%s11784_s3 + $0xdf0] sm:$0xff]  ;;  %v7344_v51 = vcombine.low %v2075_v63, %v2079_v43 }
 0x2cf   :  { %v5540_v2 = vpop.f32.mrf.mxu1  ;;  %v7593_v49 = vcombine.high %v2323_v59, %v2327_v10  ;;  %v2171_v3 = vld [vmem:[%s11784_s3 + $0x910] sm:$0xff] }
 0x2d0   :  { %5812 = vmatpush2.bf16.msra.mxu0 %v7248_v61  ;;  %5849 = vmatpush2.bf16.msra.mxu1 %v7392_v44  ;;  %v2163_v28 = vld [vmem:[%s11784_s3 + $0x8d0] sm:$0xff] }
 0x2d1   :  { %v5541_v6 = vpop.f32.mrf.mxu1  ;;  %5813 = vmatprep.subr.bf16.mxu0 %v7241_v17  ;;  %5850 = vmatprep.subr.bf16.mxu1 %v7385_v16  ;;  %v7456_v17 = vcombine.low %v2187_v52, %v2191_v33  ;;  %v2167_v58 = vld [vmem:[%s11784_s3 + $0x8f0] sm:$0xff] }
 0x2d2   :  { %v7592_v6 = vcombine.low %v2323_v59, %v2327_v10  ;;  %v2307_v18 = vld [vmem:[%s11784_s3 + $0xd50] sm:$0xff] }
 0x2d3   :  { %v2155_v39 = vld [vmem:[%s11784_s3 + $0x890] sm:$0xff] }
 0x2d4   :  { %5814 = vmatpush2.bf16.msra.mxu0 %v7240_v4  ;;  %5851 = vmatpush2.bf16.msra.mxu1 %v7384_v45  ;;  %v2315_v4 = vld [vmem:[%s11784_s3 + $0xd90] sm:$0xff] }
 0x2d5   :  { %5815 = vmatprep.subr.bf16.mxu0 %v7233_v23  ;;  %5852 = vmatprep.subr.bf16.mxu1 %v7377_v53  ;;  %v2319_v45 = vld [vmem:[%s11784_s3 + $0xdb0] sm:$0xff] }
 0x2d6   :  { %v7585_v11 = vcombine.high %v2315_v4, %v2319_v45  ;;  %v2159_v47 = vld [vmem:[%s11784_s3 + $0x8b0] sm:$0xff] }
 0x2d7   :  { %v2299_v5 = vld [vmem:[%s11784_s3 + $0xd10] sm:$0xff] }
 0x2d8   :  { %5816 = vmatpush2.bf16.msra.mxu0 %v7232_v21  ;;  %5853 = vmatpush2.bf16.msra.mxu1 %v7376_v15  ;;  %v2311_v21 = vld [vmem:[%s11784_s3 + $0xd70] sm:$0xff] }
 0x2d9   :  { %5817 = vmatprep.subr.bf16.mxu0 %v7225_v54  ;;  %5854 = vmatprep.subr.bf16.mxu1 %v7369_v42  ;;  %v7584_v54 = vcombine.low %v2315_v4, %v2319_v45  ;;  %v7433_v42 = vcombine.high %v2163_v28, %v2167_v58  ;;  %v7577_v34 = vcombine.high %v2307_v18, %v2311_v21  ;;  %v2147_v57 = vld [vmem:[%s11784_s3 + $0x850] sm:$0xff] }
 0x2da   :  { %v2151_v20 = vld [vmem:[%s11784_s3 + $0x870] sm:$0xff] }
 0x2db   :  { %v2291_v38 = vld [vmem:[%s11784_s3 + $0xcd0] sm:$0xff] }
 0x2dc   :  { %5818 = vmatpush2.bf16.msra.mxu0 %v7224_v8  ;;  %5855 = vmatpush2.bf16.msra.mxu1 %v7368_v60  ;;  %v2303_v8 = vld [vmem:[%s11784_s3 + $0xd30] sm:$0xff]  ;;  %v7432_v60 = vcombine.low %v2163_v28, %v2167_v58 }
 0x2dd   :  { %5819 = vmatprep.subr.bf16.mxu0 %v7217_v37  ;;  %5856 = vmatprep.subr.bf16.mxu1 %v7361_v55  ;;  %v7576_v37 = vcombine.low %v2307_v18, %v2311_v21  ;;  %v7425_v55 = vcombine.high %v2155_v39, %v2159_v47  ;;  %v7569_v56 = vcombine.high %v2299_v5, %v2303_v8  ;;  %v2139_v43 = vld [vmem:[%s11784_s3 + $0x810] sm:$0xff] }
 0x2de   :  { %v2143_v52 = vld [vmem:[%s11784_s3 + $0x830] sm:$0xff] }
 0x2df   :  { %v2283_v33 = vld [vmem:[%s11784_s3 + $0xc90] sm:$0xff] }
 0x2e0   :  { %5820 = vmatpush2.bf16.msra.mxu0 %v7216_v50  ;;  %5857 = vmatpush2.bf16.msra.mxu1 %v7360_v48  ;;  %v2295_v50 = vld [vmem:[%s11784_s3 + $0xcf0] sm:$0xff]  ;;  %v7424_v48 = vcombine.low %v2155_v39, %v2159_v47 }
 0x2e1   :  { %5858 = vmatprep.subr.bf16.mxu1 %v7353_v14  ;;  %5871 = vmatprep.subr.bf16.mxu0 %v7465_v41  ;;  %v7568_v14 = vcombine.low %v2299_v5, %v2303_v8  ;;  %v7417_v41 = vcombine.high %v2147_v57, %v2151_v20  ;;  %v7561_v63 = vcombine.high %v2291_v38, %v2295_v50  ;;  %v2263_v59 = vld [vmem:[%s11784_s3 + $0xbf0] sm:$0xff] }
 0x2e2   :  { %v2275_v10 = vld [vmem:[%s11784_s3 + $0xc50] sm:$0xff] }
 0x2e3   :  { %v5577_v61 = vpop.f32.mrf.mxu0  ;;  %5822 = vmatmul.mubr.bf16.vlgmr.msra.gmra.mxu0 %v9883_v32  ;;  %v2387_v28 = vld [vmem:[%s11784_s3 + $0xfd0] sm:$0xff] }
 0x2e4   :  { %v10863_v44 = vadd.f32 %v5577_v61, %v10785_v25  ;;  %5859 = vmatpush2.bf16.msra.mxu1 %v7352_v13  ;;  %5872 = vmatpush1.bf16.msra.mxu0 %v7464_v26  ;;  %v2175_v25 = vld [vmem:[%s11784_s3 + $0x930] sm:$0xff]  ;;  %v7416_v26 = vcombine.low %v2147_v57, %v2151_v20 }
 0x2e5   :  { %5903 = vmatprep.mubr.bf16.mxu0 %v9974_v31  ;;  %v5579_v16 = vpop.f32.mrf.mxu0  ;;  %5860 = vmatprep.subr.bf16.mxu1 %v7345_v29  ;;  %v7441_v53 = vcombine.high %v2171_v3, %v2175_v25  ;;  %v7440_v15 = vcombine.low %v2171_v3, %v2175_v25  ;;  %v2287_v13 = vld [vmem:[%s11784_s3 + $0xcb0] sm:$0xff]  ;;  %v7560_v29 = vcombine.low %v2291_v38, %v2295_v50 }
 0x2e6   :  { %v10867_v1 = vadd.f32 %v5579_v16, %v10790_v0  ;;  %5873 = vmatprep.subr.bf16.mxu0 %v7457_v62  ;;  %v7448_v0 = vcombine.low %v2179_v22, %v2183_v36  ;;  %v7409_v22 = vcombine.high %v2139_v43, %v2143_v52  ;;  %v7553_v62 = vcombine.high %v2283_v33, %v2287_v13  ;;  %v2259_v36 = vld [vmem:[%s11784_s3 + $0xbd0] sm:$0xff] }
 0x2e7   :  { %v5581_v2 = vpop.f32.mrf.mxu0  ;;  %v2279_v61 = vld [vmem:[%s11784_s3 + $0xc70] sm:$0xff]  ;;  %v7529_v16 = vcombine.high %v2259_v36, %v2263_v59  ;;  %v7528_v4 = vcombine.low %v2259_v36, %v2263_v59 }
 0x2e8   :  { %5861 = vmatpush2.bf16.msra.mxu1 %v7344_v51  ;;  %5874 = vmatpush1.bf16.msra.mxu0 %v7456_v17  ;;  %v7408_v51 = vcombine.low %v2139_v43, %v2143_v52  ;;  %v7552_v17 = vcombine.low %v2283_v33, %v2287_v13  ;;  %v2255_v3 = vld [vmem:[%s11784_s3 + $0xbb0] sm:$0xff]  ;;  %v7544_v45 = vcombine.low %v2275_v10, %v2279_v61 }
 0x2e9   :  { %v5582_v23 = vpop.f32.mrf.mxu0  ;;  %5875 = vmatprep.subr.bf16.mxu0 %v7449_v35  ;;  %5912 = vmatprep.subr.bf16.mxu1 %v7593_v49  ;;  %v7545_v35 = vcombine.high %v2275_v10, %v2279_v61  ;;  %v2251_v49 = vld [vmem:[%s11784_s3 + $0xb90] sm:$0xff] }
 0x2ea   :  { %v2267_v25 = vld [vmem:[%s11784_s3 + $0xc10] sm:$0xff]  ;;  %v7520_v58 = vcombine.low %v2251_v49, %v2255_v3 }
 0x2eb   :  { %5863 = vmatmul.mubr.bf16.vlgmr.msra.gmra.mxu1 %v9927_v7  ;;  %v2271_v2 = vld [vmem:[%s11784_s3 + $0xc30] sm:$0xff] }
 0x2ec   :  { %5876 = vmatpush1.bf16.msra.mxu0 %v7448_v0  ;;  %5913 = vmatpush1.bf16.msra.mxu1 %v7592_v6  ;;  %v7521_v0 = vcombine.high %v2251_v49, %v2255_v3  ;;  %v7537_v6 = vcombine.high %v2267_v25, %v2271_v2  ;;  %v2243_v23 = vld [vmem:[%s11784_s3 + $0xb50] sm:$0xff]  ;;  %v7536_v18 = vcombine.low %v2267_v25, %v2271_v2 }
 0x2ed   :  { %5944 = vmatprep.mubr.bf16.mxu1 %v10012_v24  ;;  %5877 = vmatprep.subr.bf16.mxu0 %v7441_v53  ;;  %v2247_v53 = vld [vmem:[%s11784_s3 + $0xb70] sm:$0xff] }
 0x2ee   :  { %5914 = vmatprep.subr.bf16.mxu1 %v7585_v11  ;;  %v2391_v11 = vld [vmem:[%s11784_s3 + $0xff0] sm:$0xff]  ;;  %v7513_v21 = vcombine.high %v2243_v23, %v2247_v53  ;;  %v7512_v47 = vcombine.low %v2243_v23, %v2247_v53 }
 0x2ef   :  { %v2383_v39 = vld [vmem:[%s11784_s3 + $0xfb0] sm:$0xff]  ;;  %v7656_v5 = vcombine.low %v2387_v28, %v2391_v11 }
 0x2f0   :  { %5878 = vmatpush1.bf16.msra.mxu0 %v7440_v15  ;;  %5915 = vmatpush1.bf16.msra.mxu1 %v7584_v54  ;;  %v7657_v15 = vcombine.high %v2387_v28, %v2391_v11  ;;  %v2235_v54 = vld [vmem:[%s11784_s3 + $0xb10] sm:$0xff]  ;;  %v2469_v28 = vsub.s32 2, %v10529_v12 }
 0x2f1   :  { %5879 = vmatprep.subr.bf16.mxu0 %v7433_v42  ;;  %5916 = vmatprep.subr.bf16.mxu1 %v7577_v34  ;;  %v2239_v42 = vld [vmem:[%s11784_s3 + $0xb30] sm:$0xff] }
 0x2f2   :  { %v2379_v34 = vld [vmem:[%s11784_s3 + $0xf90] sm:$0xff]  ;;  %v7505_v8 = vcombine.high %v2235_v54, %v2239_v42  ;;  %v7504_v38 = vcombine.low %v2235_v54, %v2239_v42 }
 0x2f3   :  { %v2375_v57 = vld [vmem:[%s11784_s3 + $0xf70] sm:$0xff]  ;;  %v7648_v50 = vcombine.low %v2379_v34, %v2383_v39 }
 0x2f4   :  { %5880 = vmatpush1.bf16.msra.mxu0 %v7432_v60  ;;  %5917 = vmatpush1.bf16.msra.mxu1 %v7576_v37  ;;  %v7649_v60 = vcombine.high %v2379_v34, %v2383_v39  ;;  %v2227_v37 = vld [vmem:[%s11784_s3 + $0xad0] sm:$0xff] }
 0x2f5   :  { %5881 = vmatprep.subr.bf16.mxu0 %v7425_v55  ;;  %5918 = vmatprep.subr.bf16.mxu1 %v7569_v56  ;;  %v2231_v55 = vld [vmem:[%s11784_s3 + $0xaf0] sm:$0xff] }
 0x2f6   :  { %v2371_v56 = vld [vmem:[%s11784_s3 + $0xf50] sm:$0xff] }
 0x2f7   :  { %v2223_v43 = vld [vmem:[%s11784_s3 + $0xab0] sm:$0xff] }
 0x2f8   :  { %5882 = vmatpush1.bf16.msra.mxu0 %v7424_v48  ;;  %5919 = vmatpush1.bf16.msra.mxu1 %v7568_v14  ;;  %v7497_v14 = vcombine.high %v2227_v37, %v2231_v55  ;;  %v2363_v52 = vld [vmem:[%s11784_s3 + $0xf10] sm:$0xff] }
 0x2f9   :  { %5883 = vmatprep.subr.bf16.mxu0 %v7417_v41  ;;  %5920 = vmatprep.subr.bf16.mxu1 %v7561_v63  ;;  %v7641_v41 = vcombine.high %v2371_v56, %v2375_v57  ;;  %v2219_v63 = vld [vmem:[%s11784_s3 + $0xa90] sm:$0xff] }
 0x2fa   :  { %v2367_v33 = vld [vmem:[%s11784_s3 + $0xf30] sm:$0xff] }
 0x2fb   :  { %v7633_v36 = vcombine.high %v2363_v52, %v2367_v33  ;;  %v2211_v59 = vld [vmem:[%s11784_s3 + $0xa50] sm:$0xff] }
 0x2fc   :  { %5884 = vmatpush1.bf16.msra.mxu0 %v7416_v26  ;;  %5921 = vmatpush1.bf16.msra.mxu1 %v7560_v29  ;;  %v7496_v26 = vcombine.low %v2227_v37, %v2231_v55  ;;  %v7640_v29 = vcombine.low %v2371_v56, %v2375_v57  ;;  %v2215_v10 = vld [vmem:[%s11784_s3 + $0xa70] sm:$0xff] }
 0x2fd   :  { %5885 = vmatprep.subr.bf16.mxu0 %v7409_v22  ;;  %5922 = vmatprep.subr.bf16.mxu1 %v7553_v62  ;;  %v7489_v62 = vcombine.high %v2219_v63, %v2223_v43  ;;  %v2355_v61 = vld [vmem:[%s11784_s3 + $0xed0] sm:$0xff] }
 0x2fe   :  { %v2203_v3 = vld [vmem:[%s11784_s3 + $0xa10] sm:$0xff] }
 0x2ff   :  { %v2207_v25 = vld [vmem:[%s11784_s3 + $0xa30] sm:$0xff] }
 0x300   :  { %5886 = vmatpush1.bf16.msra.mxu0 %v7408_v51  ;;  %5923 = vmatpush1.bf16.msra.mxu1 %v7552_v17  ;;  %v2359_v51 = vld [vmem:[%s11784_s3 + $0xef0] sm:$0xff]  ;;  %v7488_v17 = vcombine.low %v2219_v63, %v2223_v43  ;;  %v1940_v43 = vld [vmem:[%s11784_s3 + $0x1d8] sm:$0xff] }
 0x301   :  { %5887 = vmatprep.subr.bf16.mxu0 %v7529_v16  ;;  %5924 = vmatprep.subr.bf16.mxu1 %v7545_v35  ;;  %v7632_v16 = vcombine.low %v2363_v52, %v2367_v33  ;;  %v7481_v35 = vcombine.high %v2211_v59, %v2215_v10  ;;  %v7625_v49 = vcombine.high %v2355_v61, %v2359_v51  ;;  %v2347_v2 = vld [vmem:[%s11784_s3 + $0xe90] sm:$0xff]  ;;  %v1944_v52 = vld [vmem:[%s11784_s3 + $0x1f8] sm:$0xff] }
 0x302   :  { %v2339_v53 = vld [vmem:[%s11784_s3 + $0xe50] sm:$0xff] }
 0x303   :  { %v2343_v11 = vld [vmem:[%s11784_s3 + $0xe70] sm:$0xff] }
 0x304   :  { %5888 = vmatpush2.bf16.msra.mxu0 %v7528_v4  ;;  %5925 = vmatpush1.bf16.msra.mxu1 %v7544_v45  ;;  %v2351_v4 = vld [vmem:[%s11784_s3 + $0xeb0] sm:$0xff]  ;;  %v7480_v45 = vcombine.low %v2211_v59, %v2215_v10  ;;  %v7609_v42 = vcombine.high %v2339_v53, %v2343_v11  ;;  %v7608_v56 = vcombine.low %v2339_v53, %v2343_v11 }
 0x305   :  { %5889 = vmatprep.subr.bf16.mxu0 %v7521_v0  ;;  %5926 = vmatprep.subr.bf16.mxu1 %v7537_v6  ;;  %v7624_v0 = vcombine.low %v2355_v61, %v2359_v51  ;;  %v7473_v6 = vcombine.high %v2203_v3, %v2207_v25  ;;  %v7617_v23 = vcombine.high %v2347_v2, %v2351_v4  ;;  %v2331_v39 = vld [vmem:[%s11784_s3 + $0xe10] sm:$0xff]  ;;  %v1932_v51 = vld [vmem:[%s11784_s3 + $0x198] sm:$0xff] }
 0x306   :  { %v7616_v54 = vcombine.low %v2347_v2, %v2351_v4  ;;  %v2447_v37 = vld [vmem:[%s11784_s3 + $0x11b0] sm:$0xff] }
 0x307   :  { %v2439_v63 = vld [vmem:[%s11784_s3 + $0x1170] sm:$0xff] }
 0x308   :  { %5890 = vmatpush2.bf16.msra.mxu0 %v7520_v58  ;;  %5927 = vmatpush1.bf16.msra.mxu1 %v7536_v18  ;;  %v2451_v58 = vld [vmem:[%s11784_s3 + $0x11d0] sm:$0xff] }
 0x309   :  { %5891 = vmatprep.subr.bf16.mxu0 %v7513_v21  ;;  %5928 = vmatprep.subr.bf16.mxu1 %v7657_v15  ;;  %v2455_v18 = vld [vmem:[%s11784_s3 + $0x11f0] sm:$0xff]  ;;  %v2473_v21 = vsub.s32 3, %v10529_v12  ;;  %v7472_v15 = vcombine.low %v2203_v3, %v2207_v25 }
 0x30a   :  { %v7721_v34 = vcombine.high %v2451_v58, %v2455_v18  ;;  %v7720_v57 = vcombine.low %v2451_v58, %v2455_v18  ;;  %v2427_v10 = vld [vmem:[%s11784_s3 + $0x1110] sm:$0xff]  ;;  %v1916_v18 = vld [vmem:[%s11784_s3 + $0x118] sm:$0xff] }
 0x30b   :  { %v10991_v20 = vpop.f32.mrf.mxu1  ;;  %v2419_v25 = vld [vmem:[%s11784_s3 + $0x10d0] sm:$0xff] }
 0x30c   :  { %5892 = vmatpush2.bf16.msra.mxu0 %v7512_v47  ;;  %5929 = vmatpush2.bf16.msra.mxu1 %v7656_v5  ;;  %v11051_v47 = vld [vmem:[%s11785_s4] sm:$0xff]  ;;  %v2423_v4 = vld [vmem:[%s11784_s3 + $0x10f0] sm:$0xff] }
 0x30d   :  { %v10993_v48 = vpop.f32.mrf.mxu1  ;;  %5893 = vmatprep.subr.bf16.mxu0 %v7505_v8  ;;  %5930 = vmatprep.subr.bf16.mxu1 %v7649_v60  ;;  %v2470_v5 = vrot.slane %v11051_v47, %v2469_v28  ;;  %v2335_v8 = vld [vmem:[%s11784_s3 + $0xe30] sm:$0xff]  ;;  %v2474_v55 = vrot.slane %v11051_v47, %v2473_v21  ;;  %v7689_v53 = vcombine.high %v2419_v25, %v2423_v4 }
 0x30e   :  { %v2443_v60 = vld [vmem:[%s11784_s3 + $0x1190] sm:$0xff]  ;;  %v7688_v21 = vcombine.low %v2419_v25, %v2423_v4  ;;  %v2052_v4 = vld [vmem:[%s11784_s3 + $0x558] sm:$0xff] }
 0x30f   :  { %v5622_v13 = vpop.f32.mrf.mxu1  ;;  %v2411_v11 = vld [vmem:[%s11784_s3 + $0x1090] sm:$0xff] }
 0x310   :  { %5894 = vmatpush2.bf16.msra.mxu0 %v7504_v38  ;;  %5931 = vmatpush2.bf16.msra.mxu1 %v7648_v50  ;;  %v7601_v38 = vcombine.high %v2331_v39, %v2335_v8  ;;  %v7713_v50 = vcombine.high %v2443_v60, %v2447_v37  ;;  %v7600_v13 = vcombine.low %v2331_v39, %v2335_v8  ;;  %v2415_v58 = vld [vmem:[%s11784_s3 + $0x10b0] sm:$0xff]  ;;  %v1912_v8 = vld [vmem:[%s11784_s3 + $0xf8] sm:$0xff] }
 0x311   :  { %v5623_v22 = vpop.f32.mrf.mxu1  ;;  %5895 = vmatprep.subr.bf16.mxu0 %v7497_v14  ;;  %5932 = vmatprep.subr.bf16.mxu1 %v7641_v41  ;;  %v2435_v14 = vld [vmem:[%s11784_s3 + $0x1150] sm:$0xff]  ;;  %v5619_v41 = vadd.f32 %v10991_v20, %v2470_v5  ;;  %v7712_v20 = vcombine.low %v2443_v60, %v2447_v37  ;;  %v1908_v5 = vld [vmem:[%s11784_s3 + $0xd8] sm:$0xff]  ;;  %v7680_v60 = vcombine.low %v2411_v11, %v2415_v58 }
 0x312   :  { %v2407_v39 = vld [vmem:[%s11784_s3 + $0x1070] sm:$0xff] }
 0x314   :  { %5896 = vmatpush2.bf16.msra.mxu0 %v7496_v26  ;;  %5933 = vmatpush2.bf16.msra.mxu1 %v7640_v29  ;;  %v5621_v26 = vadd.f32 %v10993_v48, %v2474_v55  ;;  %v2431_v48 = vld [vmem:[%s11784_s3 + $0x1130] sm:$0xff] }
 0x315   :  { %5897 = vmatprep.subr.bf16.mxu0 %v7489_v62  ;;  %5934 = vmatprep.subr.bf16.mxu1 %v7633_v36  ;;  %v7705_v62 = vcombine.high %v2435_v14, %v2439_v63  ;;  %v7211_v36 = vcombine.high %v1940_v43, %v1944_v52  ;;  %v7697_v3 = vcombine.high %v2427_v10, %v2431_v48 }
 0x318   :  { %5898 = vmatpush2.bf16.msra.mxu0 %v7488_v17  ;;  %5935 = vmatpush2.bf16.msra.mxu1 %v7632_v16  ;;  %v1936_v17 = vld [vmem:[%s11784_s3 + $0x1b8] sm:$0xff]  ;;  %v7704_v16 = vcombine.low %v2435_v14, %v2439_v63  ;;  %v7178_v63 = vcombine.low %v1908_v5, %v1912_v8 }
 0x319   :  { %5899 = vmatprep.subr.bf16.mxu0 %v7481_v35  ;;  %5936 = vmatprep.subr.bf16.mxu1 %v7625_v49  ;;  %v7210_v35 = vcombine.low %v1940_v43, %v1944_v52  ;;  %v7203_v2 = vcombine.high %v1932_v51, %v1936_v17  ;;  %v1904_v14 = vld [vmem:[%s11784_s3 + $0xb8] sm:$0xff] }
 0x31c   :  { %5900 = vmatpush2.bf16.msra.mxu0 %v7480_v45  ;;  %5937 = vmatpush2.bf16.msra.mxu1 %v7624_v0  ;;  %v1924_v45 = vld [vmem:[%s11784_s3 + $0x158] sm:$0xff] }
 0x31d   :  { %5901 = vmatprep.subr.bf16.mxu0 %v7473_v6  ;;  %5938 = vmatprep.subr.bf16.mxu1 %v7617_v23  ;;  %v1928_v0 = vld [vmem:[%s11784_s3 + $0x178] sm:$0xff]  ;;  %v7696_v6 = vcombine.low %v2427_v10, %v2431_v48  ;;  %v7202_v23 = vcombine.low %v1932_v51, %v1936_v17 }
 0x31e   :  { %v7195_v28 = vcombine.high %v1924_v45, %v1928_v0  ;;  %v1884_v48 = vld [vmem:[%s11784_s3 + $0x18] sm:$0xff] }
 0x31f   :  { %v2060_v51 = vld [vmem:[%s11784_s3 + $0x598] sm:$0xff] }
 0x320   :  { %5902 = vmatpush2.bf16.msra.mxu0 %v7472_v15  ;;  %5939 = vmatpush2.bf16.msra.mxu1 %v7616_v54  ;;  %v7194_v15 = vcombine.low %v1924_v45, %v1928_v0  ;;  %v7681_v54 = vcombine.high %v2411_v11, %v2415_v58  ;;  %v2064_v17 = vld [vmem:[%s11784_s3 + $0x5b8] sm:$0xff] }
 0x321   :  { %5940 = vmatprep.subr.bf16.mxu1 %v7609_v42  ;;  %5953 = vmatprep.subr.bf16.mxu0 %v7721_v34  ;;  %v2403_v34 = vld [vmem:[%s11784_s3 + $0x1050] sm:$0xff]  ;;  %v7331_v25 = vcombine.high %v2060_v51, %v2064_v17  ;;  %v2056_v45 = vld [vmem:[%s11784_s3 + $0x578] sm:$0xff] }
 0x322   :  { %v7673_v55 = vcombine.high %v2403_v34, %v2407_v39  ;;  %v2000_v11 = vld [vmem:[%s11784_s3 + $0x3b8] sm:$0xff] }
 0x323   :  { %v5659_v33 = vpop.f32.mrf.mxu0  ;;  %5904 = vmatmul.mubr.bf16.vlgmr.msra.gmra.mxu0 %v10136_v46  ;;  %v2044_v58 = vld [vmem:[%s11784_s3 + $0x518] sm:$0xff] }
 0x324   :  { %v11079_v29 = vadd.f32 %v5659_v33, %v5619_v41  ;;  %5941 = vmatpush2.bf16.msra.mxu1 %v7608_v56  ;;  %5954 = vmatpush1.bf16.msra.mxu0 %v7720_v57  ;;  %v7179_v56 = vcombine.high %v1908_v5, %v1912_v8  ;;  %v2395_v57 = vld [vmem:[%s11784_s3 + $0x1010] sm:$0xff]  ;;  %v7672_v41 = vcombine.low %v2403_v34, %v2407_v39  ;;  %v1892_v33 = vld [vmem:[%s11784_s3 + $0x58] sm:$0xff] }
 0x325   :  { %v5661_v22 = vpop.f32.mrf.mxu0  ;;  %5942 = vmatprep.subr.bf16.mxu1 %v7601_v38  ;;  %5955 = vmatprep.subr.bf16.mxu0 %v7713_v50  ;;  %v2399_v38 = vld [vmem:[%s11784_s3 + $0x1030] sm:$0xff]  ;;  %v1900_v50 = vld [vmem:[%s11784_s3 + $0x98] sm:$0xff] }
 0x326   :  { %v11081_v59 = vadd.f32 %v5661_v22, %v5621_v26  ;;  %5985 = vmatprep.mubr.bf16.mxu0 %v8686_v40  ;;  %v7665_v43 = vcombine.high %v2395_v57, %v2399_v38  ;;  %v7171_v52 = vcombine.high %v1900_v50, %v1904_v14  ;;  %v2068_v26 = vld [vmem:[%s11784_s3 + $0x5d8] sm:$0xff]  ;;  %v7664_v22 = vcombine.low %v2395_v57, %v2399_v38 }
 0x327   :  { %v5663_v61 = vpop.f32.mrf.mxu0  ;;  %v2036_v34 = vld [vmem:[%s11784_s3 + $0x4d8] sm:$0xff] }
 0x328   :  { %5943 = vmatpush2.bf16.msra.mxu1 %v7600_v13  ;;  %5956 = vmatpush1.bf16.msra.mxu0 %v7712_v20  ;;  %v1896_v13 = vld [vmem:[%s11784_s3 + $0x78] sm:$0xff] }
 0x329   :  { %v5664_v49 = vpop.f32.mrf.mxu0  ;;  %5957 = vmatprep.subr.bf16.mxu0 %v7705_v62  ;;  %5994 = vmatprep.subr.bf16.mxu1 %v7211_v36  ;;  %v2072_v20 = vld [vmem:[%s11784_s3 + $0x5f8] sm:$0xff]  ;;  %v7170_v62 = vcombine.low %v1900_v50, %v1904_v14  ;;  %v7163_v36 = vcombine.high %v1892_v33, %v1896_v13 }
 0x32a   :  { %v7339_v10 = vcombine.high %v2068_v26, %v2072_v20  ;;  %v1888_v61 = vld [vmem:[%s11784_s3 + $0x38] sm:$0xff] }
 0x32b   :  { %5945 = vmatmul.mubr.bf16.vlgmr.msra.gmra.mxu1 %v10165_v19  ;;  %v7155_v49 = vcombine.high %v1884_v48, %v1888_v61  ;;  %v7154_v0 = vcombine.low %v1884_v48, %v1888_v61  ;;  %v2040_v39 = vld [vmem:[%s11784_s3 + $0x4f8] sm:$0xff] }
 0x32c   :  { %5958 = vmatpush1.bf16.msra.mxu0 %v7704_v16  ;;  %5995 = vmatpush1.bf16.msra.mxu1 %v7210_v35  ;;  %v7162_v16 = vcombine.low %v1892_v33, %v1896_v13  ;;  %v7338_v35 = vcombine.low %v2068_v26, %v2072_v20  ;;  %v7307_v57 = vcombine.high %v2036_v34, %v2040_v39  ;;  %v1980_v38 = vld [vmem:[%s11784_s3 + $0x318] sm:$0xff] }
 0x32d   :  { %6026 = vmatprep.mubr.bf16.mxu1 %v9881_v27  ;;  %5959 = vmatprep.subr.bf16.mxu0 %v7697_v3  ;;  %v1920_v27 = vld [vmem:[%s11784_s3 + $0x138] sm:$0xff] }
 0x32e   :  { %5996 = vmatprep.subr.bf16.mxu1 %v7203_v2  ;;  %v7187_v42 = vcombine.high %v1916_v18, %v1920_v27  ;;  %v7186_v37 = vcombine.low %v1916_v18, %v1920_v27  ;;  %v2004_v3 = vld [vmem:[%s11784_s3 + $0x3d8] sm:$0xff]  ;;  %v7322_v27 = vcombine.low %v2052_v4, %v2056_v45 }
 0x32f   :  { %v2008_v2 = vld [vmem:[%s11784_s3 + $0x3f8] sm:$0xff] }
 0x330   :  { %5960 = vmatpush1.bf16.msra.mxu0 %v7696_v6  ;;  %5997 = vmatpush1.bf16.msra.mxu1 %v7202_v23  ;;  %v7330_v6 = vcombine.low %v2060_v51, %v2064_v17  ;;  %v7275_v23 = vcombine.high %v2004_v3, %v2008_v2  ;;  %v7274_v18 = vcombine.low %v2004_v3, %v2008_v2  ;;  %v2028_v14 = vld [vmem:[%s11784_s3 + $0x498] sm:$0xff] }
 0x331   :  { %5961 = vmatprep.subr.bf16.mxu0 %v7689_v53  ;;  %5998 = vmatprep.subr.bf16.mxu1 %v7195_v28  ;;  %v7323_v53 = vcombine.high %v2052_v4, %v2056_v45  ;;  %v1996_v28 = vld [vmem:[%s11784_s3 + $0x398] sm:$0xff] }
 0x332   :  { %v1972_v26 = vld [vmem:[%s11784_s3 + $0x2d8] sm:$0xff] }
 0x333   :  { %v1976_v20 = vld [vmem:[%s11784_s3 + $0x2f8] sm:$0xff] }
 0x334   :  { %5962 = vmatpush1.bf16.msra.mxu0 %v7688_v21  ;;  %5999 = vmatpush1.bf16.msra.mxu1 %v7194_v15  ;;  %v7267_v21 = vcombine.high %v1996_v28, %v2000_v11  ;;  %v7243_v48 = vcombine.high %v1972_v26, %v1976_v20  ;;  %v1964_v51 = vld [vmem:[%s11784_s3 + $0x298] sm:$0xff] }
 0x335   :  { %5963 = vmatprep.subr.bf16.mxu0 %v7681_v54  ;;  %6000 = vmatprep.subr.bf16.mxu1 %v7187_v42  ;;  %v1988_v54 = vld [vmem:[%s11784_s3 + $0x358] sm:$0xff] }
 0x336   :  { %v1992_v42 = vld [vmem:[%s11784_s3 + $0x378] sm:$0xff] }
 0x337   :  { %v1968_v17 = vld [vmem:[%s11784_s3 + $0x2b8] sm:$0xff] }
 0x338   :  { %5964 = vmatpush1.bf16.msra.mxu0 %v7680_v60  ;;  %6001 = vmatpush1.bf16.msra.mxu1 %v7186_v37  ;;  %v7266_v60 = vcombine.low %v1996_v28, %v2000_v11  ;;  %v1956_v4 = vld [vmem:[%s11784_s3 + $0x258] sm:$0xff] }
 0x339   :  { %5965 = vmatprep.subr.bf16.mxu0 %v7673_v55  ;;  %6002 = vmatprep.subr.bf16.mxu1 %v7179_v56  ;;  %v7259_v56 = vcombine.high %v1988_v54, %v1992_v42  ;;  %v1960_v45 = vld [vmem:[%s11784_s3 + $0x278] sm:$0xff] }
 0x33a   :  { %v7227_v28 = vcombine.high %v1956_v4, %v1960_v45 }
 0x33c   :  { %5966 = vmatpush1.bf16.msra.mxu0 %v7672_v41  ;;  %6003 = vmatpush1.bf16.msra.mxu1 %v7178_v63  ;;  %v2032_v41 = vld [vmem:[%s11784_s3 + $0x4b8] sm:$0xff] }
 0x33d   :  { %5967 = vmatprep.subr.bf16.mxu0 %v7665_v43  ;;  %6004 = vmatprep.subr.bf16.mxu1 %v7171_v52  ;;  %v7258_v43 = vcombine.low %v1988_v54, %v1992_v42  ;;  %v7306_v52 = vcombine.low %v2036_v34, %v2040_v39  ;;  %v7299_v13 = vcombine.high %v2028_v14, %v2032_v41  ;;  %v2116_v34 = vld [vmem:[%s11784_s3 + $0x758] sm:$0xff] }
 0x33e   :  { %v2120_v39 = vld [vmem:[%s11784_s3 + $0x778] sm:$0xff] }
 0x340   :  { %5968 = vmatpush1.bf16.msra.mxu0 %v7664_v22  ;;  %6005 = vmatpush1.bf16.msra.mxu1 %v7170_v62  ;;  %v2020_v22 = vld [vmem:[%s11784_s3 + $0x458] sm:$0xff] }
 0x341   :  { %6006 = vmatprep.subr.bf16.mxu1 %v7163_v36  ;;  %6035 = vmatprep.subr.bf16.mxu0 %v7339_v10  ;;  %v2024_v62 = vld [vmem:[%s11784_s3 + $0x478] sm:$0xff]  ;;  %v7298_v10 = vcombine.low %v2028_v14, %v2032_v41 }
 0x342   :  { %v7291_v61 = vcombine.high %v2020_v22, %v2024_v62  ;;  %v7290_v3 = vcombine.low %v2020_v22, %v2024_v62  ;;  %v2104_v62 = vld [vmem:[%s11784_s3 + $0x6f8] sm:$0xff] }
 0x343   :  { %5986 = vmatmul.mubr.bf16.vlgmr.msra.gmra.mxu0 %v10242_v9 }
 0x344   :  { %6007 = vmatpush1.bf16.msra.mxu1 %v7162_v16  ;;  %6036 = vmatpush1.bf16.msra.mxu0 %v7338_v35  ;;  %v2012_v16 = vld [vmem:[%s11784_s3 + $0x418] sm:$0xff] }
 0x345   :  { %6067 = vmatprep.mubr.bf16.mxu0 %v9925_v30  ;;  %6008 = vmatprep.subr.bf16.mxu1 %v7155_v49  ;;  %v2048_v30 = vld [vmem:[%s11784_s3 + $0x538] sm:$0xff]  ;;  %v7242_v49 = vcombine.low %v1972_v26, %v1976_v20 }
 0x346   :  { %6037 = vmatprep.subr.bf16.mxu0 %v7331_v25  ;;  %v7315_v15 = vcombine.high %v2044_v58, %v2048_v30  ;;  %v7314_v37 = vcombine.low %v2044_v58, %v2048_v30  ;;  %v2016_v35 = vld [vmem:[%s11784_s3 + $0x438] sm:$0xff]  ;;  %v7235_v25 = vcombine.high %v1964_v51, %v1968_v17 }
 0x347   :  { %v7283_v2 = vcombine.high %v2012_v16, %v2016_v35  ;;  %v1948_v58 = vld [vmem:[%s11784_s3 + $0x218] sm:$0xff] }
 0x348   :  { %6009 = vmatpush1.bf16.msra.mxu1 %v7154_v0  ;;  %6038 = vmatpush1.bf16.msra.mxu0 %v7330_v6  ;;  %v2132_v0 = vld [vmem:[%s11784_s3 + $0x7d8] sm:$0xff] }
 0x349   :  { %6010 = vmatprep.subr.bf16.mxu1 %v7275_v23  ;;  %6039 = vmatprep.subr.bf16.mxu0 %v7323_v53  ;;  %v2136_v6 = vld [vmem:[%s11784_s3 + $0x7f8] sm:$0xff]  ;;  %v7234_v23 = vcombine.low %v1964_v51, %v1968_v17  ;;  %v7282_v53 = vcombine.low %v2012_v16, %v2016_v35 }
 0x34a   :  { %v7403_v11 = vcombine.high %v2132_v0, %v2136_v6  ;;  %v1952_v30 = vld [vmem:[%s11784_s3 + $0x238] sm:$0xff] }
 0x34b   :  { %v5700_v5 = vpop.f32.mrf.mxu1  ;;  %v7219_v54 = vcombine.high %v1948_v58, %v1952_v30  ;;  %v2100_v20 = vld [vmem:[%s11784_s3 + $0x6d8] sm:$0xff] }
 0x34c   :  { %v11209_v8 = vadd.f32 %v5700_v5, %v11079_v29  ;;  %6011 = vmatpush2.bf16.msra.mxu1 %v7274_v18  ;;  %6040 = vmatpush1.bf16.msra.mxu0 %v7322_v27  ;;  %v1984_v29 = vld [vmem:[%s11784_s3 + $0x338] sm:$0xff]  ;;  %v7371_v35 = vcombine.high %v2100_v20, %v2104_v62 }
 0x34d   :  { %v5702_v55 = vpop.f32.mrf.mxu1  ;;  %6012 = vmatprep.subr.bf16.mxu1 %v7267_v21  ;;  %6041 = vmatprep.subr.bf16.mxu0 %v7315_v15  ;;  %v7250_v36 = vcombine.low %v1980_v38, %v1984_v29  ;;  %v2124_v18 = vld [vmem:[%s11784_s3 + $0x798] sm:$0xff]  ;;  %v7226_v21 = vcombine.low %v1956_v4, %v1960_v45  ;;  %v7402_v15 = vcombine.low %v2132_v0, %v2136_v6 }
 0x34e   :  { %v11215_v50 = vadd.f32 %v5702_v55, %v11081_v59  ;;  %v7251_v59 = vcombine.high %v1980_v38, %v1984_v29  ;;  %v2128_v27 = vld [vmem:[%s11784_s3 + $0x7b8] sm:$0xff]  ;;  %v7387_v29 = vcombine.high %v2116_v34, %v2120_v39  ;;  %v7370_v45 = vcombine.low %v2100_v20, %v2104_v62 }
 0x34f   :  { %v5704_v63 = vpop.f32.mrf.mxu1  ;;  %v7395_v42 = vcombine.high %v2124_v18, %v2128_v27  ;;  %v2196_v5 = vld [vmem:[%s11784_s3 + $0x9d8] sm:$0xff] }
 0x350   :  { %6013 = vmatpush2.bf16.msra.mxu1 %v7266_v60  ;;  %6042 = vmatpush1.bf16.msra.mxu0 %v7314_v37  ;;  %v2200_v60 = vld [vmem:[%s11784_s3 + $0x9f8] sm:$0xff] }
 0x351   :  { %v5705_v33 = vpop.f32.mrf.mxu1  ;;  %6014 = vmatprep.subr.bf16.mxu1 %v7259_v56  ;;  %6043 = vmatprep.subr.bf16.mxu0 %v7307_v57  ;;  %v7218_v56 = vcombine.low %v1948_v58, %v1952_v30  ;;  %v7394_v57 = vcombine.low %v2124_v18, %v2128_v27  ;;  %v7467_v14 = vcombine.high %v2196_v5, %v2200_v60  ;;  %v2108_v63 = vld [vmem:[%s11784_s3 + $0x718] sm:$0xff] }
 0x352   :  { %v2192_v33 = vld [vmem:[%s11784_s3 + $0x9b8] sm:$0xff] }
 0x353   :  { %v2164_v58 = vld [vmem:[%s11784_s3 + $0x8d8] sm:$0xff] }
 0x354   :  { %6015 = vmatpush2.bf16.msra.mxu1 %v7258_v43  ;;  %6044 = vmatpush1.bf16.msra.mxu0 %v7306_v52  ;;  %v2112_v43 = vld [vmem:[%s11784_s3 + $0x738] sm:$0xff] }
 0x355   :  { %6016 = vmatprep.subr.bf16.mxu1 %v7251_v59  ;;  %6045 = vmatprep.subr.bf16.mxu0 %v7299_v13  ;;  %v2188_v52 = vld [vmem:[%s11784_s3 + $0x998] sm:$0xff]  ;;  %v7466_v59 = vcombine.low %v2196_v5, %v2200_v60  ;;  %v7379_v26 = vcombine.high %v2108_v63, %v2112_v43  ;;  %v7378_v51 = vcombine.low %v2108_v63, %v2112_v43 }
 0x356   :  { %v7459_v22 = vcombine.high %v2188_v52, %v2192_v33  ;;  %v7458_v17 = vcombine.low %v2188_v52, %v2192_v33  ;;  %v2168_v30 = vld [vmem:[%s11784_s3 + $0x8f8] sm:$0xff] }
 0x357   :  { %v7434_v60 = vcombine.low %v2164_v58, %v2168_v30  ;;  %v2144_v52 = vld [vmem:[%s11784_s3 + $0x838] sm:$0xff] }
 0x358   :  { %6017 = vmatpush2.bf16.msra.mxu1 %v7250_v36  ;;  %6046 = vmatpush1.bf16.msra.mxu0 %v7298_v10  ;;  %v2180_v36 = vld [vmem:[%s11784_s3 + $0x958] sm:$0xff] }
 0x359   :  { %6018 = vmatprep.subr.bf16.mxu1 %v7243_v48  ;;  %6047 = vmatprep.subr.bf16.mxu0 %v7291_v61  ;;  %v2184_v10 = vld [vmem:[%s11784_s3 + $0x978] sm:$0xff] }
 0x35a   :  { %v7450_v0 = vcombine.low %v2180_v36, %v2184_v10  ;;  %v2316_v33 = vld [vmem:[%s11784_s3 + $0xd98] sm:$0xff] }
 0x35b   :  { %v2260_v20 = vld [vmem:[%s11784_s3 + $0xbd8] sm:$0xff] }
 0x35c   :  { %6019 = vmatpush2.bf16.msra.mxu1 %v7242_v49  ;;  %6048 = vmatpush1.bf16.msra.mxu0 %v7290_v3  ;;  %v7451_v49 = vcombine.high %v2180_v36, %v2184_v10  ;;  %v2092_v3 = vld [vmem:[%s11784_s3 + $0x698] sm:$0xff] }
 0x35d   :  { %6020 = vmatprep.subr.bf16.mxu1 %v7235_v25  ;;  %6049 = vmatprep.subr.bf16.mxu0 %v7283_v2  ;;  %v2172_v2 = vld [vmem:[%s11784_s3 + $0x918] sm:$0xff] }
 0x35e   :  { %v2264_v62 = vld [vmem:[%s11784_s3 + $0xbf8] sm:$0xff] }
 0x35f   :  { %v2308_v36 = vld [vmem:[%s11784_s3 + $0xd58] sm:$0xff] }
 0x360   :  { %6021 = vmatpush2.bf16.msra.mxu1 %v7234_v23  ;;  %6050 = vmatpush1.bf16.msra.mxu0 %v7282_v53  ;;  %v2312_v10 = vld [vmem:[%s11784_s3 + $0xd78] sm:$0xff] }
 0x361   :  { %6022 = vmatprep.subr.bf16.mxu1 %v7227_v28  ;;  %6051 = vmatprep.subr.bf16.mxu0 %v7403_v11  ;;  %v2084_v28 = vld [vmem:[%s11784_s3 + $0x658] sm:$0xff] }
 0x362   :  { %v2088_v11 = vld [vmem:[%s11784_s3 + $0x678] sm:$0xff] }
 0x363   :  { %v5741_v37 = vpop.f32.mrf.mxu0  ;;  %v7354_v5 = vcombine.low %v2084_v28, %v2088_v11 }
 0x364   :  { %v5742_v55 = vadd.f32 %v5741_v37, %v11209_v8  ;;  %6023 = vmatpush2.bf16.msra.mxu1 %v7226_v21  ;;  %6052 = vmatpush2.bf16.msra.mxu0 %v7402_v15  ;;  %v7355_v21 = vcombine.high %v2084_v28, %v2088_v11  ;;  %v7435_v15 = vcombine.high %v2164_v58, %v2168_v30  ;;  %v2236_v58 = vld [vmem:[%s11784_s3 + $0xb18] sm:$0xff] }
 0x365   :  { %v5743_v38 = vpop.f32.mrf.mxu0  ;;  %6024 = vmatprep.subr.bf16.mxu1 %v7219_v54  ;;  %6053 = vmatprep.subr.bf16.mxu0 %v7395_v42  ;;  %v2076_v54 = vld [vmem:[%s11784_s3 + $0x618] sm:$0xff] }
 0x366   :  { %v5744_v41 = vadd.f32 %v5743_v38, %v11215_v50  ;;  %v7386_v50 = vcombine.low %v2116_v34, %v2120_v39  ;;  %v2080_v42 = vld [vmem:[%s11784_s3 + $0x638] sm:$0xff] }
 0x367   :  { %v5745_v8 = vpop.f32.mrf.mxu0  ;;  %v2156_v34 = vld [vmem:[%s11784_s3 + $0x898] sm:$0xff]  ;;  %v7347_v37 = vcombine.high %v2076_v54, %v2080_v42 }
 0x368   :  { %6025 = vmatpush2.bf16.msra.mxu1 %v7218_v56  ;;  %6054 = vmatpush2.bf16.msra.mxu0 %v7394_v57  ;;  %v2160_v39 = vld [vmem:[%s11784_s3 + $0x8b8] sm:$0xff] }
 0x369   :  { %v5746_v13 = vpop.f32.mrf.mxu0  ;;  %6055 = vmatprep.subr.bf16.mxu0 %v7387_v29  ;;  %6076 = vmatprep.subr.bf16.mxu1 %v7467_v14  ;;  %v2148_v56 = vld [vmem:[%s11784_s3 + $0x858] sm:$0xff]  ;;  %v7346_v14 = vcombine.low %v2076_v54, %v2080_v42 }
 0x36a   :  { %v2152_v57 = vld [vmem:[%s11784_s3 + $0x878] sm:$0xff] }
 0x36b   :  { %v5782_v48 = vpop.f32.mrf.mxu1  ;;  %6027 = vmatmul.mubr.bf16.vlgmr.msra.gmra.mxu1 %v9883_v32  ;;  %v2096_v32 = vld [vmem:[%s11784_s3 + $0x6b8] sm:$0xff]  ;;  %v7419_v63 = vcombine.high %v2148_v56, %v2152_v57 }
 0x36c   :  { %v11313_v61 = vadd.f32 %v5782_v48, %v5742_v55  ;;  %6056 = vmatpush2.bf16.msra.mxu0 %v7386_v50  ;;  %6077 = vmatpush1.bf16.msra.mxu1 %v7466_v59  ;;  %v7363_v23 = vcombine.high %v2092_v3, %v2096_v32  ;;  %v7362_v18 = vcombine.low %v2092_v3, %v2096_v32  ;;  %v2324_v38 = vld [vmem:[%s11784_s3 + $0xdd8] sm:$0xff] }
 0x36d   :  { %6108 = vmatprep.mubr.bf16.mxu1 %v9974_v31  ;;  %v5784_v16 = vpop.f32.mrf.mxu1  ;;  %6057 = vmatprep.subr.bf16.mxu0 %v7379_v26  ;;  %v2176_v31 = vld [vmem:[%s11784_s3 + $0x938] sm:$0xff]  ;;  %v7427_v55 = vcombine.high %v2156_v34, %v2160_v39  ;;  %v7418_v59 = vcombine.low %v2148_v56, %v2152_v57  ;;  %v7530_v3 = vcombine.low %v2260_v20, %v2264_v62 }
 0x36e   :  { %v11319_v25 = vadd.f32 %v5784_v16, %v5744_v41  ;;  %6078 = vmatprep.subr.bf16.mxu1 %v7459_v22  ;;  %v7443_v53 = vcombine.high %v2172_v2, %v2176_v31  ;;  %v7442_v27 = vcombine.low %v2172_v2, %v2176_v31  ;;  %v2328_v29 = vld [vmem:[%s11784_s3 + $0xdf8] sm:$0xff]  ;;  %v7426_v41 = vcombine.low %v2156_v34, %v2160_v39 }
 0x36f   :  { %v5786_v4 = vpop.f32.mrf.mxu1  ;;  %v7595_v43 = vcombine.high %v2324_v38, %v2328_v29  ;;  %v2140_v8 = vld [vmem:[%s11784_s3 + $0x818] sm:$0xff]  ;;  %v7594_v13 = vcombine.low %v2324_v38, %v2328_v29  ;;  %v7579_v16 = vcombine.high %v2308_v36, %v2312_v10  ;;  %v7578_v32 = vcombine.low %v2308_v36, %v2312_v10 }
 0x370   :  { %6058 = vmatpush2.bf16.msra.mxu0 %v7378_v51  ;;  %6079 = vmatpush1.bf16.msra.mxu1 %v7458_v17  ;;  %v2320_v50 = vld [vmem:[%s11784_s3 + $0xdb8] sm:$0xff]  ;;  %v7411_v26 = vcombine.high %v2140_v8, %v2144_v52  ;;  %v7410_v48 = vcombine.low %v2140_v8, %v2144_v52  ;;  %v7531_v17 = vcombine.high %v2260_v20, %v2264_v62 }
 0x371   :  { %v5787_v6 = vpop.f32.mrf.mxu1  ;;  %6059 = vmatprep.subr.bf16.mxu0 %v7371_v35  ;;  %6080 = vmatprep.subr.bf16.mxu1 %v7451_v49  ;;  %v7587_v22 = vcombine.high %v2316_v33, %v2320_v50  ;;  %v7586_v51 = vcombine.low %v2316_v33, %v2320_v50  ;;  %v2252_v35 = vld [vmem:[%s11784_s3 + $0xb98] sm:$0xff] }
 0x372   :  { %v2256_v49 = vld [vmem:[%s11784_s3 + $0xbb8] sm:$0xff] }
 0x373   :  { %v7523_v2 = vcombine.high %v2252_v35, %v2256_v49  ;;  %v2244_v4 = vld [vmem:[%s11784_s3 + $0xb58] sm:$0xff] }
 0x374   :  { %6060 = vmatpush2.bf16.msra.mxu0 %v7370_v45  ;;  %6081 = vmatpush1.bf16.msra.mxu1 %v7450_v0  ;;  %v2248_v45 = vld [vmem:[%s11784_s3 + $0xb78] sm:$0xff] }
 0x375   :  { %6061 = vmatprep.subr.bf16.mxu0 %v7363_v23  ;;  %6082 = vmatprep.subr.bf16.mxu1 %v7443_v53  ;;  %v2292_v0 = vld [vmem:[%s11784_s3 + $0xcd8] sm:$0xff]  ;;  %v7522_v23 = vcombine.low %v2252_v35, %v2256_v49  ;;  %v7515_v28 = vcombine.high %v2244_v4, %v2248_v45 }
 0x376   :  { %v2296_v6 = vld [vmem:[%s11784_s3 + $0xcf8] sm:$0xff] }
 0x377   :  { %v7563_v11 = vcombine.high %v2292_v0, %v2296_v6  ;;  %v2240_v30 = vld [vmem:[%s11784_s3 + $0xb38] sm:$0xff] }
 0x378   :  { %6062 = vmatpush2.bf16.msra.mxu0 %v7362_v18  ;;  %6083 = vmatpush1.bf16.msra.mxu1 %v7442_v27  ;;  %v2284_v18 = vld [vmem:[%s11784_s3 + $0xc98] sm:$0xff]  ;;  %v7507_v54 = vcombine.high %v2236_v58, %v2240_v30 }
 0x379   :  { %6063 = vmatprep.subr.bf16.mxu0 %v7355_v21  ;;  %6084 = vmatprep.subr.bf16.mxu1 %v7435_v15  ;;  %v2288_v27 = vld [vmem:[%s11784_s3 + $0xcb8] sm:$0xff]  ;;  %v7514_v21 = vcombine.low %v2244_v4, %v2248_v45  ;;  %v7562_v15 = vcombine.low %v2292_v0, %v2296_v6  ;;  %v2481_v4 = vsub.s32 5, %v10529_v12 }
 0x37a   :  { %v7555_v42 = vcombine.high %v2284_v18, %v2288_v27  ;;  %v2228_v34 = vld [vmem:[%s11784_s3 + $0xad8] sm:$0xff] }
 0x37b   :  { %v2232_v39 = vld [vmem:[%s11784_s3 + $0xaf8] sm:$0xff] }
 0x37c   :  { %6064 = vmatpush2.bf16.msra.mxu0 %v7354_v5  ;;  %6085 = vmatpush1.bf16.msra.mxu1 %v7434_v60  ;;  %v2276_v5 = vld [vmem:[%s11784_s3 + $0xc58] sm:$0xff]  ;;  %v7499_v56 = vcombine.high %v2228_v34, %v2232_v39 }
 0x37d   :  { %6065 = vmatprep.subr.bf16.mxu0 %v7347_v37  ;;  %6086 = vmatprep.subr.bf16.mxu1 %v7427_v55  ;;  %v2280_v60 = vld [vmem:[%s11784_s3 + $0xc78] sm:$0xff]  ;;  %v7506_v37 = vcombine.low %v2236_v58, %v2240_v30  ;;  %v7554_v55 = vcombine.low %v2284_v18, %v2288_v27 }
 0x37e   :  { %v7547_v57 = vcombine.high %v2276_v5, %v2280_v60  ;;  %v2220_v38 = vld [vmem:[%s11784_s3 + $0xa98] sm:$0xff] }
 0x37f   :  { %v2224_v29 = vld [vmem:[%s11784_s3 + $0xab8] sm:$0xff] }
 0x380   :  { %6066 = vmatpush2.bf16.msra.mxu0 %v7346_v14  ;;  %6087 = vmatpush1.bf16.msra.mxu1 %v7426_v41  ;;  %v2268_v14 = vld [vmem:[%s11784_s3 + $0xc18] sm:$0xff]  ;;  %v7491_v8 = vcombine.high %v2220_v38, %v2224_v29 }
 0x381   :  { %6088 = vmatprep.subr.bf16.mxu1 %v7419_v63  ;;  %6117 = vmatprep.subr.bf16.mxu0 %v7595_v43  ;;  %v2272_v41 = vld [vmem:[%s11784_s3 + $0xc38] sm:$0xff]  ;;  %v7498_v63 = vcombine.low %v2228_v34, %v2232_v39  ;;  %v7546_v43 = vcombine.low %v2276_v5, %v2280_v60 }
 0x382   :  { %v7539_v52 = vcombine.high %v2268_v14, %v2272_v41  ;;  %v2212_v33 = vld [vmem:[%s11784_s3 + $0xa58] sm:$0xff]  ;;  %v7538_v20 = vcombine.low %v2268_v14, %v2272_v41 }
 0x383   :  { %6068 = vmatmul.mubr.bf16.vlgmr.msra.gmra.mxu0 %v9927_v7  ;;  %v2300_v7 = vld [vmem:[%s11784_s3 + $0xd18] sm:$0xff] }
 0x384   :  { %6089 = vmatpush1.bf16.msra.mxu1 %v7418_v59  ;;  %6118 = vmatpush1.bf16.msra.mxu0 %v7594_v13  ;;  %v2216_v50 = vld [vmem:[%s11784_s3 + $0xa78] sm:$0xff] }
 0x385   :  { %6149 = vmatprep.mubr.bf16.mxu0 %v10012_v24  ;;  %6090 = vmatprep.subr.bf16.mxu1 %v7411_v26  ;;  %v2304_v24 = vld [vmem:[%s11784_s3 + $0xd38] sm:$0xff]  ;;  %v7490_v26 = vcombine.low %v2220_v38, %v2224_v29 }
 0x386   :  { %6119 = vmatprep.subr.bf16.mxu0 %v7587_v22  ;;  %v7571_v31 = vcombine.high %v2300_v7, %v2304_v24  ;;  %v7570_v53 = vcombine.low %v2300_v7, %v2304_v24  ;;  %v2388_v59 = vld [vmem:[%s11784_s3 + $0xfd8] sm:$0xff]  ;;  %v7483_v22 = vcombine.high %v2212_v33, %v2216_v50  ;;  %v2477_v24 = vsub.s32 4, %v10529_v12 }
 0x387   :  { %v2392_v13 = vld [vmem:[%s11784_s3 + $0xff8] sm:$0xff] }
 0x388   :  { %6091 = vmatpush1.bf16.msra.mxu1 %v7410_v48  ;;  %6120 = vmatpush1.bf16.msra.mxu0 %v7586_v51  ;;  %v7659_v62 = vcombine.high %v2388_v59, %v2392_v13  ;;  %v2204_v36 = vld [vmem:[%s11784_s3 + $0xa18] sm:$0xff] }
 0x389   :  { %6092 = vmatprep.subr.bf16.mxu1 %v7531_v17  ;;  %6121 = vmatprep.subr.bf16.mxu0 %v7579_v16  ;;  %v2208_v10 = vld [vmem:[%s11784_s3 + $0xa38] sm:$0xff]  ;;  %v7482_v17 = vcombine.low %v2212_v33, %v2216_v50  ;;  %v7658_v16 = vcombine.low %v2388_v59, %v2392_v13 }
 0x38a   :  { %v2380_v48 = vld [vmem:[%s11784_s3 + $0xf98] sm:$0xff]  ;;  %v7475_v35 = vcombine.high %v2204_v36, %v2208_v10  ;;  %v7474_v45 = vcombine.low %v2204_v36, %v2208_v10 }
 0x38b   :  { %v2384_v51 = vld [vmem:[%s11784_s3 + $0xfb8] sm:$0xff] }
 0x38c   :  { %6093 = vmatpush2.bf16.msra.mxu1 %v7530_v3  ;;  %6122 = vmatpush1.bf16.msra.mxu0 %v7578_v32  ;;  %v7651_v49 = vcombine.high %v2380_v48, %v2384_v51  ;;  %v2372_v7 = vld [vmem:[%s11784_s3 + $0xf58] sm:$0xff]  ;;  %v7650_v0 = vcombine.low %v2380_v48, %v2384_v51 }
 0x38d   :  { %6094 = vmatprep.subr.bf16.mxu1 %v7523_v2  ;;  %6123 = vmatprep.subr.bf16.mxu0 %v7571_v31  ;;  %v2376_v3 = vld [vmem:[%s11784_s3 + $0xf78] sm:$0xff] }
 0x38e   :  { %v2452_v32 = vld [vmem:[%s11784_s3 + $0x11d8] sm:$0xff] }
 0x38f   :  { %v2456_v2 = vld [vmem:[%s11784_s3 + $0x11f8] sm:$0xff] }
 0x390   :  { %6095 = vmatpush2.bf16.msra.mxu1 %v7522_v23  ;;  %6124 = vmatpush1.bf16.msra.mxu0 %v7570_v53  ;;  %v7643_v23 = vcombine.high %v2372_v7, %v2376_v3  ;;  %v7723_v53 = vcombine.high %v2452_v32, %v2456_v2  ;;  %v2368_v58 = vld [vmem:[%s11784_s3 + $0xf38] sm:$0xff] }
 0x391   :  { %6096 = vmatprep.subr.bf16.mxu1 %v7515_v28  ;;  %6125 = vmatprep.subr.bf16.mxu0 %v7563_v11  ;;  %v2364_v28 = vld [vmem:[%s11784_s3 + $0xf18] sm:$0xff]  ;;  %v2478_v11 = vrot.slane %v11051_v47, %v2477_v24 }
 0x392   :  { %v2444_v30 = vld [vmem:[%s11784_s3 + $0x1198] sm:$0xff]  ;;  %v7635_v34 = vcombine.high %v2364_v28, %v2368_v58 }
 0x393   :  { %v2448_v18 = vld [vmem:[%s11784_s3 + $0x11b8] sm:$0xff] }
 0x394   :  { %6097 = vmatpush2.bf16.msra.mxu1 %v7514_v21  ;;  %6126 = vmatpush1.bf16.msra.mxu0 %v7562_v15  ;;  %v2482_v21 = vrot.slane %v11051_v47, %v2481_v4  ;;  %v7642_v15 = vcombine.low %v2372_v7, %v2376_v3  ;;  %v7715_v39 = vcombine.high %v2444_v30, %v2448_v18  ;;  %v2356_v5 = vld [vmem:[%s11784_s3 + $0xed8] sm:$0xff] }
 0x395   :  { %6098 = vmatprep.subr.bf16.mxu1 %v7507_v54  ;;  %6127 = vmatprep.subr.bf16.mxu0 %v7555_v42  ;;  %v7722_v54 = vcombine.low %v2452_v32, %v2456_v2  ;;  %v2436_v47 = vld [vmem:[%s11784_s3 + $0x1158] sm:$0xff]  ;;  %v7714_v14 = vcombine.low %v2444_v30, %v2448_v18  ;;  %v6200_v30 = vmax.f32 %v10867_v1, 0.0 }
 0x396   :  { %v2428_v33 = vld [vmem:[%s11784_s3 + $0x1118] sm:$0xff] }
 0x397   :  { %v2432_v50 = vld [vmem:[%s11784_s3 + $0x1138] sm:$0xff] }
 0x398   :  { %6099 = vmatpush2.bf16.msra.mxu1 %v7506_v37  ;;  %6128 = vmatpush1.bf16.msra.mxu0 %v7554_v55  ;;  %v2360_v37 = vld [vmem:[%s11784_s3 + $0xef8] sm:$0xff] }
 0x399   :  { %6100 = vmatprep.subr.bf16.mxu1 %v7499_v56  ;;  %6129 = vmatprep.subr.bf16.mxu0 %v7547_v57  ;;  %v2440_v55 = vld [vmem:[%s11784_s3 + $0x1178] sm:$0xff]  ;;  %v7634_v57 = vcombine.low %v2364_v28, %v2368_v58  ;;  %v7626_v13 = vcombine.low %v2356_v5, %v2360_v37 }
 0x39a   :  { %v2340_v36 = vld [vmem:[%s11784_s3 + $0xe58] sm:$0xff] }
 0x39b   :  { %v2344_v10 = vld [vmem:[%s11784_s3 + $0xe78] sm:$0xff] }
 0x39c   :  { %6101 = vmatpush2.bf16.msra.mxu1 %v7498_v63  ;;  %6130 = vmatpush1.bf16.msra.mxu0 %v7546_v43  ;;  %v7627_v63 = vcombine.high %v2356_v5, %v2360_v37  ;;  %v7707_v43 = vcombine.high %v2436_v47, %v2440_v55  ;;  %v2424_v48 = vld [vmem:[%s11784_s3 + $0x10f8] sm:$0xff]  ;;  %v7610_v32 = vcombine.low %v2340_v36, %v2344_v10  ;;  %v8571_v5 = vld [vmem:[%s11786_s5 + $0x28] sm:$0xff]   ;;  %v8573_v37 = vld [vmem:[%s11786_s5 + $0x60] sm:$0xff]  }
 0x39d   :  { %6102 = vmatprep.subr.bf16.mxu1 %v7491_v8  ;;  %6131 = vmatprep.subr.bf16.mxu0 %v7539_v52  ;;  %v2348_v8 = vld [vmem:[%s11784_s3 + $0xe98] sm:$0xff] }
 0x39e   :  { %v2336_v7 = vld [vmem:[%s11784_s3 + $0xe38] sm:$0xff] }
 0x39f   :  { %v2412_v24 = vld [vmem:[%s11784_s3 + $0x1098] sm:$0xff] }
 0x3a0   :  { %6103 = vmatpush2.bf16.msra.mxu1 %v7490_v26  ;;  %6132 = vmatpush1.bf16.msra.mxu0 %v7538_v20  ;;  %v7706_v26 = vcombine.low %v2436_v47, %v2440_v55  ;;  %v2416_v3 = vld [vmem:[%s11784_s3 + $0x10b8] sm:$0xff]  ;;  %v8575_v55 = vld [vmem:[%s11786_s5 + $0x20] sm:$0xff]  }
 0x3a1   :  { %6104 = vmatprep.subr.bf16.mxu1 %v7483_v22  ;;  %6133 = vmatprep.subr.bf16.mxu0 %v7659_v62  ;;  %v7699_v62 = vcombine.high %v2428_v33, %v2432_v50  ;;  %v7683_v4 = vcombine.high %v2412_v24, %v2416_v3  ;;  %v8565_v28 = vld [vmem:[%s11786_s5 + $0x78] sm:$0xff]  }
 0x3a2   :  { %v2400_v58 = vld [vmem:[%s11784_s3 + $0x1038] sm:$0xff] }
 0x3a3   :  { %v5823_v31 = vpop.f32.mrf.mxu0 }
 0x3a4   :  { %6105 = vmatpush2.bf16.msra.mxu1 %v7482_v17  ;;  %6134 = vmatpush2.bf16.msra.mxu0 %v7658_v16  ;;  %v5824_v60 = vadd.f32 %v5823_v31, %v2478_v11  ;;  %v7698_v17 = vcombine.low %v2428_v33, %v2432_v50  ;;  %v7611_v16 = vcombine.high %v2340_v36, %v2344_v10  ;;  %v2396_v11 = vld [vmem:[%s11784_s3 + $0x1018] sm:$0xff]  ;;  %v8587_v50 = vld [vmem:[%s11786_s5 + $0x8] sm:$0xff]  }
 0x3a5   :  { %v5825_v6 = vpop.f32.mrf.mxu0  ;;  %6106 = vmatprep.subr.bf16.mxu1 %v7475_v35  ;;  %6135 = vmatprep.subr.bf16.mxu0 %v7651_v49  ;;  %v2332_v49 = vld [vmem:[%s11784_s3 + $0xe18] sm:$0xff]  ;;  %v7666_v1 = vcombine.low %v2396_v11, %v2400_v58  ;;  %v8593_v36 = vld [vmem:[%s11786_s5 + $0xc8] sm:$0xff]  }
 0x3a6   :  { %v5826_v38 = vadd.f32 %v5825_v6, %v2482_v21  ;;  %v7603_v31 = vcombine.high %v2332_v49, %v2336_v7  ;;  %v7602_v6 = vcombine.low %v2332_v49, %v2336_v7  ;;  %v7667_v21 = vcombine.high %v2396_v11, %v2400_v58  ;;  %v8586_v33 = vld [vmem:[%s11786_s5 + $0xd8] sm:$0xff]   ;;  %v8600_v49 = vld [vmem:[%s11786_s5 + $0x130] sm:$0xff]  }
 0x3a7   :  { %v5827_v27 = vpop.f32.mrf.mxu0  ;;  %v8597_v10 = vld [vmem:[%s11786_s5 + $0x178] sm:$0xff]   ;;  %v6201_v7 = vmax.f32 %v11313_v61, 0.0  ;;  %v8603_v61 = vld [vmem:[%s11786_s5 + $0x160] sm:$0xff]   ;;  %v8607_v11 = vld [vmem:[%s11786_s5 + $0x150] sm:$0xff]  }
 0x3a8   :  { %6107 = vmatpush2.bf16.msra.mxu1 %v7474_v45  ;;  %6136 = vmatpush2.bf16.msra.mxu0 %v7650_v0  ;;  %v2404_v45 = vld [vmem:[%s11784_s3 + $0x1058] sm:$0xff] }
 0x3a9   :  { %v5828_v42 = vpop.f32.mrf.mxu0  ;;  %6137 = vmatprep.subr.bf16.mxu0 %v7643_v23  ;;  %6158 = vmatprep.subr.bf16.mxu1 %v7723_v53  ;;  %v2408_v0 = vld [vmem:[%s11784_s3 + $0x1078] sm:$0xff]  ;;  %v7682_v23 = vcombine.low %v2412_v24, %v2416_v3  ;;  %v8601_v3 = vld [vmem:[%s11786_s5 + $0x168] sm:$0xff]  }
 0x3aa   :  { %v7675_v53 = vcombine.high %v2404_v45, %v2408_v0  ;;  %v7674_v18 = vcombine.low %v2404_v45, %v2408_v0  ;;  %v8566_v27 = vld [vmem:[%s11786_s5 + $0x38] sm:$0xff]   ;;  %v8568_v42 = vld [vmem:[%s11786_s5 + $0x30] sm:$0xff]   ;;  %v8604_v0 = vld [vmem:[%s11786_s5 + $0x120] sm:$0xff]  }
 0x3ab   :  { %v5864_v56 = vpop.f32.mrf.mxu1  ;;  %6109 = vmatmul.mubr.bf16.vlgmr.msra.gmra.mxu1 %v10136_v46  ;;  %v2352_v46 = vld [vmem:[%s11784_s3 + $0xeb8] sm:$0xff] }
 0x3ac   :  { %v11517_v29 = vadd.f32 %v5864_v56, %v5824_v60  ;;  %6138 = vmatpush2.bf16.msra.mxu0 %v7642_v15  ;;  %6159 = vmatpush1.bf16.msra.mxu1 %v7722_v54  ;;  %v7619_v22 = vcombine.high %v2348_v8, %v2352_v46  ;;  %v7618_v51 = vcombine.low %v2348_v8, %v2352_v46  ;;  %v8567_v15 = vld [vmem:[%s11786_s5 + $0x70] sm:$0xff]   ;;  %v8572_v60 = vld [vmem:[%s11786_s5 + $0xb8] sm:$0xff]   ;;  %v8584_v8 = vld [vmem:[%s11786_s5 + $0xa0] sm:$0xff]  }
 0x3ad   :  { %v5866_v41 = vpop.f32.mrf.mxu1  ;;  %6139 = vmatprep.subr.bf16.mxu0 %v7635_v34  ;;  %6160 = vmatprep.subr.bf16.mxu1 %v7715_v39  ;;  %v6208_v54 = vpack.c.bf16 %v6200_v30, %v6200_v30  ;;  %v8569_v34 = vld [vmem:[%s11786_s5 + $0x68] sm:$0xff]   ;;  %v8570_v39 = vld [vmem:[%s11786_s5 + $0xf8] sm:$0xff]   ;;  %v8576_v56 = vld [vmem:[%s11786_s5 + $0xb0] sm:$0xff]  }
 0x3ae   :  { %v11522_v52 = vadd.f32 %v5866_v41, %v5826_v38  ;;  %6190 = vmatprep.mubr.bf16.mxu1 %v8686_v40  ;;  %v2420_v40 = vld [vmem:[%s11784_s3 + $0x10d8] sm:$0xff]  ;;  %v8581_v41 = vld [vmem:[%s11786_s5 + $0x50] sm:$0xff]   ;;  %v8585_v46 = vld [vmem:[%s11786_s5 + $0x48] sm:$0xff]  }
 0x3af   :  { %v5868_v59 = vpop.f32.mrf.mxu1  ;;  %v7691_v35 = vcombine.high %v2420_v40, %v2424_v48  ;;  %v7690_v2 = vcombine.low %v2420_v40, %v2424_v48  ;;  %v8579_v38 = vld [vmem:[%s11786_s5 + $0x18] sm:$0xff]   ;;  %v8594_v40 = vld [vmem:[%s11786_s5 + $0x88] sm:$0xff]  }
 0x3b0   :  { %6140 = vmatpush2.bf16.msra.mxu0 %v7634_v57  ;;  %6161 = vmatpush1.bf16.msra.mxu1 %v7714_v14  ;;  %v8577_v57 = vld [vmem:[%s11786_s5 + $0x58] sm:$0xff]   ;;  %v8580_v14 = vld [vmem:[%s11786_s5 + $0xa8] sm:$0xff]  }
 0x3b1   :  { %v5869_v20 = vpop.f32.mrf.mxu1  ;;  %6141 = vmatprep.subr.bf16.mxu0 %v7627_v63  ;;  %6162 = vmatprep.subr.bf16.mxu1 %v7707_v43  ;;  %v8582_v63 = vld [vmem:[%s11786_s5 + $0xe0] sm:$0xff]   ;;  %v8583_v43 = vld [vmem:[%s11786_s5 + $0x10] sm:$0xff]   ;;  %v8588_v59 = vld [vmem:[%s11786_s5 + $0x98] sm:$0xff]  }
 0x3b2   :  { %v8591_v20 = vld [vmem:[%s11786_s5] sm:$0xff]   ;;  %v8613_v30 = vld [vmem:[%s11786_s5 + $0x1f8] sm:$0xff]  }
 0x3b4   :  { %6142 = vmatpush2.bf16.msra.mxu0 %v7626_v13  ;;  %6163 = vmatpush1.bf16.msra.mxu1 %v7706_v26  ;;  %v8589_v13 = vld [vmem:[%s11786_s5 + $0x40] sm:$0xff]   ;;  %v8590_v26 = vld [vmem:[%s11786_s5 + $0xd0] sm:$0xff]  }
 0x3b5   :  { %6143 = vmatprep.subr.bf16.mxu0 %v7619_v22  ;;  %6164 = vmatprep.subr.bf16.mxu1 %v7699_v62  ;;  %v8592_v22 = vld [vmem:[%s11786_s5 + $0x90] sm:$0xff]   ;;  %v6199_v62 = vmax.f32 %v10863_v44, 0.0  ;;  %v8598_v44 = vld [vmem:[%s11786_s5 + $0x138] sm:$0xff]  }
 0x3b7   :  { %v6207_v48 = vpack.c.bf16 %v6199_v62, %v6199_v62 }
 0x3b8   :  { %6144 = vmatpush2.bf16.msra.mxu0 %v7618_v51  ;;  %6165 = vmatpush1.bf16.msra.mxu1 %v7698_v17  ;;  %v8595_v51 = vld [vmem:[%s11786_s5 + $0xc0] sm:$0xff]   ;;  %v8599_v17 = vld [vmem:[%s11786_s5 + $0x170] sm:$0xff]  }
 0x3b9   :  { %6145 = vmatprep.subr.bf16.mxu0 %v7611_v16  ;;  %6166 = vmatprep.subr.bf16.mxu1 %v7691_v35  ;;  %v8596_v35 = vld [vmem:[%s11786_s5 + $0x80] sm:$0xff]  }
 0x3bc   :  { %6146 = vmatpush2.bf16.msra.mxu0 %v7610_v32  ;;  %6167 = vmatpush1.bf16.msra.mxu1 %v7690_v2  ;;  %v8602_v2 = vld [vmem:[%s11786_s5 + $0x128] sm:$0xff]  }
 0x3bd   :  { %6147 = vmatprep.subr.bf16.mxu0 %v7603_v31  ;;  %6168 = vmatprep.subr.bf16.mxu1 %v7683_v4  ;;  %v6209_v31 = vpack.c.bf16 %v6201_v7, %v6201_v7 }
 0x3c0   :  { %6148 = vmatpush2.bf16.msra.mxu0 %v7602_v6  ;;  %6169 = vmatpush1.bf16.msra.mxu1 %v7682_v23  ;;  %v8605_v23 = vld [vmem:[%s11786_s5 + $0x158] sm:$0xff]  }
 0x3c1   :  { %6170 = vmatprep.subr.bf16.mxu1 %v7675_v53  ;;  %8193 = vmatprep.subr.bf16.mxu0 %v8565_v28  ;;  %v8606_v28 = vld [vmem:[%s11786_s5 + $0x118] sm:$0xff]  }
 0x3c3   :  { %6150 = vmatmul.mubr.bf16.vlgmr.msra.gmra.mxu0 %v10165_v19  ;;  %v6202_v19 = vmax.f32 %v11319_v25, 0.0  ;;  %v8574_v25 = vld [vmem:[%s11786_s5 + $0xf0] sm:$0xff]  }
 0x3c4   :  { %6171 = vmatpush1.bf16.msra.mxu1 %v7674_v18  ;;  %8194 = vmatpush3.bf16.msra.mxu0 %v8566_v27  ;;  %v8614_v18 = vld [vmem:[%s11786_s5 + $0x1b8] sm:$0xff]   ;;  %v8615_v27 = vld [vmem:[%s11786_s5 + $0x1f0] sm:$0xff]  }
 0x3c5   :  { %6766 = vmatprep.mubr.bf16.mxu0 %v6208_v54  ;;  %6172 = vmatprep.subr.bf16.mxu1 %v7667_v21  ;;  %v6210_v47 = vpack.c.bf16 %v6202_v19, %v6202_v19  ;;  %v8608_v21 = vld [vmem:[%s11786_s5 + $0x110] sm:$0xff]   ;;  %v8609_v54 = vld [vmem:[%s11786_s5 + $0x148] sm:$0xff]   ;;  %v8619_v19 = vld [vmem:[%s11786_s5 + $0x1e0] sm:$0xff]  }
 0x3c6   :  { %8195 = vmatprep.subr.bf16.mxu0 %v8567_v15  ;;  %v8616_v15 = vld [vmem:[%s11786_s5 + $0x1b0] sm:$0xff]  }
 0x3c8   :  { %6173 = vmatpush1.bf16.msra.mxu1 %v7666_v1  ;;  %8196 = vmatpush3.bf16.msra.mxu0 %v8568_v42  ;;  %v8617_v1 = vld [vmem:[%s11786_s5 + $0x1e8] sm:$0xff]  }
 0x3c9   :  { %8197 = vmatprep.subr.bf16.mxu0 %v8569_v34  ;;  %8215 = vmatprep.subr.bf16.mxu1 %v8570_v39  ;;  %v8610_v42 = vld [vmem:[%s11786_s5 + $0x108] sm:$0xff]   ;;  %v8611_v39 = vld [vmem:[%s11786_s5 + $0x140] sm:$0xff]  }
 0x3ca   :  { %v8618_v34 = vld [vmem:[%s11786_s5 + $0x1a8] sm:$0xff]  }
 0x3cb   :  { %6191 = vmatmul.mubr.bf16.vlgmr.msra.gmra.mxu1 %v10242_v9  ;;  %v8578_v9 = vld [vmem:[%s11786_s5 + $0xe8] sm:$0xff]  }
 0x3cc   :  { %8198 = vmatpush3.bf16.msra.mxu0 %v8571_v5  ;;  %8216 = vmatpush3.bf16.msra.mxu1 %v8572_v60  ;;  %v8612_v5 = vld [vmem:[%s11786_s5 + $0x100] sm:$0xff]  }
 0x3cd   :  { %6806 = vmatprep.mubr.bf16.mxu1 %v6210_v47  ;;  %8199 = vmatprep.subr.bf16.mxu0 %v8573_v37  ;;  %v8620_v60 = vld [vmem:[%s11786_s5 + $0x1a0] sm:$0xff]  }
 0x3ce   :  { %8217 = vmatprep.subr.bf16.mxu1 %v8574_v25 }
 0x3d0   :  { %8200 = vmatpush3.bf16.msra.mxu0 %v8575_v55  ;;  %8218 = vmatpush3.bf16.msra.mxu1 %v8576_v56 }
 0x3d1   :  { %8201 = vmatprep.subr.bf16.mxu0 %v8577_v57  ;;  %8219 = vmatprep.subr.bf16.mxu1 %v8578_v9  ;;  %v8621_v9 = vld [vmem:[%s11786_s5 + $0x1d8] sm:$0xff]  }
 0x3d4   :  { %8202 = vmatpush3.bf16.msra.mxu0 %v8579_v38  ;;  %8220 = vmatpush3.bf16.msra.mxu1 %v8580_v14  ;;  %v8622_v14 = vld [vmem:[%s11786_s5 + $0x198] sm:$0xff]  }
 0x3d5   :  { %8203 = vmatprep.subr.bf16.mxu0 %v8581_v41  ;;  %8221 = vmatprep.subr.bf16.mxu1 %v8582_v63 }
 0x3d8   :  { %8204 = vmatpush3.bf16.msra.mxu0 %v8583_v43  ;;  %8222 = vmatpush3.bf16.msra.mxu1 %v8584_v8 }
 0x3d9   :  { %8205 = vmatprep.subr.bf16.mxu0 %v8585_v46  ;;  %8223 = vmatprep.subr.bf16.mxu1 %v8586_v33  ;;  %v8624_v46 = vld [vmem:[%s11786_s5 + $0x190] sm:$0xff]  }
 0x3dc   :  { %8206 = vmatpush3.bf16.msra.mxu0 %v8587_v50  ;;  %8224 = vmatpush3.bf16.msra.mxu1 %v8588_v59  ;;  %v8625_v59 = vld [vmem:[%s11786_s5 + $0x1c8] sm:$0xff]  }
 0x3dd   :  { %8207 = vmatprep.subr.bf16.mxu0 %v8589_v13  ;;  %8225 = vmatprep.subr.bf16.mxu1 %v8590_v26  ;;  %v8626_v13 = vld [vmem:[%s11786_s5 + $0x188] sm:$0xff]   ;;  %v8627_v26 = vld [vmem:[%s11786_s5 + $0x1c0] sm:$0xff]  }
 0x3e0   :  { %8208 = vmatpush3.bf16.msra.mxu0 %v8591_v20  ;;  %8226 = vmatpush3.bf16.msra.mxu1 %v8592_v22  ;;  %v8628_v20 = vld [vmem:[%s11786_s5 + $0x180] sm:$0xff]  }
 0x3e1   :  { %8227 = vmatprep.subr.bf16.mxu1 %v8593_v36  ;;  %8237 = vmatprep.subr.bf16.mxu0 %v8597_v10 }
 0x3e3   :  { %v5905_v16 = vpop.f32.mrf.mxu0  ;;  %6767 = vmatmul.mubr.bf16.vlgmr.msra.gmra.mxu0 %v6207_v48  ;;  %v8661_v48 = vld [vmem:[%s11785_s4] sm:$0xff] }
 0x3e4   :  { %8228 = vmatpush3.bf16.msra.mxu1 %v8594_v40  ;;  %8238 = vmatpush3.bf16.msra.mxu0 %v8598_v44  ;;  %v5906_v37 = vadd.f32 %v5905_v16, %v11517_v29  ;;  %v2485_v40 = vsub.s32 6, %v10529_v12  ;;  %v2489_v44 = vsub.s32 7, %v10529_v12 }
 0x3e5   :  { %v5907_v24 = vpop.f32.mrf.mxu0  ;;  %8229 = vmatprep.subr.bf16.mxu1 %v8595_v51  ;;  %8239 = vmatprep.subr.bf16.mxu0 %v8599_v17 }
 0x3e6   :  { %v5908_v25 = vadd.f32 %v5907_v24, %v11522_v52  ;;  %v8623_v52 = vld [vmem:[%s11786_s5 + $0x1d0] sm:$0xff]   ;;  %v2486_v51 = vrot.slane %v8661_v48, %v2485_v40  ;;  %v2490_v17 = vrot.slane %v8661_v48, %v2489_v44 }
 0x3e7   :  { %v5909_v32 = vpop.f32.mrf.mxu0 }
 0x3e8   :  { %8230 = vmatpush3.bf16.msra.mxu1 %v8596_v35  ;;  %8240 = vmatpush3.bf16.msra.mxu0 %v8600_v49 }
 0x3e9   :  { %v5910_v4 = vpop.f32.mrf.mxu0  ;;  %8241 = vmatprep.subr.bf16.mxu0 %v8601_v3  ;;  %8259 = vmatprep.subr.bf16.mxu1 %v8613_v30 }
 0x3eb   :  { %v5946_v45 = vpop.f32.mrf.mxu1  ;;  %6807 = vmatmul.mubr.bf16.vlgmr.msra.gmra.mxu1 %v6209_v31 }
 0x3ec   :  { %8242 = vmatpush3.bf16.msra.mxu0 %v8602_v2  ;;  %8260 = vmatpush3.bf16.msra.mxu1 %v8614_v18  ;;  %v5947_v47 = vadd.f32 %v5946_v45, %v5906_v37 }
 0x3ed   :  { %v5948_v6 = vpop.f32.mrf.mxu1  ;;  %8243 = vmatprep.subr.bf16.mxu0 %v8603_v61  ;;  %8261 = vmatprep.subr.bf16.mxu1 %v8615_v27 }
 0x3ee   :  { %v5949_v56 = vadd.f32 %v5948_v6, %v5908_v25 }
 0x3ef   :  { %v5950_v53 = vpop.f32.mrf.mxu1 }
 0x3f0   :  { %8244 = vmatpush3.bf16.msra.mxu0 %v8604_v0  ;;  %8262 = vmatpush3.bf16.msra.mxu1 %v8616_v15 }
 0x3f1   :  { %v5951_v58 = vpop.f32.mrf.mxu1  ;;  %8245 = vmatprep.subr.bf16.mxu0 %v8605_v23  ;;  %8263 = vmatprep.subr.bf16.mxu1 %v8617_v1 }
 0x3f4   :  { %8246 = vmatpush3.bf16.msra.mxu0 %v8606_v28  ;;  %8264 = vmatpush3.bf16.msra.mxu1 %v8618_v34 }
 0x3f5   :  { %8247 = vmatprep.subr.bf16.mxu0 %v8607_v11  ;;  %8265 = vmatprep.subr.bf16.mxu1 %v8619_v19 }
 0x3f8   :  { %8248 = vmatpush3.bf16.msra.mxu0 %v8608_v21  ;;  %8266 = vmatpush3.bf16.msra.mxu1 %v8620_v60 }
 0x3f9   :  { %8249 = vmatprep.subr.bf16.mxu0 %v8609_v54  ;;  %8267 = vmatprep.subr.bf16.mxu1 %v8621_v9 }
 0x3fc   :  { %8250 = vmatpush3.bf16.msra.mxu0 %v8610_v42  ;;  %8268 = vmatpush3.bf16.msra.mxu1 %v8622_v14 }
 0x3fd   :  { %8251 = vmatprep.subr.bf16.mxu0 %v8611_v39  ;;  %8269 = vmatprep.subr.bf16.mxu1 %v8623_v52 }
 0x400   :  { %8252 = vmatpush3.bf16.msra.mxu0 %v8612_v5  ;;  %8270 = vmatpush3.bf16.msra.mxu1 %v8624_v46 }
 0x401   :  { %8271 = vmatprep.subr.bf16.mxu1 %v8625_v59 }
 0x403   :  { %v5987_v55 = vpop.f32.mrf.mxu0 }
 0x404   :  { %v5988_v57 = vadd.f32 %v5987_v55, %v5947_v47  ;;  %8272 = vmatpush3.bf16.msra.mxu1 %v8626_v13  ;;  %v7724_v47 = vld [vmem:[%s11787_s6] ss:$0 sm:$0xff]  ;;  %s8662_s6 = scalar_lea.vmem %s6903_s0, 32 }
 0x405   :  { %v5989_v38 = vpop.f32.mrf.mxu0  ;;  %8273 = vmatprep.subr.bf16.mxu1 %v8627_v26  ;;  %p8663_p0 = scmp.ne.s32.totalorder %s6903_s0, %s8662_s6  ;;  %p8668_p2 = scmp.lt.s32.totalorder %s8662_s6, %s8662_s6 }
 0x406   :  { %v5990_v41 = vadd.f32 %v5989_v38, %v5949_v56  ;;  %v6203_v29 = vmax.f32 %v5988_v57, 0.0 }
 0x407   :  { %v5991_v63 = vpop.f32.mrf.mxu0  ;;  %p8669_p3 = por %p8668_p2, %p8667_p1 }
 0x408   :  { %v6204_v43 = vmax.f32 %v5990_v41, 0.0  ;;  %v6211_v50 = vpack.c.bf16 %v6203_v29, %v6203_v29  ;;  %8274 = vmatpush3.bf16.msra.mxu1 %v8628_v20 }
 0x409   :  { %v5992_v8 = vpop.f32.mrf.mxu0  ;;  %p8670_p4 = pnand %p8669_p3, %p8663_p0 }
 0x40a   :  { %v6212_v33 = vpack.c.bf16 %v6204_v43, %v6204_v43 }
 0x40c   :  { %6846 = vmatprep.mubr.bf16.mxu0 %v6212_v33 }
 0x40d   :  { %6847 = vmatmul.mubr.bf16.vlgmr.msra.gmra.mxu0 %v6211_v50 }
 0x42b   :  { %v6028_v22 = vpop.f32.mrf.mxu1 }
 0x42c   :  { %v6029_v16 = vadd.f32 %v6028_v22, %v2486_v51 }
 0x42d   :  { %v6030_v62 = vpop.f32.mrf.mxu1 }
 0x42e   :  { %v6031_v49 = vadd.f32 %v6030_v62, %v2490_v17 }
 0x42f   :  { %v6032_v36 = vpop.f32.mrf.mxu1 }
 0x431   :  { %v6033_v10 = vpop.f32.mrf.mxu1 }
 0x443   :  { %v6069_v35 = vpop.f32.mrf.mxu0 }
 0x444   :  { %v6070_v7 = vadd.f32 %v6069_v35, %v6029_v16 }
 0x445   :  { %v6071_v24 = vpop.f32.mrf.mxu0 }
 0x446   :  { %v6072_v3 = vadd.f32 %v6071_v24, %v6031_v49 }
 0x447   :  { %v6073_v32 = vpop.f32.mrf.mxu0 }
 0x449   :  { %v6074_v2 = vpop.f32.mrf.mxu0 }
 0x46b   :  { %v6110_v31 = vpop.f32.mrf.mxu1 }
 0x46c   :  { %v6111_v23 = vadd.f32 %v6110_v31, %v6070_v7 }
 0x46d   :  { %v6112_v4 = vpop.f32.mrf.mxu1 }
 0x46e   :  { %v6113_v28 = vadd.f32 %v6112_v4, %v6072_v3 }
 0x46f   :  { %v6114_v61 = vpop.f32.mrf.mxu1 }
 0x471   :  { %v6115_v45 = vpop.f32.mrf.mxu1 }
 0x483   :  { %v6151_v0 = vpop.f32.mrf.mxu0 }
 0x484   :  { %v6152_v11 = vadd.f32 %v6151_v0, %v6111_v23 }
 0x485   :  { %v6153_v12 = vpop.f32.mrf.mxu0 }
 0x486   :  { %v6154_v30 = vadd.f32 %v6153_v12, %v6113_v28 }
 0x487   :  { %v6155_v6 = vpop.f32.mrf.mxu0 }
 0x489   :  { %v6156_v53 = vpop.f32.mrf.mxu0 }
 0x48b   :  { %v6192_v58 = vpop.f32.mrf.mxu1 }
 0x48c   :  { %v6193_v18 = vadd.f32 %v6192_v58, %v6152_v11 }
 0x48d   :  { %v6194_v27 = vpop.f32.mrf.mxu1 }
 0x48e   :  { %v6195_v21 = vadd.f32 %v6194_v27, %v6154_v30  ;;  %v6205_v15 = vmax.f32 %v6193_v18, 0.0 }
 0x48f   :  { %v6196_v54 = vpop.f32.mrf.mxu1 }
 0x490   :  { %v6206_v1 = vmax.f32 %v6195_v21, 0.0  ;;  %v6213_v39 = vpack.c.bf16 %v6205_v15, %v6205_v15 }
 0x491   :  { %v6197_v42 = vpop.f32.mrf.mxu1 }
 0x492   :  { %v6214_v34 = vpack.c.bf16 %v6206_v1, %v6206_v1 }
 0x494   :  { %6886 = vmatprep.mubr.bf16.mxu1 %v6214_v34 }
 0x495   :  { %6887 = vmatmul.mubr.bf16.vlgmr.msra.gmra.mxu1 %v6213_v39 }
 0x4a3   :  { %v8209_v19 = vpop.f32.mrf.mxu0 }
 0x4a5   :  { %v8210_v5 = vpop.f32.mrf.mxu0 }
 0x4a6   :  { %v8211_v60 = vadd.f32 %v8210_v5, %v8209_v19 }
 0x4a7   :  { %v8212_v37 = vpop.f32.mrf.mxu0 }
 0x4a8   :  { %v6769_v57 = vadd.f32 %v8211_v60, %v7724_v47 }
 0x4a9   :  { %v8213_v25 = vpop.f32.mrf.mxu0 }
 0x4ab   :  { %v8231_v55 = vpop.f32.mrf.mxu1 }
 0x4ad   :  { %v8232_v56 = vpop.f32.mrf.mxu1 }
 0x4ae   :  { %v8233_v9 = vadd.f32 %v8232_v56, %v8231_v55 }
 0x4af   :  { %v8234_v38 = vpop.f32.mrf.mxu1 }
 0x4b0   :  { %v6809_v14 = vadd.f32 %v8233_v9, %v6769_v57 }
 0x4b1   :  { %v8235_v41 = vpop.f32.mrf.mxu1 }
 0x4cd   :  { %v8253_v29 = vpop.f32.mrf.mxu0 }
 0x4cf   :  { %v8254_v63 = vpop.f32.mrf.mxu0 }
 0x4d0   :  { %v8255_v43 = vadd.f32 %v8254_v63, %v8253_v29 }
 0x4d1   :  { %v8256_v52 = vpop.f32.mrf.mxu0 }
 0x4d2   :  { %v6849_v8 = vadd.f32 %v8255_v43, %v6809_v14 }
 0x4d3   :  { %v8257_v46 = vpop.f32.mrf.mxu0 }
 0x555   :  { %v8275_v33 = vpop.f32.mrf.mxu1 }
 0x557   :  { %v8276_v50 = vpop.f32.mrf.mxu1 }
 0x558   :  { %v8277_v59 = vadd.f32 %v8276_v50, %v8275_v33 }
 0x559   :  { %v8278_v13 = vpop.f32.mrf.mxu1 }
 0x55a   :  { %v6889_v26 = vadd.f32 %v8277_v59, %v6849_v8 }
 0x55b   :  { %v8279_v20 = vpop.f32.mrf.mxu1 }
 0x55c   :  { %6895 = vst.msk [vmem:[#allocation2] sm:$0x3] %vm6894_vm2, %v6889_v26 }
 0x55d   :  { %8673 = shalt.err (!%p8670_p4)
}
 0x55e   :  { %6905 = dma.vmem_to_hbm [thread:$0]  %s6903_s0, 32, %s11788_s7, [#allocation3]  }
 0x55f   :  { %8682 = dma.done.wait [#allocation3], 32  }
 0x560   :  { %8683 = vsyncadd [#allocation3], 4294967264 }
 0x561   :  { %6909 = vsyncpa [#allocation3], 1 }

</bundles_post_ra>
